<compile_context>
chip_gen: v6e
topology: v6e:2x2x1
jax: 0.10.0
libtpu: 0.0.40
codegen_flags: <defaults>
</compile_context>

<pallas_src>
import jax
import jax.numpy as jnp
import numpy as np
from jax import lax
from jax.experimental import pallas as pl
from jax.experimental.pallas import tpu as pltpu


# ----------------------------------------------------------------------------
# Fused Pallas kernel: conv1/conv2/conv3 (as Toeplitz matmuls) + MLP head
# ----------------------------------------------------------------------------
def _qreps_fused_kernel(x_ref,
                        r1_ref, m1_ref, b1_ref,
                        r2_ref, m2_ref, b2_ref,
                        r3_ref, m3_ref, b3_ref,
                        w1_ref, c1_ref, w2_ref, c2_ref,
                        w3_ref, c3_ref, w4_ref, c4_ref,
                        o_ref):
    def conv_layer(h, r_ref, m_ref, b_ref, relu):
        kh = r_ref.shape[0]
        acc = None
        for ki in range(kh):                       # static unroll over row taps
            rows = jnp.dot(r_ref[ki], h, preferred_element_type=jnp.float32)
            part = jnp.dot(rows, m_ref[ki], preferred_element_type=jnp.float32)
            acc = part if acc is None else acc + part
        acc = acc + b_ref[...]
        return jnp.maximum(acc, 0.0) if relu else acc

    h = x_ref[...]                                              # (N*H, W*Cin)
    h = conv_layer(h, r1_ref, m1_ref, b1_ref, relu=True)        # conv1 + ReLU
    h = conv_layer(h, r2_ref, m2_ref, b2_ref, relu=True)        # conv2 + ReLU
    h = conv_layer(h, r3_ref, m3_ref, b3_ref, relu=False)       # conv3 (no ReLU)

    # MLP head: 3x (Linear 256 + Tanh) + Linear n_actions
    h = jnp.tanh(jnp.dot(h, w1_ref[...],
                         preferred_element_type=jnp.float32) + c1_ref[...])
    h = jnp.tanh(jnp.dot(h, w2_ref[...],
                         preferred_element_type=jnp.float32) + c2_ref[...])
    h = jnp.tanh(jnp.dot(h, w3_ref[...],
                         preferred_element_type=jnp.float32) + c3_ref[...])
    o_ref[...] = (jnp.dot(h, w4_ref[...],
                          preferred_element_type=jnp.float32)
                  + c4_ref[...]).astype(o_ref.dtype)


def qreps_forward(x_nchw, prep):
    """Single pallas_call for the whole QREPSPolicy forward."""
    n, c, hh, ww = x_nchw.shape
    # Only XLA prologue: NCHW -> (N*H, W*C) 2-D slab (pure layout of the input).
    x2d = jnp.transpose(x_nchw, (0, 2, 3, 1)).reshape(n * hh, ww * c)

    args = (x2d,
            prep["r1"], prep["m1"], prep["b1"],
            prep["r2"], prep["m2"], prep["b2"],
            prep["r3"], prep["m3"], prep["b3"],
            prep["fc1_w"], prep["fc1_b"],
            prep["fc2_w"], prep["fc2_b"],
            prep["fc3_w"], prep["fc3_b"],
            prep["fc4_w"], prep["fc4_b"])
    n_actions = prep["fc4_w"].shape[1]
    return pl.pallas_call(
        _qreps_fused_kernel,
        out_shape=jax.ShapeDtypeStruct((n, n_actions), jnp.float32),
        in_specs=[pl.BlockSpec(memory_space=pltpu.MemorySpace.VMEM)] * len(args),
        out_specs=pl.BlockSpec(memory_space=pltpu.MemorySpace.VMEM),
    )(*args)


# ----------------------------------------------------------------------------
# Parameter prep: conv -> (row-selection, block-Toeplitz) constant matrices
# ----------------------------------------------------------------------------
def _round8(v):
    return ((v + 7) // 8) * 8


def prepare_kernel_inputs(p, batch, obs_shape):
    c_in, hh, ww = obs_shape
    convs = [("c1", 32, 8, 4), ("c2", 64, 4, 2), ("c3", 64, 3, 1)]

    prep = {}
    in_h, in_w, cin = hh, ww, c_in
    in_rows = batch * in_h                       # rows of the 2-D activation slab
    for idx, (name, cout, k, s) in enumerate(convs):
        out_h = (in_h - k) // s + 1
        out_w = (in_w - k) // s + 1
        w = np.asarray(p[name + "_w"], np.float32)         # (cout, cin, kh, kw)
        b = np.asarray(p[name + "_b"], np.float32)
        scale = (1.0 / 255.0) if idx == 0 else 1.0         # fold x/255 into conv1
        last = idx == len(convs) - 1
        out_rows = batch * out_h if last else _round8(batch * out_h)

        # Block-Toeplitz weight M: (kh, in_w*cin, out_w*cout)
        #   M[ki, x*cin+ci, ox*cout+co] = w[co, ci, ki, x - s*ox] (when valid)
        m = np.zeros((k, in_w * cin, out_w * cout), np.float32)
        for ki in range(k):
            for ox in range(out_w):
                for kj in range(k):
                    x = ox * s + kj
                    m[ki, x * cin:(x + 1) * cin, ox * cout:(ox + 1) * cout] = \
                        w[:, :, ki, kj].T * scale

        # Row selection R: (kh, out_rows, in_rows); picks input row (n, s*oy+ki)
        r = np.zeros((k, out_rows, in_rows), np.float32)
        for ki in range(k):
            for bn in range(batch):
                for oy in range(out_h):
                    r[ki, bn * out_h + oy, bn * in_h + s * oy + ki] = 1.0

        prep[f"r{idx + 1}"] = jnp.asarray(r)
        prep[f"m{idx + 1}"] = jnp.asarray(m)
        prep[f"b{idx + 1}"] = jnp.asarray(np.tile(b, out_w).reshape(1, -1))

        in_h, in_w, cin, in_rows = out_h, out_w, cout, out_rows

    assert in_h == 1 and in_w == 1, (
        "fused kernel assumes the conv stack reduces spatial dims to 1x1")
    # TODO(synk): for conv output spatial > 1x1, fold the NCHW-flatten row
    # permutation into fc1_w instead of asserting.

    prep["fc1_w"] = p["fc1_w"]
    prep["fc1_b"] = p["fc1_b"].reshape(1, -1)
    prep["fc2_w"] = p["fc2_w"]
    prep["fc2_b"] = p["fc2_b"].reshape(1, -1)
    prep["fc3_w"] = p["fc3_w"]
    prep["fc3_b"] = p["fc3_b"].reshape(1, -1)
    prep["fc4_w"] = p["fc4_w"]
    prep["fc4_b"] = p["fc4_b"].reshape(1, -1)
    return prep


# ----------------------------------------------------------------------------
# Deterministic parameter init (mirrors torch orthogonal_ / constant_ init)
# ----------------------------------------------------------------------------
def _orthogonal(rng, shape, std):
    rows = shape[0]
    cols = int(np.prod(shape[1:]))
    a = rng.standard_normal((rows, cols))
    if rows < cols:
        a = a.T
    q, r = np.linalg.qr(a)
    q = q * np.sign(np.diag(r))
    if rows < cols:
        q = q.T
    return jnp.asarray(std * q.reshape(shape), dtype=jnp.float32)


def make_params(in_channels, output_dim, n_actions, seed=0):
    rng = np.random.default_rng(seed)
    std = float(np.sqrt(2.0))
    p = {}
    p["c1_w"] = _orthogonal(rng, (32, in_channels, 8, 8), std)
    p["c1_b"] = jnp.zeros((32,), jnp.float32)
    p["c2_w"] = _orthogonal(rng, (64, 32, 4, 4), std)
    p["c2_b"] = jnp.zeros((64,), jnp.float32)
    p["c3_w"] = _orthogonal(rng, (64, 64, 3, 3), std)
    p["c3_b"] = jnp.zeros((64,), jnp.float32)
    # Linear weights initialized as (out, in) like torch, stored as (in, out)
    p["fc1_w"] = _orthogonal(rng, (256, output_dim), std).T
    p["fc1_b"] = jnp.zeros((256,), jnp.float32)
    p["fc2_w"] = _orthogonal(rng, (256, 256), std).T
    p["fc2_b"] = jnp.zeros((256,), jnp.float32)
    p["fc3_w"] = _orthogonal(rng, (256, 256), std).T
    p["fc3_b"] = jnp.zeros((256,), jnp.float32)
    p["fc4_w"] = _orthogonal(rng, (n_actions, 256), 0.01).T
    p["fc4_b"] = jnp.zeros((n_actions,), jnp.float32)
    return p


# ----------------------------------------------------------------------------
# Pure-JAX reference (for correctness check)
# ----------------------------------------------------------------------------
def ref_forward(x_nchw, p):
    dn = ("NCHW", "OIHW", "NCHW")
    x = x_nchw / 255.0
    y = lax.conv_general_dilated(x, p["c1_w"], (4, 4), "VALID",
                                 dimension_numbers=dn)
    y = jnp.maximum(y + p["c1_b"][None, :, None, None], 0.0)
    y = lax.conv_general_dilated(y, p["c2_w"], (2, 2), "VALID",
                                 dimension_numbers=dn)
    y = jnp.maximum(y + p["c2_b"][None, :, None, None], 0.0)
    y = lax.conv_general_dilated(y, p["c3_w"], (1, 1), "VALID",
                                 dimension_numbers=dn)
    y = y + p["c3_b"][None, :, None, None]
    feat = y.reshape(y.shape[0], -1)
    h = jnp.tanh(feat @ p["fc1_w"] + p["fc1_b"])
    h = jnp.tanh(h @ p["fc2_w"] + p["fc2_b"])
    h = jnp.tanh(h @ p["fc3_w"] + p["fc3_b"])
    return h @ p["fc4_w"] + p["fc4_b"]


# ----------------------------------------------------------------------------
if __name__ == "__main__":
    # Small Atari-like observation: 4 stacked frames of 36x36 pixels.
    # Conv spatial: 36 -> 8 -> 3 -> 1  =>  flattened feature dim = 64*1*1 = 64.
    batch, obs_shape, n_actions = 2, (4, 36, 36), 6
    output_dim = 64

    params = make_params(obs_shape[0], output_dim, n_actions, seed=0)
    prep = prepare_kernel_inputs(params, batch, obs_shape)

    key = jax.random.PRNGKey(0)
    x = jax.random.uniform(key, (batch,) + obs_shape, dtype=jnp.float32,
                           minval=0.0, maxval=255.0)

    fwd = jax.jit(qreps_forward)
    logits = jax.block_until_ready(fwd(x, prep))
    assert logits.shape == (batch, n_actions)
    assert logits.dtype == jnp.float32

    ref = jax.block_until_ready(ref_forward(x, params))
    np.testing.assert_allclose(np.asarray(logits), np.asarray(ref),
                               rtol=2e-2, atol=2e-2)

    print("KERNEL_OK")
</pallas_src>

<mosaic_0001>
module attributes {stable_mosaic.version = 11 : i64} {
  func.func @_qreps_fused_kernel(%arg0: memref<72x144xf32, #tpu.memory_space<vmem>>, %arg1: memref<8x16x72xf32, #tpu.memory_space<vmem>>, %arg2: memref<8x144x256xf32, #tpu.memory_space<vmem>>, %arg3: memref<1x256xf32, #tpu.memory_space<vmem>>, %arg4: memref<4x8x16xf32, #tpu.memory_space<vmem>>, %arg5: memref<4x256x192xf32, #tpu.memory_space<vmem>>, %arg6: memref<1x192xf32, #tpu.memory_space<vmem>>, %arg7: memref<3x2x8xf32, #tpu.memory_space<vmem>>, %arg8: memref<3x192x64xf32, #tpu.memory_space<vmem>>, %arg9: memref<1x64xf32, #tpu.memory_space<vmem>>, %arg10: memref<64x256xf32, #tpu.memory_space<vmem>>, %arg11: memref<1x256xf32, #tpu.memory_space<vmem>>, %arg12: memref<256x256xf32, #tpu.memory_space<vmem>>, %arg13: memref<1x256xf32, #tpu.memory_space<vmem>>, %arg14: memref<256x256xf32, #tpu.memory_space<vmem>>, %arg15: memref<1x256xf32, #tpu.memory_space<vmem>>, %arg16: memref<256x6xf32, #tpu.memory_space<vmem>>, %arg17: memref<1x6xf32, #tpu.memory_space<vmem>>, %arg18: memref<2x6xf32, #tpu.memory_space<vmem>>) attributes {dimension_semantics = [], scalar_prefetch = 0 : i64, scratch_operands = 0 : i64, tpu.core_type = #tpu.core_type<tc>} {
    %c0 = arith.constant 0 : index
    %c0_0 = arith.constant 0 : index
    %0 = vector.load %arg0[%c0, %c0_0] : memref<72x144xf32, #tpu.memory_space<vmem>>, vector<72x144xf32>
    %c0_1 = arith.constant 0 : index
    %c0_2 = arith.constant 0 : index
    %c0_3 = arith.constant 0 : index
    %1 = vector.load %arg1[%c0_1, %c0_2, %c0_3] : memref<8x16x72xf32, #tpu.memory_space<vmem>>, vector<1x16x72xf32>
    %2 = vector.shape_cast %1 : vector<1x16x72xf32> to vector<16x72xf32>
    %cst = arith.constant dense<0.000000e+00> : vector<16x144xf32>
    %3 = tpu.matmul %2, %0, %cst {dimension_numbers = #tpu.dot_dimension_numbers<[1], [0], [0], [1], [0, 0, 1, 1], [], []>} : vector<16x72xf32>, vector<72x144xf32>, vector<16x144xf32> -> vector<16x144xf32>
    %c0_4 = arith.constant 0 : index
    %c0_5 = arith.constant 0 : index
    %c0_6 = arith.constant 0 : index
    %4 = vector.load %arg2[%c0_4, %c0_5, %c0_6] : memref<8x144x256xf32, #tpu.memory_space<vmem>>, vector<1x144x256xf32>
    %5 = vector.shape_cast %4 : vector<1x144x256xf32> to vector<144x256xf32>
    %cst_7 = arith.constant dense<0.000000e+00> : vector<16x256xf32>
    %6 = tpu.matmul %3, %5, %cst_7 {dimension_numbers = #tpu.dot_dimension_numbers<[1], [0], [0], [1], [0, 0, 1, 1], [], []>} : vector<16x144xf32>, vector<144x256xf32>, vector<16x256xf32> -> vector<16x256xf32>
    %c1 = arith.constant 1 : index
    %c0_8 = arith.constant 0 : index
    %c0_9 = arith.constant 0 : index
    %7 = vector.load %arg1[%c1, %c0_8, %c0_9] : memref<8x16x72xf32, #tpu.memory_space<vmem>>, vector<1x16x72xf32>
    %8 = vector.shape_cast %7 : vector<1x16x72xf32> to vector<16x72xf32>
    %cst_10 = arith.constant dense<0.000000e+00> : vector<16x144xf32>
    %9 = tpu.matmul %8, %0, %cst_10 {dimension_numbers = #tpu.dot_dimension_numbers<[1], [0], [0], [1], [0, 0, 1, 1], [], []>} : vector<16x72xf32>, vector<72x144xf32>, vector<16x144xf32> -> vector<16x144xf32>
    %c1_11 = arith.constant 1 : index
    %c0_12 = arith.constant 0 : index
    %c0_13 = arith.constant 0 : index
    %10 = vector.load %arg2[%c1_11, %c0_12, %c0_13] : memref<8x144x256xf32, #tpu.memory_space<vmem>>, vector<1x144x256xf32>
    %11 = vector.shape_cast %10 : vector<1x144x256xf32> to vector<144x256xf32>
    %cst_14 = arith.constant dense<0.000000e+00> : vector<16x256xf32>
    %12 = tpu.matmul %9, %11, %cst_14 {dimension_numbers = #tpu.dot_dimension_numbers<[1], [0], [0], [1], [0, 0, 1, 1], [], []>} : vector<16x144xf32>, vector<144x256xf32>, vector<16x256xf32> -> vector<16x256xf32>
    %13 = arith.addf %6, %12 : vector<16x256xf32>
    %c2 = arith.constant 2 : index
    %c0_15 = arith.constant 0 : index
    %c0_16 = arith.constant 0 : index
    %14 = vector.load %arg1[%c2, %c0_15, %c0_16] : memref<8x16x72xf32, #tpu.memory_space<vmem>>, vector<1x16x72xf32>
    %15 = vector.shape_cast %14 : vector<1x16x72xf32> to vector<16x72xf32>
    %cst_17 = arith.constant dense<0.000000e+00> : vector<16x144xf32>
    %16 = tpu.matmul %15, %0, %cst_17 {dimension_numbers = #tpu.dot_dimension_numbers<[1], [0], [0], [1], [0, 0, 1, 1], [], []>} : vector<16x72xf32>, vector<72x144xf32>, vector<16x144xf32> -> vector<16x144xf32>
    %c2_18 = arith.constant 2 : index
    %c0_19 = arith.constant 0 : index
    %c0_20 = arith.constant 0 : index
    %17 = vector.load %arg2[%c2_18, %c0_19, %c0_20] : memref<8x144x256xf32, #tpu.memory_space<vmem>>, vector<1x144x256xf32>
    %18 = vector.shape_cast %17 : vector<1x144x256xf32> to vector<144x256xf32>
    %cst_21 = arith.constant dense<0.000000e+00> : vector<16x256xf32>
    %19 = tpu.matmul %16, %18, %cst_21 {dimension_numbers = #tpu.dot_dimension_numbers<[1], [0], [0], [1], [0, 0, 1, 1], [], []>} : vector<16x144xf32>, vector<144x256xf32>, vector<16x256xf32> -> vector<16x256xf32>
    %20 = arith.addf %13, %19 : vector<16x256xf32>
    %c3 = arith.constant 3 : index
    %c0_22 = arith.constant 0 : index
    %c0_23 = arith.constant 0 : index
    %21 = vector.load %arg1[%c3, %c0_22, %c0_23] : memref<8x16x72xf32, #tpu.memory_space<vmem>>, vector<1x16x72xf32>
    %22 = vector.shape_cast %21 : vector<1x16x72xf32> to vector<16x72xf32>
    %cst_24 = arith.constant dense<0.000000e+00> : vector<16x144xf32>
    %23 = tpu.matmul %22, %0, %cst_24 {dimension_numbers = #tpu.dot_dimension_numbers<[1], [0], [0], [1], [0, 0, 1, 1], [], []>} : vector<16x72xf32>, vector<72x144xf32>, vector<16x144xf32> -> vector<16x144xf32>
    %c3_25 = arith.constant 3 : index
    %c0_26 = arith.constant 0 : index
    %c0_27 = arith.constant 0 : index
    %24 = vector.load %arg2[%c3_25, %c0_26, %c0_27] : memref<8x144x256xf32, #tpu.memory_space<vmem>>, vector<1x144x256xf32>
    %25 = vector.shape_cast %24 : vector<1x144x256xf32> to vector<144x256xf32>
    %cst_28 = arith.constant dense<0.000000e+00> : vector<16x256xf32>
    %26 = tpu.matmul %23, %25, %cst_28 {dimension_numbers = #tpu.dot_dimension_numbers<[1], [0], [0], [1], [0, 0, 1, 1], [], []>} : vector<16x144xf32>, vector<144x256xf32>, vector<16x256xf32> -> vector<16x256xf32>
    %27 = arith.addf %20, %26 : vector<16x256xf32>
    %c4 = arith.constant 4 : index
    %c0_29 = arith.constant 0 : index
    %c0_30 = arith.constant 0 : index
    %28 = vector.load %arg1[%c4, %c0_29, %c0_30] : memref<8x16x72xf32, #tpu.memory_space<vmem>>, vector<1x16x72xf32>
    %29 = vector.shape_cast %28 : vector<1x16x72xf32> to vector<16x72xf32>
    %cst_31 = arith.constant dense<0.000000e+00> : vector<16x144xf32>
    %30 = tpu.matmul %29, %0, %cst_31 {dimension_numbers = #tpu.dot_dimension_numbers<[1], [0], [0], [1], [0, 0, 1, 1], [], []>} : vector<16x72xf32>, vector<72x144xf32>, vector<16x144xf32> -> vector<16x144xf32>
    %c4_32 = arith.constant 4 : index
    %c0_33 = arith.constant 0 : index
    %c0_34 = arith.constant 0 : index
    %31 = vector.load %arg2[%c4_32, %c0_33, %c0_34] : memref<8x144x256xf32, #tpu.memory_space<vmem>>, vector<1x144x256xf32>
    %32 = vector.shape_cast %31 : vector<1x144x256xf32> to vector<144x256xf32>
    %cst_35 = arith.constant dense<0.000000e+00> : vector<16x256xf32>
    %33 = tpu.matmul %30, %32, %cst_35 {dimension_numbers = #tpu.dot_dimension_numbers<[1], [0], [0], [1], [0, 0, 1, 1], [], []>} : vector<16x144xf32>, vector<144x256xf32>, vector<16x256xf32> -> vector<16x256xf32>
    %34 = arith.addf %27, %33 : vector<16x256xf32>
    %c5 = arith.constant 5 : index
    %c0_36 = arith.constant 0 : index
    %c0_37 = arith.constant 0 : index
    %35 = vector.load %arg1[%c5, %c0_36, %c0_37] : memref<8x16x72xf32, #tpu.memory_space<vmem>>, vector<1x16x72xf32>
    %36 = vector.shape_cast %35 : vector<1x16x72xf32> to vector<16x72xf32>
    %cst_38 = arith.constant dense<0.000000e+00> : vector<16x144xf32>
    %37 = tpu.matmul %36, %0, %cst_38 {dimension_numbers = #tpu.dot_dimension_numbers<[1], [0], [0], [1], [0, 0, 1, 1], [], []>} : vector<16x72xf32>, vector<72x144xf32>, vector<16x144xf32> -> vector<16x144xf32>
    %c5_39 = arith.constant 5 : index
    %c0_40 = arith.constant 0 : index
    %c0_41 = arith.constant 0 : index
    %38 = vector.load %arg2[%c5_39, %c0_40, %c0_41] : memref<8x144x256xf32, #tpu.memory_space<vmem>>, vector<1x144x256xf32>
    %39 = vector.shape_cast %38 : vector<1x144x256xf32> to vector<144x256xf32>
    %cst_42 = arith.constant dense<0.000000e+00> : vector<16x256xf32>
    %40 = tpu.matmul %37, %39, %cst_42 {dimension_numbers = #tpu.dot_dimension_numbers<[1], [0], [0], [1], [0, 0, 1, 1], [], []>} : vector<16x144xf32>, vector<144x256xf32>, vector<16x256xf32> -> vector<16x256xf32>
    %41 = arith.addf %34, %40 : vector<16x256xf32>
    %c6 = arith.constant 6 : index
    %c0_43 = arith.constant 0 : index
    %c0_44 = arith.constant 0 : index
    %42 = vector.load %arg1[%c6, %c0_43, %c0_44] : memref<8x16x72xf32, #tpu.memory_space<vmem>>, vector<1x16x72xf32>
    %43 = vector.shape_cast %42 : vector<1x16x72xf32> to vector<16x72xf32>
    %cst_45 = arith.constant dense<0.000000e+00> : vector<16x144xf32>
    %44 = tpu.matmul %43, %0, %cst_45 {dimension_numbers = #tpu.dot_dimension_numbers<[1], [0], [0], [1], [0, 0, 1, 1], [], []>} : vector<16x72xf32>, vector<72x144xf32>, vector<16x144xf32> -> vector<16x144xf32>
    %c6_46 = arith.constant 6 : index
    %c0_47 = arith.constant 0 : index
    %c0_48 = arith.constant 0 : index
    %45 = vector.load %arg2[%c6_46, %c0_47, %c0_48] : memref<8x144x256xf32, #tpu.memory_space<vmem>>, vector<1x144x256xf32>
    %46 = vector.shape_cast %45 : vector<1x144x256xf32> to vector<144x256xf32>
    %cst_49 = arith.constant dense<0.000000e+00> : vector<16x256xf32>
    %47 = tpu.matmul %44, %46, %cst_49 {dimension_numbers = #tpu.dot_dimension_numbers<[1], [0], [0], [1], [0, 0, 1, 1], [], []>} : vector<16x144xf32>, vector<144x256xf32>, vector<16x256xf32> -> vector<16x256xf32>
    %48 = arith.addf %41, %47 : vector<16x256xf32>
    %c7 = arith.constant 7 : index
    %c0_50 = arith.constant 0 : index
    %c0_51 = arith.constant 0 : index
    %49 = vector.load %arg1[%c7, %c0_50, %c0_51] : memref<8x16x72xf32, #tpu.memory_space<vmem>>, vector<1x16x72xf32>
    %50 = vector.shape_cast %49 : vector<1x16x72xf32> to vector<16x72xf32>
    %cst_52 = arith.constant dense<0.000000e+00> : vector<16x144xf32>
    %51 = tpu.matmul %50, %0, %cst_52 {dimension_numbers = #tpu.dot_dimension_numbers<[1], [0], [0], [1], [0, 0, 1, 1], [], []>} : vector<16x72xf32>, vector<72x144xf32>, vector<16x144xf32> -> vector<16x144xf32>
    %c7_53 = arith.constant 7 : index
    %c0_54 = arith.constant 0 : index
    %c0_55 = arith.constant 0 : index
    %52 = vector.load %arg2[%c7_53, %c0_54, %c0_55] : memref<8x144x256xf32, #tpu.memory_space<vmem>>, vector<1x144x256xf32>
    %53 = vector.shape_cast %52 : vector<1x144x256xf32> to vector<144x256xf32>
    %cst_56 = arith.constant dense<0.000000e+00> : vector<16x256xf32>
    %54 = tpu.matmul %51, %53, %cst_56 {dimension_numbers = #tpu.dot_dimension_numbers<[1], [0], [0], [1], [0, 0, 1, 1], [], []>} : vector<16x144xf32>, vector<144x256xf32>, vector<16x256xf32> -> vector<16x256xf32>
    %55 = arith.addf %48, %54 : vector<16x256xf32>
    %c0_57 = arith.constant 0 : index
    %c0_58 = arith.constant 0 : index
    %56 = vector.load %arg3[%c0_57, %c0_58] : memref<1x256xf32, #tpu.memory_space<vmem>>, vector<1x256xf32>
    %57 = vector.broadcast %56 : vector<1x256xf32> to vector<16x256xf32>
    %58 = arith.addf %55, %57 : vector<16x256xf32>
    %cst_59 = arith.constant 0.000000e+00 : f32
    %59 = vector.broadcast %cst_59 : f32 to vector<16x256xf32>
    %60 = arith.maximumf %58, %59 : vector<16x256xf32>
    %c0_60 = arith.constant 0 : index
    %c0_61 = arith.constant 0 : index
    %c0_62 = arith.constant 0 : index
    %61 = vector.load %arg4[%c0_60, %c0_61, %c0_62] : memref<4x8x16xf32, #tpu.memory_space<vmem>>, vector<1x8x16xf32>
    %62 = vector.shape_cast %61 : vector<1x8x16xf32> to vector<8x16xf32>
    %cst_63 = arith.constant dense<0.000000e+00> : vector<8x256xf32>
    %63 = tpu.matmul %62, %60, %cst_63 {dimension_numbers = #tpu.dot_dimension_numbers<[1], [0], [0], [1], [0, 0, 1, 1], [], []>} : vector<8x16xf32>, vector<16x256xf32>, vector<8x256xf32> -> vector<8x256xf32>
    %c0_64 = arith.constant 0 : index
    %c0_65 = arith.constant 0 : index
    %c0_66 = arith.constant 0 : index
    %64 = vector.load %arg5[%c0_64, %c0_65, %c0_66] : memref<4x256x192xf32, #tpu.memory_space<vmem>>, vector<1x256x192xf32>
    %65 = vector.shape_cast %64 : vector<1x256x192xf32> to vector<256x192xf32>
    %cst_67 = arith.constant dense<0.000000e+00> : vector<8x192xf32>
    %66 = tpu.matmul %63, %65, %cst_67 {dimension_numbers = #tpu.dot_dimension_numbers<[1], [0], [0], [1], [0, 0, 1, 1], [], []>} : vector<8x256xf32>, vector<256x192xf32>, vector<8x192xf32> -> vector<8x192xf32>
    %c1_68 = arith.constant 1 : index
    %c0_69 = arith.constant 0 : index
    %c0_70 = arith.constant 0 : index
    %67 = vector.load %arg4[%c1_68, %c0_69, %c0_70] : memref<4x8x16xf32, #tpu.memory_space<vmem>>, vector<1x8x16xf32>
    %68 = vector.shape_cast %67 : vector<1x8x16xf32> to vector<8x16xf32>
    %cst_71 = arith.constant dense<0.000000e+00> : vector<8x256xf32>
    %69 = tpu.matmul %68, %60, %cst_71 {dimension_numbers = #tpu.dot_dimension_numbers<[1], [0], [0], [1], [0, 0, 1, 1], [], []>} : vector<8x16xf32>, vector<16x256xf32>, vector<8x256xf32> -> vector<8x256xf32>
    %c1_72 = arith.constant 1 : index
    %c0_73 = arith.constant 0 : index
    %c0_74 = arith.constant 0 : index
    %70 = vector.load %arg5[%c1_72, %c0_73, %c0_74] : memref<4x256x192xf32, #tpu.memory_space<vmem>>, vector<1x256x192xf32>
    %71 = vector.shape_cast %70 : vector<1x256x192xf32> to vector<256x192xf32>
    %cst_75 = arith.constant dense<0.000000e+00> : vector<8x192xf32>
    %72 = tpu.matmul %69, %71, %cst_75 {dimension_numbers = #tpu.dot_dimension_numbers<[1], [0], [0], [1], [0, 0, 1, 1], [], []>} : vector<8x256xf32>, vector<256x192xf32>, vector<8x192xf32> -> vector<8x192xf32>
    %73 = arith.addf %66, %72 : vector<8x192xf32>
    %c2_76 = arith.constant 2 : index
    %c0_77 = arith.constant 0 : index
    %c0_78 = arith.constant 0 : index
    %74 = vector.load %arg4[%c2_76, %c0_77, %c0_78] : memref<4x8x16xf32, #tpu.memory_space<vmem>>, vector<1x8x16xf32>
    %75 = vector.shape_cast %74 : vector<1x8x16xf32> to vector<8x16xf32>
    %cst_79 = arith.constant dense<0.000000e+00> : vector<8x256xf32>
    %76 = tpu.matmul %75, %60, %cst_79 {dimension_numbers = #tpu.dot_dimension_numbers<[1], [0], [0], [1], [0, 0, 1, 1], [], []>} : vector<8x16xf32>, vector<16x256xf32>, vector<8x256xf32> -> vector<8x256xf32>
    %c2_80 = arith.constant 2 : index
    %c0_81 = arith.constant 0 : index
    %c0_82 = arith.constant 0 : index
    %77 = vector.load %arg5[%c2_80, %c0_81, %c0_82] : memref<4x256x192xf32, #tpu.memory_space<vmem>>, vector<1x256x192xf32>
    %78 = vector.shape_cast %77 : vector<1x256x192xf32> to vector<256x192xf32>
    %cst_83 = arith.constant dense<0.000000e+00> : vector<8x192xf32>
    %79 = tpu.matmul %76, %78, %cst_83 {dimension_numbers = #tpu.dot_dimension_numbers<[1], [0], [0], [1], [0, 0, 1, 1], [], []>} : vector<8x256xf32>, vector<256x192xf32>, vector<8x192xf32> -> vector<8x192xf32>
    %80 = arith.addf %73, %79 : vector<8x192xf32>
    %c3_84 = arith.constant 3 : index
    %c0_85 = arith.constant 0 : index
    %c0_86 = arith.constant 0 : index
    %81 = vector.load %arg4[%c3_84, %c0_85, %c0_86] : memref<4x8x16xf32, #tpu.memory_space<vmem>>, vector<1x8x16xf32>
    %82 = vector.shape_cast %81 : vector<1x8x16xf32> to vector<8x16xf32>
    %cst_87 = arith.constant dense<0.000000e+00> : vector<8x256xf32>
    %83 = tpu.matmul %82, %60, %cst_87 {dimension_numbers = #tpu.dot_dimension_numbers<[1], [0], [0], [1], [0, 0, 1, 1], [], []>} : vector<8x16xf32>, vector<16x256xf32>, vector<8x256xf32> -> vector<8x256xf32>
    %c3_88 = arith.constant 3 : index
    %c0_89 = arith.constant 0 : index
    %c0_90 = arith.constant 0 : index
    %84 = vector.load %arg5[%c3_88, %c0_89, %c0_90] : memref<4x256x192xf32, #tpu.memory_space<vmem>>, vector<1x256x192xf32>
    %85 = vector.shape_cast %84 : vector<1x256x192xf32> to vector<256x192xf32>
    %cst_91 = arith.constant dense<0.000000e+00> : vector<8x192xf32>
    %86 = tpu.matmul %83, %85, %cst_91 {dimension_numbers = #tpu.dot_dimension_numbers<[1], [0], [0], [1], [0, 0, 1, 1], [], []>} : vector<8x256xf32>, vector<256x192xf32>, vector<8x192xf32> -> vector<8x192xf32>
    %87 = arith.addf %80, %86 : vector<8x192xf32>
    %c0_92 = arith.constant 0 : index
    %c0_93 = arith.constant 0 : index
    %88 = vector.load %arg6[%c0_92, %c0_93] : memref<1x192xf32, #tpu.memory_space<vmem>>, vector<1x192xf32>
    %89 = vector.broadcast %88 : vector<1x192xf32> to vector<8x192xf32>
    %90 = arith.addf %87, %89 : vector<8x192xf32>
    %cst_94 = arith.constant 0.000000e+00 : f32
    %91 = vector.broadcast %cst_94 : f32 to vector<8x192xf32>
    %92 = arith.maximumf %90, %91 : vector<8x192xf32>
    %c0_95 = arith.constant 0 : index
    %c0_96 = arith.constant 0 : index
    %c0_97 = arith.constant 0 : index
    %93 = vector.load %arg7[%c0_95, %c0_96, %c0_97] : memref<3x2x8xf32, #tpu.memory_space<vmem>>, vector<1x2x8xf32>
    %94 = vector.shape_cast %93 : vector<1x2x8xf32> to vector<2x8xf32>
    %cst_98 = arith.constant dense<0.000000e+00> : vector<2x192xf32>
    %95 = tpu.matmul %94, %92, %cst_98 {dimension_numbers = #tpu.dot_dimension_numbers<[1], [0], [0], [1], [0, 0, 1, 1], [], []>} : vector<2x8xf32>, vector<8x192xf32>, vector<2x192xf32> -> vector<2x192xf32>
    %c0_99 = arith.constant 0 : index
    %c0_100 = arith.constant 0 : index
    %c0_101 = arith.constant 0 : index
    %96 = vector.load %arg8[%c0_99, %c0_100, %c0_101] : memref<3x192x64xf32, #tpu.memory_space<vmem>>, vector<1x192x64xf32>
    %97 = vector.shape_cast %96 : vector<1x192x64xf32> to vector<192x64xf32>
    %cst_102 = arith.constant dense<0.000000e+00> : vector<2x64xf32>
    %98 = tpu.matmul %95, %97, %cst_102 {dimension_numbers = #tpu.dot_dimension_numbers<[1], [0], [0], [1], [0, 0, 1, 1], [], []>} : vector<2x192xf32>, vector<192x64xf32>, vector<2x64xf32> -> vector<2x64xf32>
    %c1_103 = arith.constant 1 : index
    %c0_104 = arith.constant 0 : index
    %c0_105 = arith.constant 0 : index
    %99 = vector.load %arg7[%c1_103, %c0_104, %c0_105] : memref<3x2x8xf32, #tpu.memory_space<vmem>>, vector<1x2x8xf32>
    %100 = vector.shape_cast %99 : vector<1x2x8xf32> to vector<2x8xf32>
    %cst_106 = arith.constant dense<0.000000e+00> : vector<2x192xf32>
    %101 = tpu.matmul %100, %92, %cst_106 {dimension_numbers = #tpu.dot_dimension_numbers<[1], [0], [0], [1], [0, 0, 1, 1], [], []>} : vector<2x8xf32>, vector<8x192xf32>, vector<2x192xf32> -> vector<2x192xf32>
    %c1_107 = arith.constant 1 : index
    %c0_108 = arith.constant 0 : index
    %c0_109 = arith.constant 0 : index
    %102 = vector.load %arg8[%c1_107, %c0_108, %c0_109] : memref<3x192x64xf32, #tpu.memory_space<vmem>>, vector<1x192x64xf32>
    %103 = vector.shape_cast %102 : vector<1x192x64xf32> to vector<192x64xf32>
    %cst_110 = arith.constant dense<0.000000e+00> : vector<2x64xf32>
    %104 = tpu.matmul %101, %103, %cst_110 {dimension_numbers = #tpu.dot_dimension_numbers<[1], [0], [0], [1], [0, 0, 1, 1], [], []>} : vector<2x192xf32>, vector<192x64xf32>, vector<2x64xf32> -> vector<2x64xf32>
    %105 = arith.addf %98, %104 : vector<2x64xf32>
    %c2_111 = arith.constant 2 : index
    %c0_112 = arith.constant 0 : index
    %c0_113 = arith.constant 0 : index
    %106 = vector.load %arg7[%c2_111, %c0_112, %c0_113] : memref<3x2x8xf32, #tpu.memory_space<vmem>>, vector<1x2x8xf32>
    %107 = vector.shape_cast %106 : vector<1x2x8xf32> to vector<2x8xf32>
    %cst_114 = arith.constant dense<0.000000e+00> : vector<2x192xf32>
    %108 = tpu.matmul %107, %92, %cst_114 {dimension_numbers = #tpu.dot_dimension_numbers<[1], [0], [0], [1], [0, 0, 1, 1], [], []>} : vector<2x8xf32>, vector<8x192xf32>, vector<2x192xf32> -> vector<2x192xf32>
    %c2_115 = arith.constant 2 : index
    %c0_116 = arith.constant 0 : index
    %c0_117 = arith.constant 0 : index
    %109 = vector.load %arg8[%c2_115, %c0_116, %c0_117] : memref<3x192x64xf32, #tpu.memory_space<vmem>>, vector<1x192x64xf32>
    %110 = vector.shape_cast %109 : vector<1x192x64xf32> to vector<192x64xf32>
    %cst_118 = arith.constant dense<0.000000e+00> : vector<2x64xf32>
    %111 = tpu.matmul %108, %110, %cst_118 {dimension_numbers = #tpu.dot_dimension_numbers<[1], [0], [0], [1], [0, 0, 1, 1], [], []>} : vector<2x192xf32>, vector<192x64xf32>, vector<2x64xf32> -> vector<2x64xf32>
    %112 = arith.addf %105, %111 : vector<2x64xf32>
    %c0_119 = arith.constant 0 : index
    %c0_120 = arith.constant 0 : index
    %113 = vector.load %arg9[%c0_119, %c0_120] : memref<1x64xf32, #tpu.memory_space<vmem>>, vector<1x64xf32>
    %114 = vector.broadcast %113 : vector<1x64xf32> to vector<2x64xf32>
    %115 = arith.addf %112, %114 : vector<2x64xf32>
    %c0_121 = arith.constant 0 : index
    %c0_122 = arith.constant 0 : index
    %116 = vector.load %arg10[%c0_121, %c0_122] : memref<64x256xf32, #tpu.memory_space<vmem>>, vector<64x256xf32>
    %cst_123 = arith.constant dense<0.000000e+00> : vector<2x256xf32>
    %117 = tpu.matmul %115, %116, %cst_123 {dimension_numbers = #tpu.dot_dimension_numbers<[1], [0], [0], [1], [0, 0, 1, 1], [], []>} : vector<2x64xf32>, vector<64x256xf32>, vector<2x256xf32> -> vector<2x256xf32>
    %c0_124 = arith.constant 0 : index
    %c0_125 = arith.constant 0 : index
    %118 = vector.load %arg11[%c0_124, %c0_125] : memref<1x256xf32, #tpu.memory_space<vmem>>, vector<1x256xf32>
    %119 = vector.broadcast %118 : vector<1x256xf32> to vector<2x256xf32>
    %120 = arith.addf %117, %119 : vector<2x256xf32>
    %121 = math.tanh %120 : vector<2x256xf32>
    %c0_126 = arith.constant 0 : index
    %c0_127 = arith.constant 0 : index
    %122 = vector.load %arg12[%c0_126, %c0_127] : memref<256x256xf32, #tpu.memory_space<vmem>>, vector<256x256xf32>
    %cst_128 = arith.constant dense<0.000000e+00> : vector<2x256xf32>
    %123 = tpu.matmul %121, %122, %cst_128 {dimension_numbers = #tpu.dot_dimension_numbers<[1], [0], [0], [1], [0, 0, 1, 1], [], []>} : vector<2x256xf32>, vector<256x256xf32>, vector<2x256xf32> -> vector<2x256xf32>
    %c0_129 = arith.constant 0 : index
    %c0_130 = arith.constant 0 : index
    %124 = vector.load %arg13[%c0_129, %c0_130] : memref<1x256xf32, #tpu.memory_space<vmem>>, vector<1x256xf32>
    %125 = vector.broadcast %124 : vector<1x256xf32> to vector<2x256xf32>
    %126 = arith.addf %123, %125 : vector<2x256xf32>
    %127 = math.tanh %126 : vector<2x256xf32>
    %c0_131 = arith.constant 0 : index
    %c0_132 = arith.constant 0 : index
    %128 = vector.load %arg14[%c0_131, %c0_132] : memref<256x256xf32, #tpu.memory_space<vmem>>, vector<256x256xf32>
    %cst_133 = arith.constant dense<0.000000e+00> : vector<2x256xf32>
    %129 = tpu.matmul %127, %128, %cst_133 {dimension_numbers = #tpu.dot_dimension_numbers<[1], [0], [0], [1], [0, 0, 1, 1], [], []>} : vector<2x256xf32>, vector<256x256xf32>, vector<2x256xf32> -> vector<2x256xf32>
    %c0_134 = arith.constant 0 : index
    %c0_135 = arith.constant 0 : index
    %130 = vector.load %arg15[%c0_134, %c0_135] : memref<1x256xf32, #tpu.memory_space<vmem>>, vector<1x256xf32>
    %131 = vector.broadcast %130 : vector<1x256xf32> to vector<2x256xf32>
    %132 = arith.addf %129, %131 : vector<2x256xf32>
    %133 = math.tanh %132 : vector<2x256xf32>
    %c0_136 = arith.constant 0 : index
    %c0_137 = arith.constant 0 : index
    %134 = vector.load %arg16[%c0_136, %c0_137] : memref<256x6xf32, #tpu.memory_space<vmem>>, vector<256x6xf32>
    %cst_138 = arith.constant dense<0.000000e+00> : vector<2x6xf32>
    %135 = tpu.matmul %133, %134, %cst_138 {dimension_numbers = #tpu.dot_dimension_numbers<[1], [0], [0], [1], [0, 0, 1, 1], [], []>} : vector<2x256xf32>, vector<256x6xf32>, vector<2x6xf32> -> vector<2x6xf32>
    %c0_139 = arith.constant 0 : index
    %c0_140 = arith.constant 0 : index
    %136 = vector.load %arg17[%c0_139, %c0_140] : memref<1x6xf32, #tpu.memory_space<vmem>>, vector<1x6xf32>
    %137 = vector.broadcast %136 : vector<1x6xf32> to vector<2x6xf32>
    %138 = arith.addf %135, %137 : vector<2x6xf32>
    %c0_141 = arith.constant 0 : index
    %c0_142 = arith.constant 0 : index
    %139 = vector.load %arg18[%c0_141, %c0_142] : memref<2x6xf32, #tpu.memory_space<vmem>>, vector<2x6xf32>
    tpu.vector_store %arg18[%c0_141, %c0_142], %138 {strides = array<i32>} : memref<2x6xf32, #tpu.memory_space<vmem>>, vector<2x6xf32>,
    return
  }
}

</mosaic_0001>

<bundles_post_ra>
// kernel: qreps_forward.1
= control target key start
LH: loop header
LB: loop body
LE: loop exit
PB: predicated region body
PF: predicated region fallthrough
CT: control target
= control target key end

     0   :  { %s7386_s0 = inlined_call_operand.vmem [shape: f32[72,144], index: 0, kind: input, shape index: {}]   ;;  %s7387_s1 = inlined_call_operand.vmem [shape: f32[8,16,72], index: 1, kind: input, shape index: {}]   ;;  %s7388_s2 = inlined_call_operand.vmem [shape: f32[8,144,256], index: 2, kind: input, shape index: {}]   ;;  %s7389_s3 = inlined_call_operand.vmem [shape: f32[1,256], index: 3, kind: input, shape index: {}]   ;;  %s7390_s4 = inlined_call_operand.vmem [shape: f32[4,8,16], index: 4, kind: input, shape index: {}]   ;;  %s7391_s5 = inlined_call_operand.vmem [shape: f32[4,256,192], index: 5, kind: input, shape index: {}]   ;;  %s7392_s6 = inlined_call_operand.vmem [shape: f32[1,192], index: 6, kind: input, shape index: {}]   ;;  %s7393_s7 = inlined_call_operand.vmem [shape: f32[3,2,8], index: 7, kind: input, shape index: {}]   ;;  %s7394_s8 = inlined_call_operand.vmem [shape: f32[3,192,64], index: 8, kind: input, shape index: {}]   ;;  %s7395_s9 = inlined_call_operand.vmem [shape: f32[1,64], index: 9, kind: input, shape index: {}]   ;;  %s7396_s10 = inlined_call_operand.vmem [shape: f32[64,256], index: 10, kind: input, shape index: {}]   ;;  %s7397_s11 = inlined_call_operand.vmem [shape: f32[1,256], index: 11, kind: input, shape index: {}]   ;;  %s7398_s12 = inlined_call_operand.vmem [shape: f32[256,256], index: 12, kind: input, shape index: {}]   ;;  %s7399_s13 = inlined_call_operand.vmem [shape: f32[1,256], index: 13, kind: input, shape index: {}]   ;;  %s7400_s14 = inlined_call_operand.vmem [shape: f32[256,256], index: 14, kind: input, shape index: {}]   ;;  %s7401_s15 = inlined_call_operand.vmem [shape: f32[1,256], index: 15, kind: input, shape index: {}]   ;;  %s7402_s16 = inlined_call_operand.vmem [shape: f32[256,6], index: 16, kind: input, shape index: {}]   ;;  %s7403_s17 = inlined_call_operand.vmem [shape: f32[1,6], index: 17, kind: input, shape index: {}]   ;;  %s7404_s18 = inlined_call_operand.hbm [shape: f32[2,6], index: 18, kind: output, shape index: {}]  }
   0x1   :  { %7408 = sst [smem:[#allocation5_spill]] %s7386_s0 }
   0x2   :  { %7409 = sst [smem:[#allocation6_spill]] %s7387_s1 }
   0x3   :  { %7410 = sst [smem:[#allocation7_spill]] %s7388_s2 }
   0x4   :  { %s7411_s29 = sld [smem:[#allocation5_spill]]  ;;  %vm80_vm0 = vcmask 588800   ;;  %v4339_v20 = vmov 0.0  }
   0x5   :  { %s7412_s23 = sld [smem:[#allocation6_spill]]  ;;  %151 = vmatprep.mubr.f32.mxu0 %v4339_v20  ;;  %273 = vmatprep.mubr.f32.mxu1 %v4339_v20 }
   0x6   :  { %s7413_s28 = sld [smem:[#allocation7_spill]] }
   0xa   :  { %v4439_v0 = vld [vmem:[%s7411_s29 + $0x88] sm:$0xff]  ;;  %v4444_v1 = vld [vmem:[%s7411_s29 + $0x80] sm:$0xff]  ;;  %v4449_v2 = vld [vmem:[%s7411_s29 + $0x78] sm:$0xff] }
   0xb   :  { %101 = vmatprep.subr.mxu0 %v4439_v0  ;;  %223 = vmatprep.subr.mxu1 %v4439_v0  ;;  %v4456_v3 = vld [vmem:[%s7411_s29 + $0x70] sm:$0xff]  ;;  %v4463_v4 = vld [vmem:[%s7411_s29 + $0x68] sm:$0xff]  ;;  %v4470_v5 = vld [vmem:[%s7411_s29 + $0x60] sm:$0xff] }
   0xc   :  { %102 = vmatpush1.msra.mxu0 %v4444_v1  ;;  %224 = vmatpush1.msra.mxu1 %v4444_v1  ;;  %v4477_v6 = vld [vmem:[%s7411_s29 + $0x58] sm:$0xff]  ;;  %v4484_v7 = vld [vmem:[%s7411_s29 + $0x50] sm:$0xff]  ;;  %v4491_v8 = vld [vmem:[%s7411_s29 + $0x48] sm:$0xff] }
   0xd   :  { %103 = vmatprep.subr.mxu0 %v4449_v2  ;;  %225 = vmatprep.subr.mxu1 %v4449_v2  ;;  %v4498_v9 = vld [vmem:[%s7411_s29 + $0x40] sm:$0xff]  ;;  %v4505_v10 = vld [vmem:[%s7411_s29 + $0x38] sm:$0xff]  ;;  %v4512_v11 = vld [vmem:[%s7411_s29 + $0x30] sm:$0xff] }
   0xe   :  { %104 = vmatpush1.msra.mxu0 %v4456_v3  ;;  %226 = vmatpush1.msra.mxu1 %v4456_v3  ;;  %v4519_v12 = vld [vmem:[%s7411_s29 + $0x28] sm:$0xff]  ;;  %v4526_v13 = vld [vmem:[%s7411_s29 + $0x20] sm:$0xff]  ;;  %v4533_v14 = vld [vmem:[%s7411_s29 + $0x18] sm:$0xff] }
   0xf   :  { %105 = vmatprep.subr.mxu0 %v4463_v4  ;;  %227 = vmatprep.subr.mxu1 %v4463_v4  ;;  %v4540_v15 = vld [vmem:[%s7411_s29 + $0x10] sm:$0xff]  ;;  %v4547_v16 = vld [vmem:[%s7411_s29 + $0x8] sm:$0xff]  ;;  %v4554_v17 = vld [vmem:[%s7411_s29] sm:$0xff] }
  0x10   :  { %106 = vmatpush1.msra.mxu0 %v4470_v5  ;;  %228 = vmatpush1.msra.mxu1 %v4470_v5  ;;  %v78_v18 = vld [vmem:[%s7412_s23] sm:$0xff]  ;;  %v3696_v19 = vld [vmem:[%s7412_s23 + $0x10] sm:$0xff]  ;;  %v3731_v21 = vld [vmem:[%s7413_s28 + $0x218] sm:$0xff] }
  0x11   :  { %107 = vmatprep.subr.mxu0 %v4477_v6  ;;  %229 = vmatprep.subr.mxu1 %v4477_v6  ;;  %v195_v22 = vld [vmem:[%s7413_s28 + $0xf8] sm:$0xff]  ;;  %v3730_v23 = vld [vmem:[%s7413_s28 + $0x210] sm:$0xff]  ;;  %v79_v25 = vld [vmem:[%s7412_s23 + $0x8] sm:$0xff] }
  0x12   :  { %108 = vmatpush1.msra.mxu0 %v4484_v7  ;;  %230 = vmatpush1.msra.mxu1 %v4484_v7  ;;  %v194_v24 = vld [vmem:[%s7413_s28 + $0xf0] sm:$0xff]  ;;  %v3697_v26 = vld [vmem:[%s7412_s23 + $0x18] sm:$0xff]  ;;  %v3729_v27 = vld [vmem:[%s7413_s28 + $0x208] sm:$0xff] }
  0x13   :  { %109 = vmatprep.subr.mxu0 %v4491_v8  ;;  %231 = vmatprep.subr.mxu1 %v4491_v8  ;;  %v193_v28 = vld [vmem:[%s7413_s28 + $0xe8] sm:$0xff]  ;;  %v3728_v29 = vld [vmem:[%s7413_s28 + $0x200] sm:$0xff]  ;;  %v3727_v31 = vld [vmem:[%s7413_s28 + $0x1f8] sm:$0xff] }
  0x14   :  { %110 = vmatpush1.msra.mxu0 %v4498_v9  ;;  %232 = vmatpush1.msra.mxu1 %v4498_v9  ;;  %v192_v30 = vld [vmem:[%s7413_s28 + $0xe0] sm:$0xff]  ;;  %v191_v32 = vld [vmem:[%s7413_s28 + $0xd8] sm:$0xff]  ;;  %v3726_v33 = vld [vmem:[%s7413_s28 + $0x1f0] sm:$0xff] }
  0x15   :  { %111 = vmatprep.subr.mxu0 %v4505_v10  ;;  %233 = vmatprep.subr.mxu1 %v4505_v10  ;;  %v190_v34 = vld [vmem:[%s7413_s28 + $0xd0] sm:$0xff]  ;;  %v3725_v35 = vld [vmem:[%s7413_s28 + $0x1e8] sm:$0xff]  ;;  %v3724_v37 = vld [vmem:[%s7413_s28 + $0x1e0] sm:$0xff] }
  0x16   :  { %112 = vmatpush1.msra.mxu0 %v4512_v11  ;;  %234 = vmatpush1.msra.mxu1 %v4512_v11  ;;  %v189_v36 = vld [vmem:[%s7413_s28 + $0xc8] sm:$0xff]  ;;  %v188_v38 = vld [vmem:[%s7413_s28 + $0xc0] sm:$0xff]  ;;  %v3723_v39 = vld [vmem:[%s7413_s28 + $0x1d8] sm:$0xff] }
  0x17   :  { %113 = vmatprep.subr.mxu0 %v4519_v12  ;;  %235 = vmatprep.subr.mxu1 %v4519_v12  ;;  %v187_v40 = vld [vmem:[%s7413_s28 + $0xb8] sm:$0xff]  ;;  %v3722_v41 = vld [vmem:[%s7413_s28 + $0x1d0] sm:$0xff] }
  0x18   :  { %114 = vmatpush1.msra.mxu0 %v4526_v13  ;;  %236 = vmatpush1.msra.mxu1 %v4526_v13  ;;  %v186_v42 = vld [vmem:[%s7413_s28 + $0xb0] sm:$0xff] }
  0x19   :  { %115 = vmatprep.subr.mxu0 %v4533_v14  ;;  %237 = vmatprep.subr.mxu1 %v4533_v14 }
  0x1a   :  { %116 = vmatpush1.msra.mxu0 %v4540_v15  ;;  %238 = vmatpush1.msra.mxu1 %v4540_v15 }
  0x1b   :  { %117 = vmatprep.subr.mxu0 %v4547_v16  ;;  %239 = vmatprep.subr.mxu1 %v4547_v16 }
  0x1c   :  { %118 = vmatpush1.msra.mxu0 %v4554_v17  ;;  %240 = vmatpush1.msra.mxu1 %v4554_v17 }
  0x1d   :  { %3694 = vmatmul.mubr.msk.f32.vlgmr.msra.gmra.mxu0 %vm80_vm0, %v78_v18  ;;  %3698 = vmatmul.mubr.msk.f32.vlgmr.msra.gmra.mxu1 %vm80_vm0, %v3696_v19 }
  0x1e   :  { %157 = vmatprep.mubr.f32.mxu0 %v4339_v20  ;;  %279 = vmatprep.mubr.f32.mxu1 %v4339_v20 }
  0x1f   :  { %330 = vmatprep.subr.mxu0 %v3731_v21  ;;  %413 = vmatprep.subr.mxu1 %v195_v22 }
  0x20   :  { %331 = vmatpush1.msra.mxu0 %v3730_v23  ;;  %414 = vmatpush1.msra.mxu1 %v194_v24 }
  0x21   :  { %3695 = vmatmul.mubr.msk.f32.gmra.mxu0 %vm80_vm0, %v79_v25  ;;  %3699 = vmatmul.mubr.msk.f32.gmra.mxu1 %vm80_vm0, %v3697_v26 }
  0x22   :  { %332 = vmatprep.subr.mxu0 %v3729_v27  ;;  %415 = vmatprep.subr.mxu1 %v193_v28 }
  0x23   :  { %333 = vmatpush1.msra.mxu0 %v3728_v29  ;;  %416 = vmatpush1.msra.mxu1 %v192_v30 }
  0x24   :  { %334 = vmatprep.subr.mxu0 %v3727_v31  ;;  %417 = vmatprep.subr.mxu1 %v191_v32 }
  0x25   :  { %335 = vmatpush1.msra.mxu0 %v3726_v33  ;;  %418 = vmatpush1.msra.mxu1 %v190_v34 }
  0x26   :  { %336 = vmatprep.subr.mxu0 %v3725_v35  ;;  %419 = vmatprep.subr.mxu1 %v189_v36 }
  0x27   :  { %23 = vsyncpa [#allocation3], 0  ;;  %337 = vmatpush1.msra.mxu0 %v3724_v37  ;;  %420 = vmatpush1.msra.mxu1 %v188_v38  ;;  %v3721_v43 = vld [vmem:[%s7413_s28 + $0x1c8] sm:$0xff]  ;;  %v3720_v45 = vld [vmem:[%s7413_s28 + $0x1c0] sm:$0xff]  ;;  %vm323_vm1 = vcmask 130048   ;;  %vm2637_vm2 = vcmask 64512  }
  0x28   :  { %v185_v44 = vld [vmem:[%s7413_s28 + $0xa8] sm:$0xff]  ;;  %338 = vmatprep.subr.mxu0 %v3723_v39  ;;  %421 = vmatprep.subr.mxu1 %v187_v40  ;;  %v184_v46 = vld [vmem:[%s7413_s28 + $0xa0] sm:$0xff]  ;;  %v3719_v47 = vld [vmem:[%s7413_s28 + $0x1b8] sm:$0xff]  ;;  %vm2837_vm3 = vcmask 523264   ;;  %vm3678_vm4 = vcmask 41984  }
  0x29   :  { %339 = vmatpush1.msra.mxu0 %v3722_v41  ;;  %422 = vmatpush1.msra.mxu1 %v186_v42  ;;  %v183_v48 = vld [vmem:[%s7413_s28 + $0x98] sm:$0xff]  ;;  %v3718_v49 = vld [vmem:[%s7413_s28 + $0x1b0] sm:$0xff]  ;;  %v3717_v51 = vld [vmem:[%s7413_s28 + $0x1a8] sm:$0xff] }
  0x2a   :  { %340 = vmatprep.subr.mxu0 %v3721_v43  ;;  %423 = vmatprep.subr.mxu1 %v185_v44  ;;  %v182_v50 = vld [vmem:[%s7413_s28 + $0x90] sm:$0xff]  ;;  %v181_v52 = vld [vmem:[%s7413_s28 + $0x88] sm:$0xff]  ;;  %v3716_v53 = vld [vmem:[%s7413_s28 + $0x1a0] sm:$0xff] }
  0x2b   :  { %341 = vmatpush1.msra.mxu0 %v3720_v45  ;;  %424 = vmatpush1.msra.mxu1 %v184_v46  ;;  %v180_v54 = vld [vmem:[%s7413_s28 + $0x80] sm:$0xff]  ;;  %v3715_v55 = vld [vmem:[%s7413_s28 + $0x198] sm:$0xff]  ;;  %v3714_v57 = vld [vmem:[%s7413_s28 + $0x190] sm:$0xff] }
  0x2c   :  { %342 = vmatprep.subr.mxu0 %v3719_v47  ;;  %425 = vmatprep.subr.mxu1 %v183_v48  ;;  %v179_v56 = vld [vmem:[%s7413_s28 + $0x78] sm:$0xff]  ;;  %v178_v58 = vld [vmem:[%s7413_s28 + $0x70] sm:$0xff]  ;;  %v3713_v59 = vld [vmem:[%s7413_s28 + $0x188] sm:$0xff] }
  0x2d   :  { %343 = vmatpush1.msra.mxu0 %v3718_v49  ;;  %426 = vmatpush1.msra.mxu1 %v182_v50  ;;  %v177_v60 = vld [vmem:[%s7413_s28 + $0x68] sm:$0xff]  ;;  %v3712_v61 = vld [vmem:[%s7413_s28 + $0x180] sm:$0xff]  ;;  %v3711_v63 = vld [vmem:[%s7413_s28 + $0x178] sm:$0xff] }
  0x2e   :  { %344 = vmatprep.subr.mxu0 %v3717_v51  ;;  %427 = vmatprep.subr.mxu1 %v181_v52  ;;  %v176_v62 = vld [vmem:[%s7413_s28 + $0x60] sm:$0xff]  ;;  %v175_v18 = vld [vmem:[%s7413_s28 + $0x58] sm:$0xff]  ;;  %v3710_v19 = vld [vmem:[%s7413_s28 + $0x170] sm:$0xff] }
  0x2f   :  { %345 = vmatpush1.msra.mxu0 %v3716_v53  ;;  %428 = vmatpush1.msra.mxu1 %v180_v54  ;;  %v174_v21 = vld [vmem:[%s7413_s28 + $0x50] sm:$0xff]  ;;  %v3709_v22 = vld [vmem:[%s7413_s28 + $0x168] sm:$0xff]  ;;  %v3708_v24 = vld [vmem:[%s7413_s28 + $0x160] sm:$0xff] }
  0x30   :  { %346 = vmatprep.subr.mxu0 %v3715_v55  ;;  %429 = vmatprep.subr.mxu1 %v179_v56  ;;  %v173_v23 = vld [vmem:[%s7413_s28 + $0x48] sm:$0xff]  ;;  %v172_v25 = vld [vmem:[%s7413_s28 + $0x40] sm:$0xff]  ;;  %v3707_v26 = vld [vmem:[%s7413_s28 + $0x158] sm:$0xff] }
  0x31   :  { %347 = vmatpush1.msra.mxu0 %v3714_v57  ;;  %430 = vmatpush1.msra.mxu1 %v178_v58  ;;  %v171_v27 = vld [vmem:[%s7413_s28 + $0x38] sm:$0xff]  ;;  %v3706_v28 = vld [vmem:[%s7413_s28 + $0x150] sm:$0xff]  ;;  %v3705_v30 = vld [vmem:[%s7413_s28 + $0x148] sm:$0xff] }
  0x32   :  { %348 = vmatprep.subr.mxu0 %v3713_v59  ;;  %431 = vmatprep.subr.mxu1 %v177_v60  ;;  %v170_v29 = vld [vmem:[%s7413_s28 + $0x30] sm:$0xff]  ;;  %v169_v31 = vld [vmem:[%s7413_s28 + $0x28] sm:$0xff]  ;;  %v3704_v32 = vld [vmem:[%s7413_s28 + $0x140] sm:$0xff] }
  0x33   :  { %349 = vmatpush1.msra.mxu0 %v3712_v61  ;;  %432 = vmatpush1.msra.mxu1 %v176_v62  ;;  %v168_v33 = vld [vmem:[%s7413_s28 + $0x20] sm:$0xff]  ;;  %v3703_v34 = vld [vmem:[%s7413_s28 + $0x138] sm:$0xff]  ;;  %v3702_v36 = vld [vmem:[%s7413_s28 + $0x130] sm:$0xff] }
  0x34   :  { %350 = vmatprep.subr.mxu0 %v3711_v63  ;;  %433 = vmatprep.subr.mxu1 %v175_v18  ;;  %v167_v35 = vld [vmem:[%s7413_s28 + $0x18] sm:$0xff]  ;;  %v166_v37 = vld [vmem:[%s7413_s28 + $0x10] sm:$0xff]  ;;  %v3701_v38 = vld [vmem:[%s7413_s28 + $0x128] sm:$0xff] }
  0x35   :  { %351 = vmatpush1.msra.mxu0 %v3710_v19  ;;  %434 = vmatpush1.msra.mxu1 %v174_v21  ;;  %v165_v39 = vld [vmem:[%s7413_s28 + $0x8] sm:$0xff]  ;;  %v3700_v40 = vld [vmem:[%s7413_s28 + $0x120] sm:$0xff]  ;;  %v3735_v42 = vld [vmem:[%s7413_s28 + $0x238] sm:$0xff] }
  0x36   :  { %352 = vmatprep.subr.mxu0 %v3709_v22  ;;  %435 = vmatprep.subr.mxu1 %v173_v23  ;;  %v164_v41 = vld [vmem:[%s7413_s28] sm:$0xff]  ;;  %v3734_v43 = vld [vmem:[%s7413_s28 + $0x230] sm:$0xff]  ;;  %v199_v44 = vld [vmem:[%s7413_s28 + $0x118] sm:$0xff] }
  0x37   :  { %353 = vmatpush1.msra.mxu0 %v3708_v24  ;;  %436 = vmatpush1.msra.mxu1 %v172_v25  ;;  %v3733_v45 = vld [vmem:[%s7413_s28 + $0x228] sm:$0xff]  ;;  %v198_v46 = vld [vmem:[%s7413_s28 + $0x110] sm:$0xff]  ;;  %v3732_v47 = vld [vmem:[%s7413_s28 + $0x220] sm:$0xff] }
  0x38   :  { %354 = vmatprep.subr.mxu0 %v3707_v26  ;;  %437 = vmatprep.subr.mxu1 %v171_v27  ;;  %v197_v48 = vld [vmem:[%s7413_s28 + $0x108] sm:$0xff]  ;;  %v196_v49 = vld [vmem:[%s7413_s28 + $0x100] sm:$0xff]  ;;  %v3775_v50 = vld [vmem:[%s7413_s28 + $0x338] sm:$0xff] }
  0x39   :  { %355 = vmatpush1.msra.mxu0 %v3706_v28  ;;  %438 = vmatpush1.msra.mxu1 %v170_v29  ;;  %v3774_v55 = vld [vmem:[%s7413_s28 + $0x330] sm:$0xff]  ;;  %v3773_v56 = vld [vmem:[%s7413_s28 + $0x328] sm:$0xff]  ;;  %v3772_v61 = vld [vmem:[%s7413_s28 + $0x320] sm:$0xff] }
  0x3a   :  { %356 = vmatprep.subr.mxu0 %v3705_v30  ;;  %439 = vmatprep.subr.mxu1 %v169_v31  ;;  %v3771_v62 = vld [vmem:[%s7413_s28 + $0x318] sm:$0xff]  ;;  %v3770_v63 = vld [vmem:[%s7413_s28 + $0x310] sm:$0xff]  ;;  %v3769_v18 = vld [vmem:[%s7413_s28 + $0x308] sm:$0xff] }
  0x3b   :  { %357 = vmatpush1.msra.mxu0 %v3704_v32  ;;  %440 = vmatpush1.msra.mxu1 %v168_v33  ;;  %v3768_v19 = vld [vmem:[%s7413_s28 + $0x300] sm:$0xff]  ;;  %v3767_v21 = vld [vmem:[%s7413_s28 + $0x2f8] sm:$0xff]  ;;  %v3766_v22 = vld [vmem:[%s7413_s28 + $0x2f0] sm:$0xff] }
  0x3c   :  { %358 = vmatprep.subr.mxu0 %v3703_v34  ;;  %441 = vmatprep.subr.mxu1 %v167_v35  ;;  %v3765_v23 = vld [vmem:[%s7413_s28 + $0x2e8] sm:$0xff]  ;;  %v3764_v24 = vld [vmem:[%s7413_s28 + $0x2e0] sm:$0xff]  ;;  %v3763_v25 = vld [vmem:[%s7413_s28 + $0x2d8] sm:$0xff] }
  0x3d   :  { %359 = vmatpush1.msra.mxu0 %v3702_v36  ;;  %442 = vmatpush1.msra.mxu1 %v166_v37  ;;  %v3740_v26 = vld [vmem:[%s7412_s23 + $0x20] sm:$0xff]  ;;  %v3762_v27 = vld [vmem:[%s7413_s28 + $0x2d0] sm:$0xff]  ;;  %v3761_v28 = vld [vmem:[%s7413_s28 + $0x2c8] sm:$0xff] }
  0x3e   :  { %360 = vmatprep.subr.mxu0 %v3701_v38  ;;  %443 = vmatprep.subr.mxu1 %v165_v39  ;;  %v3741_v29 = vld [vmem:[%s7412_s23 + $0x28] sm:$0xff]  ;;  %v3760_v30 = vld [vmem:[%s7413_s28 + $0x2c0] sm:$0xff]  ;;  %v3782_v31 = vld [vmem:[%s7412_s23 + $0x30] sm:$0xff] }
  0x3f   :  { %361 = vmatpush1.msra.mxu0 %v3700_v40  ;;  %444 = vmatpush1.msra.mxu1 %v164_v41  ;;  %v3783_v32 = vld [vmem:[%s7412_s23 + $0x38] sm:$0xff]  ;;  %v3758_v34 = vld [vmem:[%s7413_s28 + $0x2b0] sm:$0xff]  ;;  %v3757_v35 = vld [vmem:[%s7413_s28 + $0x2a8] sm:$0xff] }
  0x40   :  { %390 = vmatprep.subr.mxu0 %v3735_v42  ;;  %473 = vmatprep.subr.mxu1 %v199_v44  ;;  %v3759_v33 = vld [vmem:[%s7413_s28 + $0x2b8] sm:$0xff]  ;;  %v3756_v37 = vld [vmem:[%s7413_s28 + $0x2a0] sm:$0xff]  ;;  %v3816_v38 = vld [vmem:[%s7413_s28 + $0x450] sm:$0xff] }
  0x41   :  { %391 = vmatpush2.msra.mxu0 %v3734_v43  ;;  %474 = vmatpush2.msra.mxu1 %v198_v46  ;;  %v3817_v36 = vld [vmem:[%s7413_s28 + $0x458] sm:$0xff]  ;;  %v3815_v40 = vld [vmem:[%s7413_s28 + $0x448] sm:$0xff]  ;;  %v3754_v41 = vld [vmem:[%s7413_s28 + $0x290] sm:$0xff] }
  0x42   :  { %392 = vmatprep.subr.mxu0 %v3733_v45  ;;  %475 = vmatprep.subr.mxu1 %v197_v48  ;;  %v3755_v39 = vld [vmem:[%s7413_s28 + $0x298] sm:$0xff]  ;;  %v3814_v42 = vld [vmem:[%s7413_s28 + $0x440] sm:$0xff]  ;;  %v3753_v43 = vld [vmem:[%s7413_s28 + $0x288] sm:$0xff] }
  0x43   :  { %393 = vmatpush2.msra.mxu0 %v3732_v47  ;;  %476 = vmatpush2.msra.mxu1 %v196_v49  ;;  %v3813_v44 = vld [vmem:[%s7413_s28 + $0x438] sm:$0xff]  ;;  %v3752_v45 = vld [vmem:[%s7413_s28 + $0x280] sm:$0xff]  ;;  %v3812_v46 = vld [vmem:[%s7413_s28 + $0x430] sm:$0xff] }
  0x44   :  { %513 = vmatprep.subr.mxu0 %v4439_v0  ;;  %619 = vmatprep.subr.mxu1 %v3775_v50  ;;  %v3751_v47 = vld [vmem:[%s7413_s28 + $0x278] sm:$0xff]  ;;  %v3811_v48 = vld [vmem:[%s7413_s28 + $0x428] sm:$0xff]  ;;  %v3750_v49 = vld [vmem:[%s7413_s28 + $0x270] sm:$0xff] }
  0x45   :  { %v3810_v50 = vld [vmem:[%s7413_s28 + $0x420] sm:$0xff] }
  0xdd   :  { %v153_v51 = vpop.f32.mrf.mxu0  ;;  %v275_v52 = vpop.f32.mrf.mxu1 }
  0xdf   :  { %v155_v53 = vpop.f32.mrf.mxu0  ;;  %v277_v54 = vpop.f32.mrf.mxu1 }
  0xe0   :  { %3736 = vmatprep.mubr.msk.f32.mxu0 %vm323_vm1, %v277_v54  ;;  %3738 = vmatprep.mubr.msk.f32.mxu1 %vm323_vm1, %v155_v53  ;;  %v3748_v53 = vld [vmem:[%s7413_s28 + $0x260] sm:$0xff]  ;;  %v3808_v54 = vld [vmem:[%s7413_s28 + $0x410] sm:$0xff] }
  0xe1   :  { %395 = vmatmul.mubr.f32.vlgmr.msra.gmra.mxu0 %v275_v52  ;;  %478 = vmatmul.mubr.f32.vlgmr.msra.gmra.mxu1 %v153_v51  ;;  %v159_v57 = vpop.f32.mrf.mxu0  ;;  %v281_v58 = vpop.f32.mrf.mxu1  ;;  %v3749_v51 = vld [vmem:[%s7413_s28 + $0x268] sm:$0xff]  ;;  %v3809_v52 = vld [vmem:[%s7413_s28 + $0x418] sm:$0xff] }
  0xe2   :  { %514 = vmatpush1.msra.mxu0 %v4444_v1  ;;  %620 = vmatpush1.msra.mxu1 %v3774_v55  ;;  %v3747_v55 = vld [vmem:[%s7413_s28 + $0x258] sm:$0xff] }
  0xe3   :  { %515 = vmatprep.subr.mxu0 %v4449_v2  ;;  %v161_v59 = vpop.f32.mrf.mxu0  ;;  %v283_v60 = vpop.f32.mrf.mxu1  ;;  %621 = vmatprep.subr.mxu1 %v3773_v56  ;;  %v3807_v56 = vld [vmem:[%s7413_s28 + $0x408] sm:$0xff] }
  0xe4   :  { %516 = vmatpush1.msra.mxu0 %v4456_v3  ;;  %3737 = vmatprep.mubr.msk.f32.mxu0 %vm323_vm1, %v283_v60  ;;  %v3805_v60 = vld [vmem:[%s7413_s28 + $0x3f8] sm:$0xff] }
  0xe5   :  { %517 = vmatprep.subr.mxu0 %v4463_v4  ;;  %3739 = vmatprep.mubr.msk.f32.mxu1 %vm323_vm1, %v161_v59  ;;  %v3745_v59 = vld [vmem:[%s7413_s28 + $0x248] sm:$0xff] }
  0xe6   :  { %518 = vmatpush1.msra.mxu0 %v4470_v5  ;;  %484 = vmatmul.mubr.f32.gmra.mxu1 %v159_v57  ;;  %v3746_v57 = vld [vmem:[%s7413_s28 + $0x250] sm:$0xff] }
  0xe7   :  { %519 = vmatprep.subr.mxu0 %v4477_v6  ;;  %401 = vmatmul.mubr.f32.gmra.mxu0 %v281_v58  ;;  %v3806_v58 = vld [vmem:[%s7413_s28 + $0x400] sm:$0xff] }
  0xe8   :  { %520 = vmatpush1.msra.mxu0 %v4484_v7  ;;  %563 = vmatprep.mubr.f32.mxu0 %v4339_v20 }
  0xe9   :  { %521 = vmatprep.subr.mxu0 %v4491_v8  ;;  %622 = vmatpush1.msra.mxu1 %v3772_v61  ;;  %v3744_v61 = vld [vmem:[%s7413_s28 + $0x240] sm:$0xff] }
  0xea   :  { %522 = vmatpush1.msra.mxu0 %v4498_v9  ;;  %623 = vmatprep.subr.mxu1 %v3771_v62  ;;  %v3804_v62 = vld [vmem:[%s7413_s28 + $0x3f0] sm:$0xff] }
  0xeb   :  { %523 = vmatprep.subr.mxu0 %v4505_v10  ;;  %624 = vmatpush1.msra.mxu1 %v3770_v63  ;;  %v3779_v63 = vld [vmem:[%s7413_s28 + $0x358] sm:$0xff] }
  0xec   :  { %524 = vmatpush1.msra.mxu0 %v4512_v11  ;;  %625 = vmatprep.subr.mxu1 %v3769_v18  ;;  %v3803_v18 = vld [vmem:[%s7413_s28 + $0x3e8] sm:$0xff] }
  0xed   :  { %525 = vmatprep.subr.mxu0 %v4519_v12  ;;  %626 = vmatpush1.msra.mxu1 %v3768_v19  ;;  %v3778_v19 = vld [vmem:[%s7413_s28 + $0x350] sm:$0xff] }
  0xee   :  { %526 = vmatpush1.msra.mxu0 %v4526_v13  ;;  %627 = vmatprep.subr.mxu1 %v3767_v21  ;;  %v3802_v21 = vld [vmem:[%s7413_s28 + $0x3e0] sm:$0xff] }
  0xef   :  { %527 = vmatprep.subr.mxu0 %v4533_v14  ;;  %628 = vmatpush1.msra.mxu1 %v3766_v22  ;;  %v3777_v22 = vld [vmem:[%s7413_s28 + $0x348] sm:$0xff] }
  0xf0   :  { %528 = vmatpush1.msra.mxu0 %v4540_v15  ;;  %629 = vmatprep.subr.mxu1 %v3765_v23  ;;  %v3801_v23 = vld [vmem:[%s7413_s28 + $0x3d8] sm:$0xff] }
  0xf1   :  { %529 = vmatprep.subr.mxu0 %v4547_v16  ;;  %630 = vmatpush1.msra.mxu1 %v3764_v24  ;;  %v3776_v24 = vld [vmem:[%s7413_s28 + $0x340] sm:$0xff] }
  0xf2   :  { %530 = vmatpush1.msra.mxu0 %v4554_v17  ;;  %631 = vmatprep.subr.mxu1 %v3763_v25  ;;  %v3800_v25 = vld [vmem:[%s7413_s28 + $0x3d0] sm:$0xff] }
  0xf3   :  { %3742 = vmatmul.mubr.msk.f32.vlgmr.msra.gmra.mxu0 %vm80_vm0, %v3740_v26  ;;  %723 = vmatprep.subr.mxu0 %v4439_v0  ;;  %v3799_v26 = vld [vmem:[%s7413_s28 + $0x3c8] sm:$0xff] }
  0xf4   :  { %724 = vmatpush1.msra.mxu0 %v4444_v1  ;;  %569 = vmatprep.mubr.f32.mxu0 %v4339_v20 }
  0xf5   :  { %725 = vmatprep.subr.mxu0 %v4449_v2  ;;  %632 = vmatpush1.msra.mxu1 %v3762_v27  ;;  %v3798_v27 = vld [vmem:[%s7413_s28 + $0x3c0] sm:$0xff] }
  0xf6   :  { %726 = vmatpush1.msra.mxu0 %v4456_v3  ;;  %633 = vmatprep.subr.mxu1 %v3761_v28  ;;  %v3797_v28 = vld [vmem:[%s7413_s28 + $0x3b8] sm:$0xff] }
  0xf7   :  { %3743 = vmatmul.mubr.msk.f32.gmra.mxu0 %vm80_vm0, %v3741_v29  ;;  %727 = vmatprep.subr.mxu0 %v4463_v4  ;;  %v3796_v29 = vld [vmem:[%s7413_s28 + $0x3b0] sm:$0xff] }
  0xf8   :  { %728 = vmatpush1.msra.mxu0 %v4470_v5  ;;  %773 = vmatprep.mubr.f32.mxu0 %v4339_v20 }
  0xf9   :  { %729 = vmatprep.subr.mxu0 %v4477_v6  ;;  %634 = vmatpush1.msra.mxu1 %v3760_v30  ;;  %v3795_v30 = vld [vmem:[%s7413_s28 + $0x3a8] sm:$0xff] }
  0xfa   :  { %730 = vmatpush1.msra.mxu0 %v4484_v7  ;;  %635 = vmatprep.subr.mxu1 %v3759_v33  ;;  %v3792_v33 = vld [vmem:[%s7413_s28 + $0x390] sm:$0xff] }
  0xfb   :  { %731 = vmatprep.subr.mxu0 %v4491_v8  ;;  %636 = vmatpush1.msra.mxu1 %v3758_v34  ;;  %v3791_v34 = vld [vmem:[%s7413_s28 + $0x388] sm:$0xff] }
  0xfc   :  { %732 = vmatpush1.msra.mxu0 %v4498_v9  ;;  %637 = vmatprep.subr.mxu1 %v3757_v35  ;;  %v3790_v35 = vld [vmem:[%s7413_s28 + $0x380] sm:$0xff] }
  0xfd   :  { %733 = vmatprep.subr.mxu0 %v4505_v10  ;;  %638 = vmatpush1.msra.mxu1 %v3756_v37  ;;  %v3788_v37 = vld [vmem:[%s7413_s28 + $0x370] sm:$0xff] }
  0xfe   :  { %734 = vmatpush1.msra.mxu0 %v4512_v11  ;;  %639 = vmatprep.subr.mxu1 %v3755_v39  ;;  %v3786_v39 = vld [vmem:[%s7413_s28 + $0x360] sm:$0xff] }
  0xff   :  { %735 = vmatprep.subr.mxu0 %v4519_v12  ;;  %640 = vmatpush1.msra.mxu1 %v3754_v41  ;;  %v3820_v41 = vld [vmem:[%s7413_s28 + $0x470] sm:$0xff] }
 0x100   :  { %736 = vmatpush1.msra.mxu0 %v4526_v13  ;;  %641 = vmatprep.subr.mxu1 %v3753_v43  ;;  %v3818_v43 = vld [vmem:[%s7413_s28 + $0x460] sm:$0xff] }
 0x101   :  { %737 = vmatprep.subr.mxu0 %v4533_v14  ;;  %642 = vmatpush1.msra.mxu1 %v3752_v45 }
 0x102   :  { %738 = vmatpush1.msra.mxu0 %v4540_v15  ;;  %643 = vmatprep.subr.mxu1 %v3751_v47 }
 0x103   :  { %739 = vmatprep.subr.mxu0 %v4547_v16  ;;  %644 = vmatpush1.msra.mxu1 %v3750_v49 }
 0x104   :  { %740 = vmatpush1.msra.mxu0 %v4554_v17  ;;  %645 = vmatprep.subr.mxu1 %v3749_v51 }
 0x105   :  { %3784 = vmatmul.mubr.msk.f32.vlgmr.msra.gmra.mxu0 %vm80_vm0, %v3782_v31  ;;  %829 = vmatprep.subr.mxu0 %v3817_v36  ;;  %v3794_v31 = vld [vmem:[%s7413_s28 + $0x3a0] sm:$0xff]  ;;  %v3789_v36 = vld [vmem:[%s7413_s28 + $0x378] sm:$0xff] }
 0x106   :  { %779 = vmatprep.mubr.f32.mxu0 %v4339_v20  ;;  %830 = vmatpush1.msra.mxu0 %v3816_v38  ;;  %v3787_v38 = vld [vmem:[%s7413_s28 + $0x368] sm:$0xff] }
 0x107   :  { %831 = vmatprep.subr.mxu0 %v3815_v40  ;;  %646 = vmatpush1.msra.mxu1 %v3748_v53  ;;  %v3821_v40 = vld [vmem:[%s7413_s28 + $0x478] sm:$0xff] }
 0x108   :  { %832 = vmatpush1.msra.mxu0 %v3814_v42  ;;  %647 = vmatprep.subr.mxu1 %v3747_v55  ;;  %v3819_v42 = vld [vmem:[%s7413_s28 + $0x468] sm:$0xff] }
 0x109   :  { %3785 = vmatmul.mubr.msk.f32.gmra.mxu0 %vm80_vm0, %v3783_v32  ;;  %833 = vmatprep.subr.mxu0 %v3813_v44  ;;  %v3793_v32 = vld [vmem:[%s7413_s28 + $0x398] sm:$0xff] }
 0x10a   :  { %834 = vmatpush1.msra.mxu0 %v3812_v46  ;;  %648 = vmatpush1.msra.mxu1 %v3746_v57 }
 0x10b   :  { %835 = vmatprep.subr.mxu0 %v3811_v48  ;;  %649 = vmatprep.subr.mxu1 %v3745_v59 }
 0x10c   :  { %836 = vmatpush1.msra.mxu0 %v3810_v50  ;;  %650 = vmatpush1.msra.mxu1 %v3744_v61 }
 0x10d   :  { %837 = vmatprep.subr.mxu0 %v3809_v52  ;;  %679 = vmatprep.subr.mxu1 %v3779_v63 }
 0x10e   :  { %838 = vmatpush1.msra.mxu0 %v3808_v54  ;;  %680 = vmatpush2.msra.mxu1 %v3778_v19  ;;  %v3852_v19 = vld [vmem:[%s7413_s28 + $0x540] sm:$0xff] }
 0x10f   :  { %839 = vmatprep.subr.mxu0 %v3807_v56  ;;  %681 = vmatprep.subr.mxu1 %v3777_v22  ;;  %v3901_v22 = vld [vmem:[%s7413_s28 + $0x698] sm:$0xff] }
 0x110   :  { %840 = vmatpush1.msra.mxu0 %v3806_v58  ;;  %682 = vmatpush2.msra.mxu1 %v3776_v24  ;;  %v3824_v58 = vld [vmem:[%s7412_s23 + $0x40] sm:$0xff]  ;;  %v3900_v24 = vld [vmem:[%s7413_s28 + $0x690] sm:$0xff] }
 0x111   :  { %841 = vmatprep.subr.mxu0 %v3805_v60  ;;  %933 = vmatprep.subr.mxu1 %v4439_v0  ;;  %v3859_v60 = vld [vmem:[%s7413_s28 + $0x578] sm:$0xff] }
 0x112   :  { %842 = vmatpush1.msra.mxu0 %v3804_v62  ;;  %v3825_v62 = vld [vmem:[%s7412_s23 + $0x48] sm:$0xff] }
 0x113   :  { %843 = vmatprep.subr.mxu0 %v3803_v18  ;;  %v3858_v18 = vld [vmem:[%s7413_s28 + $0x570] sm:$0xff] }
 0x114   :  { %844 = vmatpush1.msra.mxu0 %v3802_v21  ;;  %v3841_v21 = vld [vmem:[%s7413_s28 + $0x4e8] sm:$0xff] }
 0x115   :  { %845 = vmatprep.subr.mxu0 %v3801_v23  ;;  %v3840_v23 = vld [vmem:[%s7413_s28 + $0x4e0] sm:$0xff] }
 0x116   :  { %846 = vmatpush1.msra.mxu0 %v3800_v25  ;;  %v3839_v25 = vld [vmem:[%s7413_s28 + $0x4d8] sm:$0xff] }
 0x117   :  { %847 = vmatprep.subr.mxu0 %v3799_v26  ;;  %v3899_v26 = vld [vmem:[%s7413_s28 + $0x688] sm:$0xff] }
 0x118   :  { %848 = vmatpush1.msra.mxu0 %v3798_v27  ;;  %v3838_v27 = vld [vmem:[%s7413_s28 + $0x4d0] sm:$0xff] }
 0x119   :  { %849 = vmatprep.subr.mxu0 %v3797_v28  ;;  %v3898_v28 = vld [vmem:[%s7413_s28 + $0x680] sm:$0xff] }
 0x11a   :  { %850 = vmatpush1.msra.mxu0 %v3796_v29  ;;  %v3837_v29 = vld [vmem:[%s7413_s28 + $0x4c8] sm:$0xff] }
 0x11b   :  { %851 = vmatprep.subr.mxu0 %v3795_v30  ;;  %v3897_v30 = vld [vmem:[%s7413_s28 + $0x678] sm:$0xff] }
 0x11c   :  { %852 = vmatpush1.msra.mxu0 %v3794_v31  ;;  %v3836_v31 = vld [vmem:[%s7413_s28 + $0x4c0] sm:$0xff] }
 0x11d   :  { %853 = vmatprep.subr.mxu0 %v3793_v32  ;;  %v3896_v32 = vld [vmem:[%s7413_s28 + $0x670] sm:$0xff] }
 0x11e   :  { %854 = vmatpush1.msra.mxu0 %v3792_v33  ;;  %v3835_v33 = vld [vmem:[%s7413_s28 + $0x4b8] sm:$0xff] }
 0x11f   :  { %855 = vmatprep.subr.mxu0 %v3791_v34  ;;  %v3895_v34 = vld [vmem:[%s7413_s28 + $0x668] sm:$0xff] }
 0x120   :  { %856 = vmatpush1.msra.mxu0 %v3790_v35  ;;  %v3834_v35 = vld [vmem:[%s7413_s28 + $0x4b0] sm:$0xff] }
 0x121   :  { %857 = vmatprep.subr.mxu0 %v3789_v36  ;;  %v3894_v36 = vld [vmem:[%s7413_s28 + $0x660] sm:$0xff] }
 0x122   :  { %858 = vmatpush1.msra.mxu0 %v3788_v37  ;;  %v3833_v37 = vld [vmem:[%s7413_s28 + $0x4a8] sm:$0xff] }
 0x123   :  { %859 = vmatprep.subr.mxu0 %v3787_v38  ;;  %v3893_v38 = vld [vmem:[%s7413_s28 + $0x658] sm:$0xff] }
 0x124   :  { %860 = vmatpush1.msra.mxu0 %v3786_v39  ;;  %v3832_v39 = vld [vmem:[%s7413_s28 + $0x4a0] sm:$0xff] }
 0x125   :  { %889 = vmatprep.subr.mxu0 %v3821_v40  ;;  %v3892_v40 = vld [vmem:[%s7413_s28 + $0x650] sm:$0xff] }
 0x126   :  { %890 = vmatpush2.msra.mxu0 %v3820_v41  ;;  %v3831_v41 = vld [vmem:[%s7413_s28 + $0x498] sm:$0xff] }
 0x127   :  { %891 = vmatprep.subr.mxu0 %v3819_v42  ;;  %v3891_v42 = vld [vmem:[%s7413_s28 + $0x648] sm:$0xff] }
 0x128   :  { %892 = vmatpush2.msra.mxu0 %v3818_v43  ;;  %v3830_v43 = vld [vmem:[%s7413_s28 + $0x490] sm:$0xff] }
 0x129   :  { %1143 = vmatprep.subr.mxu0 %v4439_v0 }
 0x1a1   :  { %v396_v44 = vpop.f32.mrf.mxu0  ;;  %v479_v45 = vpop.f32.mrf.mxu1 }
 0x1a2   :  { %v5076_v46 = vadd.f32 %v479_v45, %v396_v44  ;;  %v3890_v44 = vld [vmem:[%s7413_s28 + $0x640] sm:$0xff]  ;;  %v3829_v45 = vld [vmem:[%s7413_s28 + $0x488] sm:$0xff] }
 0x1a3   :  { %v398_v47 = vpop.f32.mrf.mxu0  ;;  %v481_v48 = vpop.f32.mrf.mxu1 }
 0x1a4   :  { %v5078_v49 = vadd.f32 %v481_v48, %v398_v47  ;;  %v3889_v47 = vld [vmem:[%s7413_s28 + $0x638] sm:$0xff]  ;;  %v3828_v48 = vld [vmem:[%s7413_s28 + $0x480] sm:$0xff] }
 0x1a6   :  { %v485_v51 = vpop.f32.mrf.mxu1 }
 0x1a7   :  { %v402_v50 = vpop.f32.mrf.mxu0 }
 0x1a8   :  { %v5080_v52 = vadd.f32 %v485_v51, %v402_v50  ;;  %v3888_v50 = vld [vmem:[%s7413_s28 + $0x630] sm:$0xff]  ;;  %v3863_v51 = vld [vmem:[%s7413_s28 + $0x598] sm:$0xff] }
 0x1a9   :  { %v5082_v53 = vpop.f32.mrf.mxu0 }
 0x1b3   :  { %v565_v54 = vpop.f32.mrf.mxu0 }
 0x1b5   :  { %v567_v55 = vpop.f32.mrf.mxu0 }
 0x1b6   :  { %3780 = vmatprep.mubr.msk.f32.mxu1 %vm323_vm1, %v567_v55  ;;  %v3862_v55 = vld [vmem:[%s7413_s28 + $0x590] sm:$0xff] }
 0x1b7   :  { %v571_v56 = vpop.f32.mrf.mxu0  ;;  %684 = vmatmul.mubr.f32.vlgmr.msra.gmra.mxu1 %v565_v54  ;;  %v3887_v54 = vld [vmem:[%s7413_s28 + $0x628] sm:$0xff] }
 0x1b8   :  { %934 = vmatpush1.msra.mxu1 %v4444_v1 }
 0x1b9   :  { %935 = vmatprep.subr.mxu1 %v4449_v2  ;;  %v573_v0 = vpop.f32.mrf.mxu0 }
 0x1ba   :  { %936 = vmatpush1.msra.mxu1 %v4456_v3  ;;  %3781 = vmatprep.mubr.msk.f32.mxu1 %vm323_vm1, %v573_v0  ;;  %v3861_v0 = vld [vmem:[%s7413_s28 + $0x588] sm:$0xff] }
 0x1bb   :  { %937 = vmatprep.subr.mxu1 %v4463_v4  ;;  %690 = vmatmul.mubr.f32.gmra.mxu1 %v571_v56  ;;  %v3886_v56 = vld [vmem:[%s7413_s28 + $0x620] sm:$0xff] }
 0x1bc   :  { %938 = vmatpush1.msra.mxu1 %v4470_v5  ;;  %983 = vmatprep.mubr.f32.mxu1 %v4339_v20 }
 0x1bd   :  { %939 = vmatprep.subr.mxu1 %v4477_v6 }
 0x1be   :  { %940 = vmatpush1.msra.mxu1 %v4484_v7 }
 0x1bf   :  { %941 = vmatprep.subr.mxu1 %v4491_v8 }
 0x1c0   :  { %942 = vmatpush1.msra.mxu1 %v4498_v9 }
 0x1c1   :  { %943 = vmatprep.subr.mxu1 %v4505_v10 }
 0x1c2   :  { %944 = vmatpush1.msra.mxu1 %v4512_v11 }
 0x1c3   :  { %945 = vmatprep.subr.mxu1 %v4519_v12 }
 0x1c4   :  { %946 = vmatpush1.msra.mxu1 %v4526_v13 }
 0x1c5   :  { %947 = vmatprep.subr.mxu1 %v4533_v14  ;;  %v775_v57 = vpop.f32.mrf.mxu0 }
 0x1c6   :  { %948 = vmatpush1.msra.mxu1 %v4540_v15 }
 0x1c7   :  { %949 = vmatprep.subr.mxu1 %v4547_v16  ;;  %v777_v59 = vpop.f32.mrf.mxu0 }
 0x1c8   :  { %950 = vmatpush1.msra.mxu1 %v4554_v17  ;;  %3822 = vmatprep.mubr.msk.f32.mxu0 %vm323_vm1, %v777_v59  ;;  %v3884_v59 = vld [vmem:[%s7413_s28 + $0x610] sm:$0xff] }
 0x1c9   :  { %3826 = vmatmul.mubr.msk.f32.vlgmr.msra.gmra.mxu1 %vm80_vm0, %v3824_v58  ;;  %v781_v61 = vpop.f32.mrf.mxu0  ;;  %894 = vmatmul.mubr.f32.vlgmr.msra.gmra.mxu0 %v775_v57  ;;  %v3885_v57 = vld [vmem:[%s7413_s28 + $0x618] sm:$0xff]  ;;  %v3860_v58 = vld [vmem:[%s7413_s28 + $0x580] sm:$0xff] }
 0x1ca   :  { %1144 = vmatpush1.msra.mxu0 %v4444_v1  ;;  %989 = vmatprep.mubr.f32.mxu1 %v4339_v20  ;;  %v3857_v1 = vld [vmem:[%s7413_s28 + $0x568] sm:$0xff] }
 0x1cb   :  { %1145 = vmatprep.subr.mxu0 %v4449_v2  ;;  %v783_v63 = vpop.f32.mrf.mxu0  ;;  %1039 = vmatprep.subr.mxu1 %v3859_v60  ;;  %v3856_v2 = vld [vmem:[%s7413_s28 + $0x560] sm:$0xff]  ;;  %v3883_v60 = vld [vmem:[%s7413_s28 + $0x608] sm:$0xff] }
 0x1cc   :  { %1146 = vmatpush1.msra.mxu0 %v4456_v3  ;;  %3823 = vmatprep.mubr.msk.f32.mxu0 %vm323_vm1, %v783_v63  ;;  %v3855_v3 = vld [vmem:[%s7413_s28 + $0x558] sm:$0xff] }
 0x1cd   :  { %3827 = vmatmul.mubr.msk.f32.gmra.mxu1 %vm80_vm0, %v3825_v62  ;;  %1147 = vmatprep.subr.mxu0 %v4463_v4  ;;  %v3854_v4 = vld [vmem:[%s7413_s28 + $0x550] sm:$0xff]  ;;  %v3882_v62 = vld [vmem:[%s7413_s28 + $0x600] sm:$0xff]  ;;  %v3881_v63 = vld [vmem:[%s7413_s28 + $0x5f8] sm:$0xff] }
 0x1ce   :  { %900 = vmatmul.mubr.f32.gmra.mxu0 %v781_v61  ;;  %1040 = vmatpush1.msra.mxu1 %v3858_v18  ;;  %v4299_v61 = vld [vmem:[%s7411_s29 + $0x88] sm:$0xff]  ;;  %v3880_v18 = vld [vmem:[%s7413_s28 + $0x5f0] sm:$0xff] }
 0x1cf   :  { %1148 = vmatpush1.msra.mxu0 %v4470_v5  ;;  %1193 = vmatprep.mubr.f32.mxu0 %v4339_v20  ;;  %v3853_v5 = vld [vmem:[%s7413_s28 + $0x548] sm:$0xff] }
 0x1d0   :  { %1149 = vmatprep.subr.mxu0 %v4477_v6  ;;  %1041 = vmatprep.subr.mxu1 %v3857_v1  ;;  %v3851_v6 = vld [vmem:[%s7413_s28 + $0x538] sm:$0xff]  ;;  %v3879_v1 = vld [vmem:[%s7413_s28 + $0x5e8] sm:$0xff] }
 0x1d1   :  { %1150 = vmatpush1.msra.mxu0 %v4484_v7  ;;  %1042 = vmatpush1.msra.mxu1 %v3856_v2  ;;  %v3850_v7 = vld [vmem:[%s7413_s28 + $0x530] sm:$0xff]  ;;  %v3878_v2 = vld [vmem:[%s7413_s28 + $0x5e0] sm:$0xff] }
 0x1d2   :  { %1151 = vmatprep.subr.mxu0 %v4491_v8  ;;  %1043 = vmatprep.subr.mxu1 %v3855_v3  ;;  %v3849_v8 = vld [vmem:[%s7413_s28 + $0x528] sm:$0xff]  ;;  %v3877_v3 = vld [vmem:[%s7413_s28 + $0x5d8] sm:$0xff] }
 0x1d3   :  { %1152 = vmatpush1.msra.mxu0 %v4498_v9  ;;  %1044 = vmatpush1.msra.mxu1 %v3854_v4  ;;  %v3848_v9 = vld [vmem:[%s7413_s28 + $0x520] sm:$0xff]  ;;  %v3876_v4 = vld [vmem:[%s7413_s28 + $0x5d0] sm:$0xff] }
 0x1d4   :  { %1153 = vmatprep.subr.mxu0 %v4505_v10  ;;  %1045 = vmatprep.subr.mxu1 %v3853_v5  ;;  %v3847_v10 = vld [vmem:[%s7413_s28 + $0x518] sm:$0xff]  ;;  %v3875_v5 = vld [vmem:[%s7413_s28 + $0x5c8] sm:$0xff] }
 0x1d5   :  { %1154 = vmatpush1.msra.mxu0 %v4512_v11  ;;  %1046 = vmatpush1.msra.mxu1 %v3852_v19  ;;  %v3846_v11 = vld [vmem:[%s7413_s28 + $0x510] sm:$0xff]  ;;  %v3874_v19 = vld [vmem:[%s7413_s28 + $0x5c0] sm:$0xff] }
 0x1d6   :  { %1155 = vmatprep.subr.mxu0 %v4519_v12  ;;  %1047 = vmatprep.subr.mxu1 %v3851_v6  ;;  %v3866_v12 = vld [vmem:[%s7412_s23 + $0x50] sm:$0xff]  ;;  %v3873_v6 = vld [vmem:[%s7413_s28 + $0x5b8] sm:$0xff] }
 0x1d7   :  { %1156 = vmatpush1.msra.mxu0 %v4526_v13  ;;  %1048 = vmatpush1.msra.mxu1 %v3850_v7  ;;  %v3845_v13 = vld [vmem:[%s7413_s28 + $0x508] sm:$0xff]  ;;  %v3872_v7 = vld [vmem:[%s7413_s28 + $0x5b0] sm:$0xff] }
 0x1d8   :  { %1157 = vmatprep.subr.mxu0 %v4533_v14  ;;  %1049 = vmatprep.subr.mxu1 %v3849_v8  ;;  %v3844_v14 = vld [vmem:[%s7413_s28 + $0x500] sm:$0xff]  ;;  %v3871_v8 = vld [vmem:[%s7413_s28 + $0x5a8] sm:$0xff] }
 0x1d9   :  { %1158 = vmatpush1.msra.mxu0 %v4540_v15  ;;  %1050 = vmatpush1.msra.mxu1 %v3848_v9  ;;  %v3867_v15 = vld [vmem:[%s7412_s23 + $0x58] sm:$0xff]  ;;  %v3870_v9 = vld [vmem:[%s7413_s28 + $0x5a0] sm:$0xff] }
 0x1da   :  { %1159 = vmatprep.subr.mxu0 %v4547_v16  ;;  %1051 = vmatprep.subr.mxu1 %v3847_v10  ;;  %v3843_v16 = vld [vmem:[%s7413_s28 + $0x4f8] sm:$0xff] }
 0x1db   :  { %1160 = vmatpush1.msra.mxu0 %v4554_v17  ;;  %1052 = vmatpush1.msra.mxu1 %v3846_v11  ;;  %v3842_v17 = vld [vmem:[%s7413_s28 + $0x4f0] sm:$0xff]  ;;  %v3905_v10 = vld [vmem:[%s7413_s28 + $0x6b8] sm:$0xff] }
 0x1dc   :  { %3868 = vmatmul.mubr.msk.f32.vlgmr.msra.gmra.mxu0 %vm80_vm0, %v3866_v12  ;;  %1053 = vmatprep.subr.mxu1 %v3845_v13  ;;  %v3904_v11 = vld [vmem:[%s7413_s28 + $0x6b0] sm:$0xff]  ;;  %v3903_v12 = vld [vmem:[%s7413_s28 + $0x6a8] sm:$0xff]  ;;  %v3902_v13 = vld [vmem:[%s7413_s28 + $0x6a0] sm:$0xff] }
 0x1dd   :  { %1199 = vmatprep.mubr.f32.mxu0 %v4339_v20  ;;  %1054 = vmatpush1.msra.mxu1 %v3844_v14  ;;  %v487_v14 = vpop.f32.mrf.mxu1 }
 0x1de   :  { %1055 = vmatprep.subr.mxu1 %v3843_v16  ;;  %1249 = vmatprep.subr.mxu0 %v3901_v22 }
 0x1df   :  { %1056 = vmatpush1.msra.mxu1 %v3842_v17  ;;  %1250 = vmatpush1.msra.mxu0 %v3900_v24 }
 0x1e0   :  { %3869 = vmatmul.mubr.msk.f32.gmra.mxu0 %vm80_vm0, %v3867_v15  ;;  %1057 = vmatprep.subr.mxu1 %v3841_v21 }
 0x1e1   :  { %1058 = vmatpush1.msra.mxu1 %v3840_v23  ;;  %1251 = vmatprep.subr.mxu0 %v3899_v26  ;;  %v488_v23 = vadd.f32 %v487_v14, %v5082_v53  ;;  %v3927_v14 = vld [vmem:[%s7413_s28 + $0x738] sm:$0xff] }
 0x1e2   :  { %1059 = vmatprep.subr.mxu1 %v3839_v25  ;;  %1252 = vmatpush1.msra.mxu0 %v3898_v28 }
 0x1e3   :  { %1060 = vmatpush1.msra.mxu1 %v3838_v27  ;;  %1253 = vmatprep.subr.mxu0 %v3897_v30 }
 0x1e4   :  { %1061 = vmatprep.subr.mxu1 %v3837_v29  ;;  %1254 = vmatpush1.msra.mxu0 %v3896_v32 }
 0x1e5   :  { %1062 = vmatpush1.msra.mxu1 %v3836_v31  ;;  %1255 = vmatprep.subr.mxu0 %v3895_v34 }
 0x1e6   :  { %1063 = vmatprep.subr.mxu1 %v3835_v33  ;;  %1256 = vmatpush1.msra.mxu0 %v3894_v36  ;;  %v4301_v33 = vld [vmem:[%s7411_s29 + $0x78] sm:$0xff] }
 0x1e7   :  { %1064 = vmatpush1.msra.mxu1 %v3834_v35  ;;  %1257 = vmatprep.subr.mxu0 %v3893_v38  ;;  %v4302_v35 = vld [vmem:[%s7411_s29 + $0x70] sm:$0xff]  ;;  %v4303_v38 = vld [vmem:[%s7411_s29 + $0x68] sm:$0xff] }
 0x1e8   :  { %1065 = vmatprep.subr.mxu1 %v3833_v37  ;;  %1258 = vmatpush1.msra.mxu0 %v3892_v40  ;;  %v4305_v40 = vld [vmem:[%s7411_s29 + $0x58] sm:$0xff] }
 0x1e9   :  { %1066 = vmatpush1.msra.mxu1 %v3832_v39  ;;  %1259 = vmatprep.subr.mxu0 %v3891_v42  ;;  %v4304_v39 = vld [vmem:[%s7411_s29 + $0x60] sm:$0xff]  ;;  %v4307_v42 = vld [vmem:[%s7411_s29 + $0x48] sm:$0xff] }
 0x1ea   :  { %1067 = vmatprep.subr.mxu1 %v3831_v41  ;;  %1260 = vmatpush1.msra.mxu0 %v3890_v44  ;;  %v4306_v41 = vld [vmem:[%s7411_s29 + $0x50] sm:$0xff]  ;;  %v4309_v44 = vld [vmem:[%s7411_s29 + $0x38] sm:$0xff] }
 0x1eb   :  { %1068 = vmatpush1.msra.mxu1 %v3830_v43  ;;  %1261 = vmatprep.subr.mxu0 %v3889_v47  ;;  %v4308_v43 = vld [vmem:[%s7411_s29 + $0x40] sm:$0xff]  ;;  %v4311_v47 = vld [vmem:[%s7411_s29 + $0x28] sm:$0xff] }
 0x1ec   :  { %1069 = vmatprep.subr.mxu1 %v3829_v45  ;;  %1262 = vmatpush1.msra.mxu0 %v3888_v50  ;;  %v4310_v45 = vld [vmem:[%s7411_s29 + $0x30] sm:$0xff]  ;;  %v4313_v50 = vld [vmem:[%s7411_s29 + $0x18] sm:$0xff] }
 0x1ed   :  { %1070 = vmatpush1.msra.mxu1 %v3828_v48  ;;  %1263 = vmatprep.subr.mxu0 %v3887_v54  ;;  %v4312_v48 = vld [vmem:[%s7411_s29 + $0x20] sm:$0xff]  ;;  %v4314_v54 = vld [vmem:[%s7411_s29 + $0x10] sm:$0xff] }
 0x1ee   :  { %1099 = vmatprep.subr.mxu1 %v3863_v51  ;;  %1264 = vmatpush1.msra.mxu0 %v3886_v56  ;;  %v4315_v56 = vld [vmem:[%s7411_s29 + $0x8] sm:$0xff] }
 0x1ef   :  { %1100 = vmatpush2.msra.mxu1 %v3862_v55  ;;  %1265 = vmatprep.subr.mxu0 %v3885_v57  ;;  %v3908_v55 = vld [vmem:[%s7412_s23 + $0x60] sm:$0xff] }
 0x1f0   :  { %1101 = vmatprep.subr.mxu1 %v3861_v0  ;;  %1266 = vmatpush1.msra.mxu0 %v3884_v59  ;;  %v4316_v57 = vld [vmem:[%s7411_s29] sm:$0xff]  ;;  %v3942_v59 = vld [vmem:[%s7413_s28 + $0x7b0] sm:$0xff] }
 0x1f1   :  { %1102 = vmatpush2.msra.mxu1 %v3860_v58  ;;  %1267 = vmatprep.subr.mxu0 %v3883_v60  ;;  %v3943_v58 = vld [vmem:[%s7413_s28 + $0x7b8] sm:$0xff] }
 0x1f2   :  { %1353 = vmatprep.subr.mxu1 %v4299_v61  ;;  %1268 = vmatpush1.msra.mxu0 %v3882_v62 }
 0x1f3   :  { %1269 = vmatprep.subr.mxu0 %v3881_v63  ;;  %v3941_v63 = vld [vmem:[%s7413_s28 + $0x7a8] sm:$0xff] }
 0x1f4   :  { %1270 = vmatpush1.msra.mxu0 %v3880_v18  ;;  %v3940_v18 = vld [vmem:[%s7413_s28 + $0x7a0] sm:$0xff] }
 0x1f5   :  { %1271 = vmatprep.subr.mxu0 %v3879_v1  ;;  %v3939_v1 = vld [vmem:[%s7413_s28 + $0x798] sm:$0xff] }
 0x1f6   :  { %1272 = vmatpush1.msra.mxu0 %v3878_v2  ;;  %v3938_v2 = vld [vmem:[%s7413_s28 + $0x790] sm:$0xff] }
 0x1f7   :  { %1273 = vmatprep.subr.mxu0 %v3877_v3  ;;  %v3937_v3 = vld [vmem:[%s7413_s28 + $0x788] sm:$0xff] }
 0x1f8   :  { %1274 = vmatpush1.msra.mxu0 %v3876_v4  ;;  %v3936_v4 = vld [vmem:[%s7413_s28 + $0x780] sm:$0xff] }
 0x1f9   :  { %1275 = vmatprep.subr.mxu0 %v3875_v5  ;;  %v3935_v5 = vld [vmem:[%s7413_s28 + $0x778] sm:$0xff] }
 0x1fa   :  { %1276 = vmatpush1.msra.mxu0 %v3874_v19  ;;  %v3934_v19 = vld [vmem:[%s7413_s28 + $0x770] sm:$0xff] }
 0x1fb   :  { %1277 = vmatprep.subr.mxu0 %v3873_v6  ;;  %v3933_v6 = vld [vmem:[%s7413_s28 + $0x768] sm:$0xff] }
 0x1fc   :  { %1278 = vmatpush1.msra.mxu0 %v3872_v7  ;;  %v3932_v7 = vld [vmem:[%s7413_s28 + $0x760] sm:$0xff] }
 0x1fd   :  { %1279 = vmatprep.subr.mxu0 %v3871_v8  ;;  %v3931_v8 = vld [vmem:[%s7413_s28 + $0x758] sm:$0xff] }
 0x1fe   :  { %1280 = vmatpush1.msra.mxu0 %v3870_v9  ;;  %v3930_v9 = vld [vmem:[%s7413_s28 + $0x750] sm:$0xff] }
 0x1ff   :  { %1309 = vmatprep.subr.mxu0 %v3905_v10  ;;  %v3929_v10 = vld [vmem:[%s7413_s28 + $0x748] sm:$0xff] }
 0x200   :  { %1310 = vmatpush2.msra.mxu0 %v3904_v11  ;;  %v3950_v11 = vld [vmem:[%s7412_s23 + $0x70] sm:$0xff] }
 0x201   :  { %1311 = vmatprep.subr.mxu0 %v3903_v12  ;;  %v3951_v12 = vld [vmem:[%s7412_s23 + $0x78] sm:$0xff] }
 0x202   :  { %1312 = vmatpush2.msra.mxu0 %v3902_v13  ;;  %v3928_v13 = vld [vmem:[%s7413_s28 + $0x740] sm:$0xff] }
 0x203   :  { %1563 = vmatprep.subr.mxu0 %v4299_v61  ;;  %v3909_v61 = vld [vmem:[%s7412_s23 + $0x68] sm:$0xff] }
 0x277   :  { %v685_v15 = vpop.f32.mrf.mxu1 }
 0x278   :  { %v696_v16 = vadd.f32 %v685_v15, %v5076_v46  ;;  %v3926_v15 = vld [vmem:[%s7413_s28 + $0x730] sm:$0xff] }
 0x279   :  { %v687_v17 = vpop.f32.mrf.mxu1 }
 0x27a   :  { %v697_v21 = vadd.f32 %v687_v17, %v5078_v49  ;;  %v4300_v49 = vld [vmem:[%s7411_s29 + $0x80] sm:$0xff]  ;;  %v3985_v17 = vld [vmem:[%s7413_s28 + $0x8d8] sm:$0xff] }
 0x27b   :  { %v691_v22 = vpop.f32.mrf.mxu1 }
 0x27c   :  { %v698_v24 = vadd.f32 %v691_v22, %v5080_v52  ;;  %v3984_v22 = vld [vmem:[%s7413_s28 + $0x8d0] sm:$0xff] }
 0x27d   :  { %v693_v25 = vpop.f32.mrf.mxu1 }
 0x27e   :  { %v699_v26 = vadd.f32 %v693_v25, %v488_v23  ;;  %v3923_v23 = vld [vmem:[%s7413_s28 + $0x718] sm:$0xff]  ;;  %v3922_v25 = vld [vmem:[%s7413_s28 + $0x710] sm:$0xff] }
 0x289   :  { %v985_v27 = vpop.f32.mrf.mxu1  ;;  %v895_v28 = vpop.f32.mrf.mxu0 }
 0x28a   :  { %v5365_v29 = vadd.f32 %v895_v28, %v696_v16  ;;  %v3925_v16 = vld [vmem:[%s7413_s28 + $0x728] sm:$0xff]  ;;  %v3981_v28 = vld [vmem:[%s7413_s28 + $0x8b8] sm:$0xff] }
 0x28b   :  { %v987_v30 = vpop.f32.mrf.mxu1  ;;  %v897_v31 = vpop.f32.mrf.mxu0 }
 0x28c   :  { %v5367_v32 = vadd.f32 %v897_v31, %v697_v21  ;;  %3864 = vmatprep.mubr.msk.f32.mxu1 %vm323_vm1, %v987_v30  ;;  %v3924_v21 = vld [vmem:[%s7413_s28 + $0x720] sm:$0xff]  ;;  %v3980_v31 = vld [vmem:[%s7413_s28 + $0x8b0] sm:$0xff] }
 0x28d   :  { %v991_v46 = vpop.f32.mrf.mxu1  ;;  %1104 = vmatmul.mubr.f32.vlgmr.msra.gmra.mxu1 %v985_v27  ;;  %v3921_v27 = vld [vmem:[%s7413_s28 + $0x708] sm:$0xff]  ;;  %v3920_v30 = vld [vmem:[%s7413_s28 + $0x700] sm:$0xff] }
 0x28e   :  { %1354 = vmatpush1.msra.mxu1 %v4300_v49  ;;  %v901_v52 = vpop.f32.mrf.mxu0 }
 0x28f   :  { %v5373_v53 = vadd.f32 %v901_v52, %v698_v24  ;;  %1355 = vmatprep.subr.mxu1 %v4301_v33  ;;  %v993_v34 = vpop.f32.mrf.mxu1  ;;  %v3983_v24 = vld [vmem:[%s7413_s28 + $0x8c8] sm:$0xff]  ;;  %v3918_v52 = vld [vmem:[%s7413_s28 + $0x6f0] sm:$0xff] }
 0x290   :  { %1356 = vmatpush1.msra.mxu1 %v4302_v35  ;;  %v903_v36 = vpop.f32.mrf.mxu0  ;;  %3865 = vmatprep.mubr.msk.f32.mxu1 %vm323_vm1, %v993_v34  ;;  %v3917_v34 = vld [vmem:[%s7413_s28 + $0x6e8] sm:$0xff] }
 0x291   :  { %v5382_v37 = vadd.f32 %v903_v36, %v699_v26  ;;  %1357 = vmatprep.subr.mxu1 %v4303_v38  ;;  %1110 = vmatmul.mubr.f32.gmra.mxu1 %v991_v46  ;;  %v3982_v26 = vld [vmem:[%s7413_s28 + $0x8c0] sm:$0xff]  ;;  %v3919_v46 = vld [vmem:[%s7413_s28 + $0x6f8] sm:$0xff] }
 0x292   :  { %1358 = vmatpush1.msra.mxu1 %v4304_v39  ;;  %1403 = vmatprep.mubr.f32.mxu1 %v4339_v20  ;;  %v3916_v36 = vld [vmem:[%s7413_s28 + $0x6e0] sm:$0xff] }
 0x293   :  { %1359 = vmatprep.subr.mxu1 %v4305_v40 }
 0x294   :  { %1360 = vmatpush1.msra.mxu1 %v4306_v41 }
 0x295   :  { %1361 = vmatprep.subr.mxu1 %v4307_v42 }
 0x296   :  { %1362 = vmatpush1.msra.mxu1 %v4308_v43 }
 0x297   :  { %1363 = vmatprep.subr.mxu1 %v4309_v44 }
 0x298   :  { %1364 = vmatpush1.msra.mxu1 %v4310_v45 }
 0x299   :  { %1365 = vmatprep.subr.mxu1 %v4311_v47 }
 0x29a   :  { %1366 = vmatpush1.msra.mxu1 %v4312_v48 }
 0x29b   :  { %1367 = vmatprep.subr.mxu1 %v4313_v50 }
 0x29c   :  { %v1195_v51 = vpop.f32.mrf.mxu0  ;;  %1368 = vmatpush1.msra.mxu1 %v4314_v54 }
 0x29d   :  { %1369 = vmatprep.subr.mxu1 %v4315_v56 }
 0x29e   :  { %v1197_v0 = vpop.f32.mrf.mxu0  ;;  %1370 = vmatpush1.msra.mxu1 %v4316_v57 }
 0x29f   :  { %3906 = vmatprep.mubr.msk.f32.mxu0 %vm323_vm1, %v1197_v0  ;;  %3910 = vmatmul.mubr.msk.f32.vlgmr.msra.gmra.mxu1 %vm80_vm0, %v3908_v55  ;;  %v3945_v55 = vld [vmem:[%s7413_s28 + $0x7c8] sm:$0xff]  ;;  %v3944_v0 = vld [vmem:[%s7413_s28 + $0x7c0] sm:$0xff] }
 0x2a0   :  { %v1201_v60 = vpop.f32.mrf.mxu0  ;;  %1314 = vmatmul.mubr.f32.vlgmr.msra.gmra.mxu0 %v1195_v51  ;;  %1409 = vmatprep.mubr.f32.mxu1 %v4339_v20  ;;  %v3946_v51 = vld [vmem:[%s7413_s28 + $0x7d0] sm:$0xff] }
 0x2a1   :  { %1564 = vmatpush1.msra.mxu0 %v4300_v49  ;;  %1459 = vmatprep.subr.mxu1 %v3943_v58  ;;  %v3979_v49 = vld [vmem:[%s7413_s28 + $0x8a8] sm:$0xff] }
 0x2a2   :  { %1565 = vmatprep.subr.mxu0 %v4301_v33  ;;  %v1203_v62 = vpop.f32.mrf.mxu0  ;;  %1460 = vmatpush1.msra.mxu1 %v3942_v59  ;;  %v3978_v33 = vld [vmem:[%s7413_s28 + $0x8a0] sm:$0xff]  ;;  %v3967_v58 = vld [vmem:[%s7413_s28 + $0x848] sm:$0xff] }
 0x2a3   :  { %1566 = vmatpush1.msra.mxu0 %v4302_v35  ;;  %3907 = vmatprep.mubr.msk.f32.mxu0 %vm323_vm1, %v1203_v62  ;;  %v3977_v35 = vld [vmem:[%s7413_s28 + $0x898] sm:$0xff]  ;;  %v3966_v59 = vld [vmem:[%s7413_s28 + $0x840] sm:$0xff]  ;;  %v3963_v62 = vld [vmem:[%s7413_s28 + $0x828] sm:$0xff] }
 0x2a4   :  { %3911 = vmatmul.mubr.msk.f32.gmra.mxu1 %vm80_vm0, %v3909_v61  ;;  %1567 = vmatprep.subr.mxu0 %v4303_v38  ;;  %v3976_v38 = vld [vmem:[%s7413_s28 + $0x890] sm:$0xff] }
 0x2a5   :  { %1320 = vmatmul.mubr.f32.gmra.mxu0 %v1201_v60  ;;  %1461 = vmatprep.subr.mxu1 %v3941_v63  ;;  %v3965_v60 = vld [vmem:[%s7413_s28 + $0x838] sm:$0xff]  ;;  %v3964_v61 = vld [vmem:[%s7413_s28 + $0x830] sm:$0xff]  ;;  %v3962_v63 = vld [vmem:[%s7413_s28 + $0x820] sm:$0xff] }
 0x2a6   :  { %1568 = vmatpush1.msra.mxu0 %v4304_v39  ;;  %1613 = vmatprep.mubr.f32.mxu0 %v4339_v20  ;;  %v3915_v39 = vld [vmem:[%s7413_s28 + $0x6d8] sm:$0xff] }
 0x2a7   :  { %1569 = vmatprep.subr.mxu0 %v4305_v40  ;;  %1462 = vmatpush1.msra.mxu1 %v3940_v18  ;;  %v3975_v40 = vld [vmem:[%s7413_s28 + $0x888] sm:$0xff]  ;;  %v3961_v18 = vld [vmem:[%s7413_s28 + $0x818] sm:$0xff] }
 0x2a8   :  { %1570 = vmatpush1.msra.mxu0 %v4306_v41  ;;  %1463 = vmatprep.subr.mxu1 %v3939_v1  ;;  %v3914_v41 = vld [vmem:[%s7413_s28 + $0x6d0] sm:$0xff] }
 0x2a9   :  { %1571 = vmatprep.subr.mxu0 %v4307_v42  ;;  %1464 = vmatpush1.msra.mxu1 %v3938_v2  ;;  %v3974_v42 = vld [vmem:[%s7413_s28 + $0x880] sm:$0xff]  ;;  %v3960_v1 = vld [vmem:[%s7413_s28 + $0x810] sm:$0xff]  ;;  %v3959_v2 = vld [vmem:[%s7413_s28 + $0x808] sm:$0xff] }
 0x2aa   :  { %1572 = vmatpush1.msra.mxu0 %v4308_v43  ;;  %1465 = vmatprep.subr.mxu1 %v3937_v3  ;;  %v3913_v43 = vld [vmem:[%s7413_s28 + $0x6c8] sm:$0xff]  ;;  %v3958_v3 = vld [vmem:[%s7413_s28 + $0x800] sm:$0xff] }
 0x2ab   :  { %1573 = vmatprep.subr.mxu0 %v4309_v44  ;;  %1466 = vmatpush1.msra.mxu1 %v3936_v4  ;;  %v3973_v44 = vld [vmem:[%s7413_s28 + $0x878] sm:$0xff] }
 0x2ac   :  { %1574 = vmatpush1.msra.mxu0 %v4310_v45  ;;  %1467 = vmatprep.subr.mxu1 %v3935_v5  ;;  %v3912_v45 = vld [vmem:[%s7413_s28 + $0x6c0] sm:$0xff]  ;;  %v3957_v4 = vld [vmem:[%s7413_s28 + $0x7f8] sm:$0xff]  ;;  %v3956_v5 = vld [vmem:[%s7413_s28 + $0x7f0] sm:$0xff] }
 0x2ad   :  { %1575 = vmatprep.subr.mxu0 %v4311_v47  ;;  %1468 = vmatpush1.msra.mxu1 %v3934_v19  ;;  %v3972_v47 = vld [vmem:[%s7413_s28 + $0x870] sm:$0xff]  ;;  %v3955_v19 = vld [vmem:[%s7413_s28 + $0x7e8] sm:$0xff] }
 0x2ae   :  { %1576 = vmatpush1.msra.mxu0 %v4312_v48  ;;  %1469 = vmatprep.subr.mxu1 %v3933_v6  ;;  %v3947_v48 = vld [vmem:[%s7413_s28 + $0x7d8] sm:$0xff]  ;;  %v3954_v6 = vld [vmem:[%s7413_s28 + $0x7e0] sm:$0xff] }
 0x2af   :  { %1577 = vmatprep.subr.mxu0 %v4313_v50  ;;  %1470 = vmatpush1.msra.mxu1 %v3932_v7  ;;  %v3971_v50 = vld [vmem:[%s7413_s28 + $0x868] sm:$0xff]  ;;  %v3989_v7 = vld [vmem:[%s7413_s28 + $0x8f8] sm:$0xff] }
 0x2b0   :  { %1578 = vmatpush1.msra.mxu0 %v4314_v54  ;;  %1471 = vmatprep.subr.mxu1 %v3931_v8  ;;  %v3970_v54 = vld [vmem:[%s7413_s28 + $0x860] sm:$0xff]  ;;  %v3988_v8 = vld [vmem:[%s7413_s28 + $0x8f0] sm:$0xff] }
 0x2b1   :  { %1579 = vmatprep.subr.mxu0 %v4315_v56  ;;  %1472 = vmatpush1.msra.mxu1 %v3930_v9  ;;  %v3969_v56 = vld [vmem:[%s7413_s28 + $0x858] sm:$0xff]  ;;  %v3987_v9 = vld [vmem:[%s7413_s28 + $0x8e8] sm:$0xff] }
 0x2b2   :  { %1580 = vmatpush1.msra.mxu0 %v4316_v57  ;;  %1473 = vmatprep.subr.mxu1 %v3929_v10  ;;  %v3968_v57 = vld [vmem:[%s7413_s28 + $0x850] sm:$0xff]  ;;  %v3986_v10 = vld [vmem:[%s7413_s28 + $0x8e0] sm:$0xff] }
 0x2b3   :  { %3952 = vmatmul.mubr.msk.f32.vlgmr.msra.gmra.mxu0 %vm80_vm0, %v3950_v11  ;;  %1474 = vmatpush1.msra.mxu1 %v3928_v13 }
 0x2b4   :  { %1619 = vmatprep.mubr.f32.mxu0 %v4339_v20  ;;  %1475 = vmatprep.subr.mxu1 %v3927_v14 }
 0x2b5   :  { %1476 = vmatpush1.msra.mxu1 %v3926_v15  ;;  %1669 = vmatprep.subr.mxu0 %v3985_v17 }
 0x2b6   :  { %1477 = vmatprep.subr.mxu1 %v3925_v16  ;;  %1670 = vmatpush1.msra.mxu0 %v3984_v22 }
 0x2b7   :  { %3953 = vmatmul.mubr.msk.f32.gmra.mxu0 %vm80_vm0, %v3951_v12  ;;  %1478 = vmatpush1.msra.mxu1 %v3924_v21 }
 0x2b8   :  { %1479 = vmatprep.subr.mxu1 %v3923_v23  ;;  %1671 = vmatprep.subr.mxu0 %v3983_v24 }
 0x2b9   :  { %1480 = vmatpush1.msra.mxu1 %v3922_v25  ;;  %1672 = vmatpush1.msra.mxu0 %v3982_v26 }
 0x2ba   :  { %1481 = vmatprep.subr.mxu1 %v3921_v27  ;;  %1673 = vmatprep.subr.mxu0 %v3981_v28 }
 0x2bb   :  { %1482 = vmatpush1.msra.mxu1 %v3920_v30  ;;  %1674 = vmatpush1.msra.mxu0 %v3980_v31 }
 0x2bc   :  { %1483 = vmatprep.subr.mxu1 %v3919_v46  ;;  %1675 = vmatprep.subr.mxu0 %v3979_v49 }
 0x2bd   :  { %1484 = vmatpush1.msra.mxu1 %v3918_v52  ;;  %1676 = vmatpush1.msra.mxu0 %v3978_v33  ;;  %v1876_v33 = vld [vmem:[%s7391_s5 + $0xf8] sm:$0xff] }
 0x2be   :  { %1485 = vmatprep.subr.mxu1 %v3917_v34  ;;  %1677 = vmatprep.subr.mxu0 %v3977_v35  ;;  %v1875_v34 = vld [vmem:[%s7391_s5 + $0xf0] sm:$0xff]  ;;  %v1874_v35 = vld [vmem:[%s7391_s5 + $0xe8] sm:$0xff] }
 0x2bf   :  { %1486 = vmatpush1.msra.mxu1 %v3916_v36  ;;  %1678 = vmatpush1.msra.mxu0 %v3976_v38  ;;  %v1873_v36 = vld [vmem:[%s7391_s5 + $0xe0] sm:$0xff]  ;;  %v1872_v38 = vld [vmem:[%s7391_s5 + $0xd8] sm:$0xff] }
 0x2c0   :  { %1487 = vmatprep.subr.mxu1 %v3915_v39  ;;  %1679 = vmatprep.subr.mxu0 %v3975_v40  ;;  %v1871_v39 = vld [vmem:[%s7391_s5 + $0xd0] sm:$0xff]  ;;  %v1870_v40 = vld [vmem:[%s7391_s5 + $0xc8] sm:$0xff] }
 0x2c1   :  { %1488 = vmatpush1.msra.mxu1 %v3914_v41  ;;  %1680 = vmatpush1.msra.mxu0 %v3974_v42  ;;  %v1869_v41 = vld [vmem:[%s7391_s5 + $0xc0] sm:$0xff]  ;;  %v1868_v42 = vld [vmem:[%s7391_s5 + $0xb8] sm:$0xff] }
 0x2c2   :  { %1489 = vmatprep.subr.mxu1 %v3913_v43  ;;  %1681 = vmatprep.subr.mxu0 %v3973_v44  ;;  %v1867_v43 = vld [vmem:[%s7391_s5 + $0xb0] sm:$0xff]  ;;  %v1866_v44 = vld [vmem:[%s7391_s5 + $0xa8] sm:$0xff] }
 0x2c3   :  { %1490 = vmatpush1.msra.mxu1 %v3912_v45  ;;  %1682 = vmatpush1.msra.mxu0 %v3972_v47  ;;  %v1865_v45 = vld [vmem:[%s7391_s5 + $0xa0] sm:$0xff]  ;;  %v1864_v47 = vld [vmem:[%s7391_s5 + $0x98] sm:$0xff] }
 0x2c4   :  { %1519 = vmatprep.subr.mxu1 %v3947_v48  ;;  %1683 = vmatprep.subr.mxu0 %v3971_v50  ;;  %v1863_v48 = vld [vmem:[%s7391_s5 + $0x90] sm:$0xff]  ;;  %v1862_v50 = vld [vmem:[%s7391_s5 + $0x88] sm:$0xff] }
 0x2c5   :  { %1520 = vmatpush2.msra.mxu1 %v3946_v51  ;;  %1684 = vmatpush1.msra.mxu0 %v3970_v54  ;;  %v1861_v51 = vld [vmem:[%s7391_s5 + $0x80] sm:$0xff]  ;;  %v1860_v54 = vld [vmem:[%s7391_s5 + $0x78] sm:$0xff] }
 0x2c6   :  { %1521 = vmatprep.subr.mxu1 %v3945_v55  ;;  %1685 = vmatprep.subr.mxu0 %v3969_v56  ;;  %v1859_v55 = vld [vmem:[%s7391_s5 + $0x70] sm:$0xff]  ;;  %v1858_v56 = vld [vmem:[%s7391_s5 + $0x68] sm:$0xff] }
 0x2c7   :  { %1522 = vmatpush2.msra.mxu1 %v3944_v0  ;;  %1686 = vmatpush1.msra.mxu0 %v3968_v57  ;;  %v1857_v0 = vld [vmem:[%s7391_s5 + $0x60] sm:$0xff]  ;;  %v1856_v57 = vld [vmem:[%s7391_s5 + $0x58] sm:$0xff] }
 0x2c8   :  { %1687 = vmatprep.subr.mxu0 %v3967_v58  ;;  %v1855_v58 = vld [vmem:[%s7391_s5 + $0x50] sm:$0xff] }
 0x2c9   :  { %1688 = vmatpush1.msra.mxu0 %v3966_v59  ;;  %v1854_v59 = vld [vmem:[%s7391_s5 + $0x48] sm:$0xff] }
 0x2ca   :  { %1689 = vmatprep.subr.mxu0 %v3965_v60  ;;  %v1853_v60 = vld [vmem:[%s7391_s5 + $0x40] sm:$0xff] }
 0x2cb   :  { %1690 = vmatpush1.msra.mxu0 %v3964_v61  ;;  %v1852_v61 = vld [vmem:[%s7391_s5 + $0x38] sm:$0xff] }
 0x2cc   :  { %1691 = vmatprep.subr.mxu0 %v3963_v62  ;;  %v1851_v62 = vld [vmem:[%s7391_s5 + $0x30] sm:$0xff] }
 0x2cd   :  { %1692 = vmatpush1.msra.mxu0 %v3962_v63  ;;  %v1850_v63 = vld [vmem:[%s7391_s5 + $0x28] sm:$0xff] }
 0x2ce   :  { %1693 = vmatprep.subr.mxu0 %v3961_v18  ;;  %v1849_v18 = vld [vmem:[%s7391_s5 + $0x20] sm:$0xff] }
 0x2cf   :  { %1694 = vmatpush1.msra.mxu0 %v3960_v1  ;;  %v1848_v1 = vld [vmem:[%s7391_s5 + $0x18] sm:$0xff] }
 0x2d0   :  { %1695 = vmatprep.subr.mxu0 %v3959_v2  ;;  %v1847_v2 = vld [vmem:[%s7391_s5 + $0x10] sm:$0xff] }
 0x2d1   :  { %1696 = vmatpush1.msra.mxu0 %v3958_v3  ;;  %v1846_v3 = vld [vmem:[%s7391_s5 + $0x8] sm:$0xff] }
 0x2d2   :  { %1697 = vmatprep.subr.mxu0 %v3957_v4  ;;  %v1845_v4 = vld [vmem:[%s7391_s5] sm:$0xff] }
 0x2d3   :  { %1698 = vmatpush1.msra.mxu0 %v3956_v5  ;;  %v1908_v5 = vld [vmem:[%s7391_s5 + $0x1f8] sm:$0xff] }
 0x2d4   :  { %1699 = vmatprep.subr.mxu0 %v3955_v19  ;;  %v1907_v19 = vld [vmem:[%s7391_s5 + $0x1f0] sm:$0xff] }
 0x2d5   :  { %1700 = vmatpush1.msra.mxu0 %v3954_v6  ;;  %v1906_v6 = vld [vmem:[%s7391_s5 + $0x1e8] sm:$0xff] }
 0x2d6   :  { %1729 = vmatprep.subr.mxu0 %v3989_v7 }
 0x2d7   :  { %1730 = vmatpush2.msra.mxu0 %v3988_v8  ;;  %v1905_v8 = vld [vmem:[%s7391_s5 + $0x1e0] sm:$0xff] }
 0x2d8   :  { %1731 = vmatprep.subr.mxu0 %v3987_v9  ;;  %v1904_v9 = vld [vmem:[%s7391_s5 + $0x1d8] sm:$0xff] }
 0x2d9   :  { %1732 = vmatpush2.msra.mxu0 %v3986_v10  ;;  %v1903_v10 = vld [vmem:[%s7391_s5 + $0x1d0] sm:$0xff] }
 0x2da   :  { %2121 = vmatprep.subr.mxu0 %v1876_v33 }
 0x34d   :  { %v1105_v11 = vpop.f32.mrf.mxu1 }
 0x34e   :  { %v1116_v12 = vadd.f32 %v1105_v11, %v5365_v29  ;;  %v1902_v11 = vld [vmem:[%s7391_s5 + $0x1c8] sm:$0xff] }
 0x34f   :  { %v1107_v13 = vpop.f32.mrf.mxu1 }
 0x350   :  { %v1117_v14 = vadd.f32 %v1107_v13, %v5367_v32  ;;  %v1752_v13 = vlaneseq }
 0x351   :  { %v1111_v15 = vpop.f32.mrf.mxu1 }
 0x352   :  { %v1118_v16 = vadd.f32 %v1111_v15, %v5373_v53  ;;  %v1900_v15 = vld [vmem:[%s7391_s5 + $0x1b8] sm:$0xff] }
 0x353   :  { %v1113_v17 = vpop.f32.mrf.mxu1 }
 0x354   :  { %v1119_v21 = vadd.f32 %v1113_v17, %v5382_v37  ;;  %v1898_v17 = vld [vmem:[%s7391_s5 + $0x1a8] sm:$0xff] }
 0x35f   :  { %v1405_v22 = vpop.f32.mrf.mxu1 }
 0x360   :  { %v1315_v23 = vpop.f32.mrf.mxu0 }
 0x361   :  { %v5668_v24 = vadd.f32 %v1315_v23, %v1116_v12  ;;  %v1407_v25 = vpop.f32.mrf.mxu1  ;;  %v1897_v23 = vld [vmem:[%s7391_s5 + $0x1a0] sm:$0xff] }
 0x362   :  { %v1317_v26 = vpop.f32.mrf.mxu0  ;;  %3948 = vmatprep.mubr.msk.f32.mxu1 %vm323_vm1, %v1407_v25  ;;  %v1896_v25 = vld [vmem:[%s7391_s5 + $0x198] sm:$0xff] }
 0x363   :  { %v5671_v27 = vadd.f32 %v1317_v26, %v1117_v14  ;;  %1524 = vmatmul.mubr.f32.vlgmr.msra.gmra.mxu1 %v1405_v22  ;;  %v1901_v14 = vld [vmem:[%s7391_s5 + $0x1c0] sm:$0xff]  ;;  %v1753_v22 = vshrl.u32 %v1752_v13, 7 }
 0x364   :  { %v1411_v29 = vpop.f32.mrf.mxu1  ;;  %v4015_v13 = vld [vmem:[%s7391_s5 + $0x2a0] sm:$0xff] }
 0x365   :  { %v1321_v28 = vpop.f32.mrf.mxu0 }
 0x366   :  { %v5673_v32 = vadd.f32 %v1321_v28, %v1118_v16  ;;  %v1413_v30 = vpop.f32.mrf.mxu1  ;;  %v1899_v16 = vld [vmem:[%s7391_s5 + $0x1b0] sm:$0xff]  ;;  %v5819_v28 = vsub.s32 1, %v1753_v22 }
 0x367   :  { %v1323_v53 = vpop.f32.mrf.mxu0  ;;  %3949 = vmatprep.mubr.msk.f32.mxu1 %vm323_vm1, %v1413_v30  ;;  %v1894_v30 = vld [vmem:[%s7391_s5 + $0x188] sm:$0xff] }
 0x368   :  { %v5676_v37 = vadd.f32 %v1323_v53, %v1119_v21  ;;  %1530 = vmatmul.mubr.f32.gmra.mxu1 %v1411_v29  ;;  %v1895_v29 = vld [vmem:[%s7391_s5 + $0x190] sm:$0xff] }
 0x369   :  { %1838 = vmatprep.mubr.f32.mxu1 %v4339_v20 }
 0x373   :  { %v1615_v31 = vpop.f32.mrf.mxu0 }
 0x375   :  { %v1617_v46 = vpop.f32.mrf.mxu0 }
 0x376   :  { %3990 = vmatprep.mubr.msk.f32.mxu0 %vm323_vm1, %v1617_v46 }
 0x377   :  { %v1621_v49 = vpop.f32.mrf.mxu0  ;;  %1734 = vmatmul.mubr.f32.vlgmr.msra.gmra.mxu0 %v1615_v31  ;;  %v5824_v31 = vsub.s32 0, %v1753_v22  ;;  %v4009_v22 = vld [vmem:[%s7391_s5 + $0x270] sm:$0xff] }
 0x378   :  { %2122 = vmatpush1.msra.mxu0 %v1875_v34  ;;  %v1750_v34 = vld [vmem:[%s7389_s3] sm:$0x3] }
 0x379   :  { %v1623_v52 = vpop.f32.mrf.mxu0  ;;  %2123 = vmatprep.subr.mxu0 %v1874_v35  ;;  %v1892_v35 = vld [vmem:[%s7391_s5 + $0x178] sm:$0xff] }
 0x37a   :  { %3991 = vmatprep.mubr.msk.f32.mxu0 %vm323_vm1, %v1623_v52  ;;  %2124 = vmatpush1.msra.mxu0 %v1873_v36 }
 0x37b   :  { %1740 = vmatmul.mubr.f32.gmra.mxu0 %v1621_v49  ;;  %2125 = vmatprep.subr.mxu0 %v1872_v38  ;;  %v1893_v49 = vld [vmem:[%s7391_s5 + $0x180] sm:$0xff] }
 0x37c   :  { %2126 = vmatpush1.msra.mxu0 %v1871_v39  ;;  %v1891_v39 = vld [vmem:[%s7391_s5 + $0x170] sm:$0xff] }
 0x37d   :  { %2127 = vmatprep.subr.mxu0 %v1870_v40  ;;  %v1759_v40 = vrot.slane %v1750_v34, %v5819_v28 }
 0x37e   :  { %2128 = vmatpush1.msra.mxu0 %v1869_v41 }
 0x37f   :  { %2129 = vmatprep.subr.mxu0 %v1868_v42  ;;  %v1890_v42 = vld [vmem:[%s7391_s5 + $0x168] sm:$0xff] }
 0x380   :  { %2130 = vmatpush1.msra.mxu0 %v1867_v43 }
 0x381   :  { %2131 = vmatprep.subr.mxu0 %v1866_v44 }
 0x382   :  { %2132 = vmatpush1.msra.mxu0 %v1865_v45  ;;  %v1889_v45 = vld [vmem:[%s7391_s5 + $0x160] sm:$0xff] }
 0x383   :  { %2133 = vmatprep.subr.mxu0 %v1864_v47 }
 0x384   :  { %2134 = vmatpush1.msra.mxu0 %v1863_v48 }
 0x385   :  { %2135 = vmatprep.subr.mxu0 %v1862_v50  ;;  %v1887_v50 = vld [vmem:[%s7391_s5 + $0x150] sm:$0xff] }
 0x386   :  { %2136 = vmatpush1.msra.mxu0 %v1861_v51 }
 0x387   :  { %2137 = vmatprep.subr.mxu0 %v1860_v54 }
 0x388   :  { %2138 = vmatpush1.msra.mxu0 %v1859_v55  ;;  %v1886_v55 = vld [vmem:[%s7391_s5 + $0x148] sm:$0xff] }
 0x389   :  { %2139 = vmatprep.subr.mxu0 %v1858_v56 }
 0x38a   :  { %2140 = vmatpush1.msra.mxu0 %v1857_v0  ;;  %v1885_v0 = vld [vmem:[%s7391_s5 + $0x140] sm:$0xff] }
 0x38b   :  { %2141 = vmatprep.subr.mxu0 %v1856_v57 }
 0x38c   :  { %2142 = vmatpush1.msra.mxu0 %v1855_v58  ;;  %v1884_v58 = vld [vmem:[%s7391_s5 + $0x138] sm:$0xff] }
 0x38d   :  { %2143 = vmatprep.subr.mxu0 %v1854_v59 }
 0x38e   :  { %2144 = vmatpush1.msra.mxu0 %v1853_v60  ;;  %v1883_v60 = vld [vmem:[%s7391_s5 + $0x130] sm:$0xff] }
 0x38f   :  { %2145 = vmatprep.subr.mxu0 %v1852_v61 }
 0x390   :  { %2146 = vmatpush1.msra.mxu0 %v1851_v62  ;;  %v1882_v62 = vld [vmem:[%s7391_s5 + $0x128] sm:$0xff] }
 0x391   :  { %2147 = vmatprep.subr.mxu0 %v1850_v63 }
 0x392   :  { %2148 = vmatpush1.msra.mxu0 %v1849_v18  ;;  %v1770_v18 = vld [vmem:[%s7390_s4] sm:$0xff] }
 0x393   :  { %2149 = vmatprep.subr.mxu0 %v1848_v1  ;;  %v1881_v1 = vld [vmem:[%s7391_s5 + $0x120] sm:$0xff] }
 0x394   :  { %2150 = vmatpush1.msra.mxu0 %v1847_v2  ;;  %v3993_v2 = vld [vmem:[%s7390_s4 + $0x8] sm:$0xff] }
 0x395   :  { %2151 = vmatprep.subr.mxu0 %v1846_v3  ;;  %v4026_v3 = vld [vmem:[%s7391_s5 + $0x2f8] sm:$0xff] }
 0x396   :  { %2152 = vmatpush1.msra.mxu0 %v1845_v4  ;;  %v4025_v4 = vld [vmem:[%s7391_s5 + $0x2f0] sm:$0xff] }
 0x397   :  { %2153 = vmatprep.subr.mxu0 %v1908_v5  ;;  %v4024_v5 = vld [vmem:[%s7391_s5 + $0x2e8] sm:$0xff] }
 0x398   :  { %2154 = vmatpush2.msra.mxu0 %v1907_v19  ;;  %v4023_v19 = vld [vmem:[%s7391_s5 + $0x2e0] sm:$0xff] }
 0x399   :  { %2155 = vmatprep.subr.mxu0 %v1906_v6  ;;  %v4022_v6 = vld [vmem:[%s7391_s5 + $0x2d8] sm:$0xff] }
 0x39a   :  { %2156 = vmatpush2.msra.mxu0 %v1905_v8  ;;  %v4020_v8 = vld [vmem:[%s7391_s5 + $0x2c8] sm:$0xff] }
 0x39b   :  { %2157 = vmatprep.subr.mxu0 %v1904_v9  ;;  %v4019_v9 = vld [vmem:[%s7391_s5 + $0x2c0] sm:$0xff] }
 0x39c   :  { %2158 = vmatpush2.msra.mxu0 %v1903_v10  ;;  %v4018_v10 = vld [vmem:[%s7391_s5 + $0x2b8] sm:$0xff] }
 0x39d   :  { %2159 = vmatprep.subr.mxu0 %v1902_v11  ;;  %v4017_v11 = vld [vmem:[%s7391_s5 + $0x2b0] sm:$0xff] }
 0x39e   :  { %2160 = vmatpush2.msra.mxu0 %v1901_v14  ;;  %v4014_v14 = vld [vmem:[%s7391_s5 + $0x298] sm:$0xff] }
 0x39f   :  { %2161 = vmatprep.subr.mxu0 %v1900_v15  ;;  %v4013_v15 = vld [vmem:[%s7391_s5 + $0x290] sm:$0xff] }
 0x3a0   :  { %2162 = vmatpush2.msra.mxu0 %v1899_v16  ;;  %v4012_v16 = vld [vmem:[%s7391_s5 + $0x288] sm:$0xff] }
 0x3a1   :  { %2163 = vmatprep.subr.mxu0 %v1898_v17  ;;  %v4011_v17 = vld [vmem:[%s7391_s5 + $0x280] sm:$0xff] }
 0x3a2   :  { %2164 = vmatpush2.msra.mxu0 %v1897_v23  ;;  %v4008_v23 = vld [vmem:[%s7391_s5 + $0x268] sm:$0xff] }
 0x3a3   :  { %2165 = vmatprep.subr.mxu0 %v1896_v25  ;;  %v4007_v25 = vld [vmem:[%s7391_s5 + $0x260] sm:$0xff] }
 0x3a4   :  { %2166 = vmatpush2.msra.mxu0 %v1895_v29  ;;  %v4005_v29 = vld [vmem:[%s7391_s5 + $0x250] sm:$0xff] }
 0x3a5   :  { %2167 = vmatprep.subr.mxu0 %v1894_v30  ;;  %v4004_v30 = vld [vmem:[%s7391_s5 + $0x248] sm:$0xff] }
 0x3a6   :  { %2168 = vmatpush2.msra.mxu0 %v1893_v49  ;;  %v4001_v49 = vld [vmem:[%s7391_s5 + $0x230] sm:$0xff] }
 0x3a7   :  { %2169 = vmatprep.subr.mxu0 %v1892_v35  ;;  %v3997_v35 = vld [vmem:[%s7391_s5 + $0x210] sm:$0xff] }
 0x3a8   :  { %2170 = vmatpush2.msra.mxu0 %v1891_v39  ;;  %v4058_v39 = vld [vmem:[%s7391_s5 + $0x3f8] sm:$0xff] }
 0x3a9   :  { %2171 = vmatprep.subr.mxu0 %v1890_v42  ;;  %v4053_v42 = vld [vmem:[%s7391_s5 + $0x3d0] sm:$0xff] }
 0x3aa   :  { %2172 = vmatpush2.msra.mxu0 %v1889_v45  ;;  %v4049_v45 = vld [vmem:[%s7391_s5 + $0x3b0] sm:$0xff] }
 0x423   :  { %v1525_v7 = vpop.f32.mrf.mxu1 }
 0x424   :  { %v1536_v36 = vadd.f32 %v1525_v7, %v5668_v24  ;;  %v1755_v24 = vrot.slane %v1750_v34, %v5824_v31  ;;  %v4021_v7 = vld [vmem:[%s7391_s5 + $0x2d0] sm:$0xff]  ;;  %v3998_v34 = vld [vmem:[%s7391_s5 + $0x218] sm:$0xff] }
 0x425   :  { %v1527_v12 = vpop.f32.mrf.mxu1 }
 0x426   :  { %v1537_v52 = vadd.f32 %v1527_v12, %v5671_v27  ;;  %v4016_v12 = vld [vmem:[%s7391_s5 + $0x2a8] sm:$0xff] }
 0x428   :  { %v1531_v21 = vpop.f32.mrf.mxu1 }
 0x429   :  { %v1538_v33 = vadd.f32 %v1531_v21, %v5673_v32  ;;  %v4010_v21 = vld [vmem:[%s7391_s5 + $0x278] sm:$0xff] }
 0x42a   :  { %v1533_v53 = vpop.f32.mrf.mxu1 }
 0x42b   :  { %v1539_v27 = vadd.f32 %v1533_v53, %v5676_v37  ;;  %v1888_v37 = vld [vmem:[%s7391_s5 + $0x158] sm:$0xff]  ;;  %v4003_v53 = vld [vmem:[%s7391_s5 + $0x240] sm:$0xff] }
 0x42c   :  { %2173 = vmatprep.subr.mxu0 %v1888_v37  ;;  %v4047_v37 = vld [vmem:[%s7391_s5 + $0x3a0] sm:$0xff] }
 0x42d   :  { %2174 = vmatpush2.msra.mxu0 %v1887_v50  ;;  %v4045_v50 = vld [vmem:[%s7391_s5 + $0x390] sm:$0xff] }
 0x42e   :  { %2175 = vmatprep.subr.mxu0 %v1886_v55  ;;  %v4042_v55 = vld [vmem:[%s7391_s5 + $0x378] sm:$0xff] }
 0x42f   :  { %2176 = vmatpush2.msra.mxu0 %v1885_v0  ;;  %v4040_v0 = vld [vmem:[%s7391_s5 + $0x368] sm:$0xff] }
 0x430   :  { %2177 = vmatprep.subr.mxu0 %v1884_v58  ;;  %v4039_v58 = vld [vmem:[%s7391_s5 + $0x360] sm:$0xff] }
 0x431   :  { %2178 = vmatpush2.msra.mxu0 %v1883_v60  ;;  %v4038_v60 = vld [vmem:[%s7391_s5 + $0x358] sm:$0xff] }
 0x432   :  { %2179 = vmatprep.subr.mxu0 %v1882_v62  ;;  %v4037_v62 = vld [vmem:[%s7391_s5 + $0x350] sm:$0xff] }
 0x433   :  { %2180 = vmatpush2.msra.mxu0 %v1881_v1  ;;  %v4035_v1 = vld [vmem:[%s7391_s5 + $0x340] sm:$0xff] }
 0x437   :  { %v1735_v26 = vpop.f32.mrf.mxu0 }
 0x438   :  { %v1746_v43 = vadd.f32 %v1735_v26, %v1536_v36  ;;  %v4006_v26 = vld [vmem:[%s7391_s5 + $0x258] sm:$0xff]  ;;  %v3996_v36 = vld [vmem:[%s7391_s5 + $0x208] sm:$0xff] }
 0x439   :  { %v1737_v46 = vpop.f32.mrf.mxu0 }
 0x43a   :  { %v1747_v32 = vadd.f32 %v1737_v46, %v1537_v52  ;;  %v1762_v56 = vadd.f32 %v1755_v24, %v1746_v43  ;;  %v4002_v46 = vld [vmem:[%s7391_s5 + $0x238] sm:$0xff]  ;;  %v4000_v52 = vld [vmem:[%s7391_s5 + $0x228] sm:$0xff] }
 0x43b   :  { %v1741_v38 = vpop.f32.mrf.mxu0  ;;  %v4052_v43 = vld [vmem:[%s7391_s5 + $0x3c8] sm:$0xff] }
 0x43c   :  { %v1748_v41 = vadd.f32 %v1741_v38, %v1538_v33  ;;  %v1763_v51 = vadd.f32 %v1759_v40, %v1747_v32  ;;  %v5878_v63 = vmax.f32 %v1762_v56, 0.0  ;;  %v3999_v33 = vld [vmem:[%s7391_s5 + $0x220] sm:$0xff]  ;;  %v4056_v32 = vld [vmem:[%s7391_s5 + $0x3e8] sm:$0xff]  ;;  %v4041_v56 = vld [vmem:[%s7391_s5 + $0x370] sm:$0xff] }
 0x43d   :  { %v1743_v44 = vpop.f32.mrf.mxu0  ;;  %v3995_v38 = vld [vmem:[%s7391_s5 + $0x200] sm:$0xff] }
 0x43e   :  { %v1749_v47 = vadd.f32 %v1743_v44, %v1539_v27  ;;  %v1764_v48 = vadd.f32 %v1755_v24, %v1748_v41  ;;  %v5872_v61 = vmax.f32 %v1763_v51, 0.0  ;;  %v4057_v27 = vld [vmem:[%s7391_s5 + $0x3f0] sm:$0xff]  ;;  %v4054_v41 = vld [vmem:[%s7391_s5 + $0x3d8] sm:$0xff]  ;;  %v4051_v24 = vld [vmem:[%s7391_s5 + $0x3c0] sm:$0xff] }
 0x43f   :  { %v4050_v44 = vld [vmem:[%s7391_s5 + $0x3b8] sm:$0xff]  ;;  %v4044_v51 = vld [vmem:[%s7391_s5 + $0x388] sm:$0xff] }
 0x440   :  { %v1765_v54 = vadd.f32 %v1759_v40, %v1749_v47  ;;  %v5867_v59 = vmax.f32 %v1764_v48, 0.0  ;;  %v4055_v40 = vld [vmem:[%s7391_s5 + $0x3e0] sm:$0xff]  ;;  %v4048_v47 = vld [vmem:[%s7391_s5 + $0x3a8] sm:$0xff]  ;;  %v4046_v48 = vld [vmem:[%s7391_s5 + $0x398] sm:$0xff] }
 0x442   :  { %v5862_v57 = vmax.f32 %v1765_v54, 0.0  ;;  %v4043_v54 = vld [vmem:[%s7391_s5 + $0x380] sm:$0xff] }
 0x444   :  { %1802 = vmatprep.subr.mxu1 %v5862_v57 }
 0x445   :  { %1803 = vmatpush1.msra.mxu1 %v5867_v59 }
 0x446   :  { %1804 = vmatprep.subr.mxu1 %v5872_v61 }
 0x447   :  { %1805 = vmatpush1.msra.mxu1 %v5878_v63 }
 0x448   :  { %3992 = vmatmul.mubr.msk.f32.vlgmr.msra.gmra.mxu1 %vm323_vm1, %v1770_v18  ;;  %1942 = vmatprep.subr.mxu1 %v5862_v57  ;;  %v4036_v18 = vld [vmem:[%s7391_s5 + $0x348] sm:$0xff] }
 0x449   :  { %1943 = vmatpush1.msra.mxu1 %v5867_v59  ;;  %1978 = vmatprep.mubr.f32.mxu1 %v4339_v20 }
 0x44a   :  { %1944 = vmatprep.subr.mxu1 %v5872_v61 }
 0x44b   :  { %1945 = vmatpush1.msra.mxu1 %v5878_v63 }
 0x44c   :  { %3994 = vmatmul.mubr.msk.f32.vlgmr.msra.gmra.mxu1 %vm323_vm1, %v3993_v2  ;;  %2050 = vmatprep.subr.mxu1 %v4026_v3  ;;  %v4034_v2 = vld [vmem:[%s7391_s5 + $0x338] sm:$0xff]  ;;  %v4033_v3 = vld [vmem:[%s7391_s5 + $0x330] sm:$0xff] }
 0x44d   :  { %2051 = vmatpush1.msra.mxu1 %v4025_v4  ;;  %v4032_v4 = vld [vmem:[%s7391_s5 + $0x328] sm:$0xff] }
 0x44e   :  { %2052 = vmatprep.subr.mxu1 %v4024_v5  ;;  %v4031_v5 = vld [vmem:[%s7391_s5 + $0x320] sm:$0xff] }
 0x44f   :  { %2053 = vmatpush1.msra.mxu1 %v4023_v19  ;;  %v4030_v19 = vld [vmem:[%s7391_s5 + $0x318] sm:$0xff] }
 0x450   :  { %2054 = vmatprep.subr.mxu1 %v4022_v6  ;;  %v4029_v6 = vld [vmem:[%s7391_s5 + $0x310] sm:$0xff] }
 0x451   :  { %2055 = vmatpush1.msra.mxu1 %v4021_v7  ;;  %v4028_v7 = vld [vmem:[%s7391_s5 + $0x308] sm:$0xff] }
 0x452   :  { %2056 = vmatprep.subr.mxu1 %v4020_v8  ;;  %v1880_v8 = vld [vmem:[%s7391_s5 + $0x118] sm:$0xff] }
 0x453   :  { %2057 = vmatpush1.msra.mxu1 %v4019_v9  ;;  %v4027_v9 = vld [vmem:[%s7391_s5 + $0x300] sm:$0xff]  ;;  %2181 = vmatprep.subr.mxu0 %v1880_v8 }
 0x454   :  { %2058 = vmatprep.subr.mxu1 %v4018_v10  ;;  %v1879_v10 = vld [vmem:[%s7391_s5 + $0x110] sm:$0xff]  ;;  %v4109_v8 = vld [vmem:[%s7391_s5 + $0x580] sm:$0xff] }
 0x455   :  { %2059 = vmatpush1.msra.mxu1 %v4017_v11  ;;  %2182 = vmatpush2.msra.mxu0 %v1879_v10  ;;  %v1878_v11 = vld [vmem:[%s7391_s5 + $0x108] sm:$0xff]  ;;  %v4107_v10 = vld [vmem:[%s7391_s5 + $0x570] sm:$0xff] }
 0x456   :  { %2060 = vmatprep.subr.mxu1 %v4016_v12  ;;  %2183 = vmatprep.subr.mxu0 %v1878_v11  ;;  %v1877_v12 = vld [vmem:[%s7391_s5 + $0x100] sm:$0xff]  ;;  %v4106_v11 = vld [vmem:[%s7391_s5 + $0x568] sm:$0xff] }
 0x457   :  { %2061 = vmatpush1.msra.mxu1 %v4015_v13  ;;  %2184 = vmatpush2.msra.mxu0 %v1877_v12  ;;  %v4105_v12 = vld [vmem:[%s7391_s5 + $0x560] sm:$0xff] }
 0x458   :  { %2062 = vmatprep.subr.mxu1 %v4014_v14 }
 0x459   :  { %2063 = vmatpush1.msra.mxu1 %v4013_v15 }
 0x45a   :  { %2064 = vmatprep.subr.mxu1 %v4012_v16 }
 0x45b   :  { %2065 = vmatpush1.msra.mxu1 %v4011_v17  ;;  %v4092_v17 = vld [vmem:[%s7391_s5 + $0x4f8] sm:$0xff] }
 0x45c   :  { %2066 = vmatprep.subr.mxu1 %v4010_v21  ;;  %v4059_v21 = vld [vmem:[%s7390_s4 + $0x10] sm:$0xff] }
 0x45d   :  { %2067 = vmatpush1.msra.mxu1 %v4009_v22  ;;  %v4091_v22 = vld [vmem:[%s7391_s5 + $0x4f0] sm:$0xff] }
 0x45e   :  { %2068 = vmatprep.subr.mxu1 %v4008_v23  ;;  %v4090_v23 = vld [vmem:[%s7391_s5 + $0x4e8] sm:$0xff] }
 0x45f   :  { %2069 = vmatpush1.msra.mxu1 %v4007_v25  ;;  %v4089_v25 = vld [vmem:[%s7391_s5 + $0x4e0] sm:$0xff] }
 0x460   :  { %2070 = vmatprep.subr.mxu1 %v4006_v26  ;;  %v4088_v26 = vld [vmem:[%s7391_s5 + $0x4d8] sm:$0xff] }
 0x461   :  { %2071 = vmatpush1.msra.mxu1 %v4005_v29  ;;  %v4087_v29 = vld [vmem:[%s7391_s5 + $0x4d0] sm:$0xff] }
 0x462   :  { %2072 = vmatprep.subr.mxu1 %v4004_v30  ;;  %v4086_v30 = vld [vmem:[%s7391_s5 + $0x4c8] sm:$0xff] }
 0x463   :  { %2073 = vmatpush1.msra.mxu1 %v4003_v53  ;;  %v4085_v53 = vld [vmem:[%s7391_s5 + $0x4c0] sm:$0xff] }
 0x464   :  { %2074 = vmatprep.subr.mxu1 %v4002_v46  ;;  %v4084_v46 = vld [vmem:[%s7391_s5 + $0x4b8] sm:$0xff] }
 0x465   :  { %2075 = vmatpush1.msra.mxu1 %v4001_v49  ;;  %v4083_v49 = vld [vmem:[%s7391_s5 + $0x4b0] sm:$0xff] }
 0x466   :  { %2076 = vmatprep.subr.mxu1 %v4000_v52  ;;  %v4082_v52 = vld [vmem:[%s7391_s5 + $0x4a8] sm:$0xff] }
 0x467   :  { %2077 = vmatpush1.msra.mxu1 %v3999_v33  ;;  %v4081_v33 = vld [vmem:[%s7391_s5 + $0x4a0] sm:$0xff] }
 0x468   :  { %2078 = vmatprep.subr.mxu1 %v3998_v34  ;;  %v4080_v34 = vld [vmem:[%s7391_s5 + $0x498] sm:$0xff] }
 0x469   :  { %2079 = vmatpush1.msra.mxu1 %v3997_v35  ;;  %v4079_v35 = vld [vmem:[%s7391_s5 + $0x490] sm:$0xff] }
 0x46a   :  { %2080 = vmatprep.subr.mxu1 %v3996_v36  ;;  %v4078_v36 = vld [vmem:[%s7391_s5 + $0x488] sm:$0xff] }
 0x46b   :  { %2081 = vmatpush1.msra.mxu1 %v3995_v38  ;;  %v4077_v38 = vld [vmem:[%s7391_s5 + $0x480] sm:$0xff] }
 0x46c   :  { %2082 = vmatprep.subr.mxu1 %v4058_v39  ;;  %v4076_v39 = vld [vmem:[%s7391_s5 + $0x478] sm:$0xff] }
 0x46d   :  { %2083 = vmatpush2.msra.mxu1 %v4057_v27  ;;  %v4075_v27 = vld [vmem:[%s7391_s5 + $0x470] sm:$0xff] }
 0x46e   :  { %2084 = vmatprep.subr.mxu1 %v4056_v32  ;;  %v4074_v32 = vld [vmem:[%s7391_s5 + $0x468] sm:$0xff] }
 0x46f   :  { %2085 = vmatpush2.msra.mxu1 %v4055_v40  ;;  %v4073_v40 = vld [vmem:[%s7391_s5 + $0x460] sm:$0xff] }
 0x470   :  { %2086 = vmatprep.subr.mxu1 %v4054_v41  ;;  %v4072_v41 = vld [vmem:[%s7391_s5 + $0x458] sm:$0xff] }
 0x471   :  { %2087 = vmatpush2.msra.mxu1 %v4053_v42  ;;  %v4071_v42 = vld [vmem:[%s7391_s5 + $0x450] sm:$0xff] }
 0x472   :  { %2088 = vmatprep.subr.mxu1 %v4052_v43  ;;  %v4070_v43 = vld [vmem:[%s7391_s5 + $0x448] sm:$0xff] }
 0x473   :  { %2089 = vmatpush2.msra.mxu1 %v4051_v24  ;;  %v4069_v24 = vld [vmem:[%s7391_s5 + $0x440] sm:$0xff] }
 0x474   :  { %2090 = vmatprep.subr.mxu1 %v4050_v44  ;;  %v4068_v44 = vld [vmem:[%s7391_s5 + $0x438] sm:$0xff] }
 0x475   :  { %2091 = vmatpush2.msra.mxu1 %v4049_v45  ;;  %v4067_v45 = vld [vmem:[%s7391_s5 + $0x430] sm:$0xff] }
 0x476   :  { %2092 = vmatprep.subr.mxu1 %v4048_v47  ;;  %v4066_v47 = vld [vmem:[%s7391_s5 + $0x428] sm:$0xff] }
 0x477   :  { %2093 = vmatpush2.msra.mxu1 %v4047_v37  ;;  %v4065_v37 = vld [vmem:[%s7391_s5 + $0x420] sm:$0xff] }
 0x478   :  { %2094 = vmatprep.subr.mxu1 %v4046_v48  ;;  %v4064_v48 = vld [vmem:[%s7391_s5 + $0x418] sm:$0xff] }
 0x479   :  { %2095 = vmatpush2.msra.mxu1 %v4045_v50  ;;  %v4063_v50 = vld [vmem:[%s7391_s5 + $0x410] sm:$0xff] }
 0x47a   :  { %2096 = vmatprep.subr.mxu1 %v4044_v51  ;;  %v4062_v51 = vld [vmem:[%s7391_s5 + $0x408] sm:$0xff] }
 0x47b   :  { %2097 = vmatpush2.msra.mxu1 %v4043_v54  ;;  %v4061_v54 = vld [vmem:[%s7391_s5 + $0x400] sm:$0xff] }
 0x47c   :  { %2098 = vmatprep.subr.mxu1 %v4042_v55  ;;  %v4124_v55 = vld [vmem:[%s7391_s5 + $0x5f8] sm:$0xff] }
 0x47d   :  { %2099 = vmatpush2.msra.mxu1 %v4041_v56  ;;  %v4123_v56 = vld [vmem:[%s7391_s5 + $0x5f0] sm:$0xff] }
 0x47e   :  { %2100 = vmatprep.subr.mxu1 %v4040_v0  ;;  %v4122_v0 = vld [vmem:[%s7391_s5 + $0x5e8] sm:$0xff] }
 0x47f   :  { %2101 = vmatpush2.msra.mxu1 %v4039_v58  ;;  %v4121_v58 = vld [vmem:[%s7391_s5 + $0x5e0] sm:$0xff] }
 0x480   :  { %2102 = vmatprep.subr.mxu1 %v4038_v60  ;;  %v4120_v60 = vld [vmem:[%s7391_s5 + $0x5d8] sm:$0xff] }
 0x481   :  { %2103 = vmatpush2.msra.mxu1 %v4037_v62  ;;  %v4119_v62 = vld [vmem:[%s7391_s5 + $0x5d0] sm:$0xff] }
 0x482   :  { %2104 = vmatprep.subr.mxu1 %v4036_v18  ;;  %v4118_v18 = vld [vmem:[%s7391_s5 + $0x5c8] sm:$0xff] }
 0x483   :  { %2105 = vmatpush2.msra.mxu1 %v4035_v1  ;;  %v4117_v1 = vld [vmem:[%s7391_s5 + $0x5c0] sm:$0xff] }
 0x484   :  { %2106 = vmatprep.subr.mxu1 %v4034_v2  ;;  %v4116_v2 = vld [vmem:[%s7391_s5 + $0x5b8] sm:$0xff] }
 0x485   :  { %2107 = vmatpush2.msra.mxu1 %v4033_v3  ;;  %v4115_v3 = vld [vmem:[%s7391_s5 + $0x5b0] sm:$0xff] }
 0x486   :  { %2108 = vmatprep.subr.mxu1 %v4032_v4  ;;  %v4114_v4 = vld [vmem:[%s7391_s5 + $0x5a8] sm:$0xff] }
 0x487   :  { %2109 = vmatpush2.msra.mxu1 %v4031_v5  ;;  %v4113_v5 = vld [vmem:[%s7391_s5 + $0x5a0] sm:$0xff] }
 0x488   :  { %2110 = vmatprep.subr.mxu1 %v4030_v19  ;;  %v4112_v19 = vld [vmem:[%s7391_s5 + $0x598] sm:$0xff] }
 0x489   :  { %2111 = vmatpush2.msra.mxu1 %v4029_v6  ;;  %v4111_v6 = vld [vmem:[%s7391_s5 + $0x590] sm:$0xff] }
 0x48a   :  { %2112 = vmatprep.subr.mxu1 %v4028_v7  ;;  %v4110_v7 = vld [vmem:[%s7391_s5 + $0x588] sm:$0xff] }
 0x48b   :  { %2113 = vmatpush2.msra.mxu1 %v4027_v9  ;;  %v4108_v9 = vld [vmem:[%s7391_s5 + $0x578] sm:$0xff] }
 0x48c   :  { %2225 = vmatprep.subr.mxu1 %v5862_v57 }
 0x508   :  { %v1840_v13 = vpop.f32.mrf.mxu1 }
 0x50a   :  { %v1842_v14 = vpop.f32.mrf.mxu1 }
 0x50b   :  { %2185 = vmatprep.mubr.f32.mxu0 %v1842_v14  ;;  %v4103_v14 = vld [vmem:[%s7391_s5 + $0x550] sm:$0xff] }
 0x50c   :  { %v1980_v15 = vpop.f32.mrf.mxu1  ;;  %2186 = vmatmul.mubr.f32.vlgmr.msra.gmra.mxu0 %v1840_v13  ;;  %v4104_v13 = vld [vmem:[%s7391_s5 + $0x558] sm:$0xff] }
 0x50e   :  { %v1982_v16 = vpop.f32.mrf.mxu1 }
 0x50f   :  { %2114 = vmatprep.mubr.f32.mxu1 %v1982_v16  ;;  %v4101_v16 = vld [vmem:[%s7391_s5 + $0x540] sm:$0xff] }
 0x510   :  { %2115 = vmatmul.mubr.f32.vlgmr.msra.gmra.mxu1 %v1980_v15  ;;  %v4102_v15 = vld [vmem:[%s7391_s5 + $0x548] sm:$0xff] }
 0x511   :  { %2226 = vmatpush1.msra.mxu1 %v5867_v59  ;;  %2261 = vmatprep.mubr.f32.mxu1 %v4339_v20 }
 0x512   :  { %2227 = vmatprep.subr.mxu1 %v5872_v61 }
 0x513   :  { %2228 = vmatpush1.msra.mxu1 %v5878_v63 }
 0x514   :  { %2333 = vmatprep.subr.mxu1 %v4092_v17  ;;  %4060 = vmatmul.mubr.msk.f32.vlgmr.msra.gmra.mxu1 %vm323_vm1, %v4059_v21  ;;  %v4100_v17 = vld [vmem:[%s7391_s5 + $0x538] sm:$0xff]  ;;  %v4099_v21 = vld [vmem:[%s7391_s5 + $0x530] sm:$0xff] }
 0x515   :  { %2334 = vmatpush1.msra.mxu1 %v4091_v22  ;;  %v4098_v22 = vld [vmem:[%s7391_s5 + $0x528] sm:$0xff] }
 0x516   :  { %2335 = vmatprep.subr.mxu1 %v4090_v23  ;;  %v4097_v23 = vld [vmem:[%s7391_s5 + $0x520] sm:$0xff] }
 0x517   :  { %2336 = vmatpush1.msra.mxu1 %v4089_v25  ;;  %v4096_v25 = vld [vmem:[%s7391_s5 + $0x518] sm:$0xff] }
 0x518   :  { %2337 = vmatprep.subr.mxu1 %v4088_v26  ;;  %v4095_v26 = vld [vmem:[%s7391_s5 + $0x510] sm:$0xff] }
 0x519   :  { %2338 = vmatpush1.msra.mxu1 %v4087_v29  ;;  %v4094_v29 = vld [vmem:[%s7391_s5 + $0x508] sm:$0xff] }
 0x51a   :  { %2339 = vmatprep.subr.mxu1 %v4086_v30  ;;  %v4093_v30 = vld [vmem:[%s7391_s5 + $0x500] sm:$0xff] }
 0x51b   :  { %2340 = vmatpush1.msra.mxu1 %v4085_v53  ;;  %v4158_v53 = vld [vmem:[%s7391_s5 + $0x6f8] sm:$0xff] }
 0x51c   :  { %2341 = vmatprep.subr.mxu1 %v4084_v46  ;;  %v4157_v46 = vld [vmem:[%s7391_s5 + $0x6f0] sm:$0xff]  ;;  %2547 = vmatprep.subr.mxu0 %v4158_v53 }
 0x51d   :  { %2342 = vmatpush1.msra.mxu1 %v4083_v49  ;;  %v4156_v49 = vld [vmem:[%s7391_s5 + $0x6e8] sm:$0xff]  ;;  %2548 = vmatpush1.msra.mxu0 %v4157_v46 }
 0x51e   :  { %2343 = vmatprep.subr.mxu1 %v4082_v52  ;;  %v4155_v52 = vld [vmem:[%s7391_s5 + $0x6e0] sm:$0xff]  ;;  %2549 = vmatprep.subr.mxu0 %v4156_v49  ;;  %v4125_v49 = vld [vmem:[%s7390_s4 + $0x18] sm:$0xff] }
 0x51f   :  { %2344 = vmatpush1.msra.mxu1 %v4081_v33  ;;  %v4153_v33 = vld [vmem:[%s7391_s5 + $0x6d0] sm:$0xff]  ;;  %2550 = vmatpush1.msra.mxu0 %v4155_v52  ;;  %v4166_v52 = vld [vmem:[%s7391_s5 + $0x738] sm:$0xff] }
 0x520   :  { %2345 = vmatprep.subr.mxu1 %v4080_v34  ;;  %v4152_v34 = vld [vmem:[%s7391_s5 + $0x6c8] sm:$0xff] }
 0x521   :  { %2346 = vmatpush1.msra.mxu1 %v4079_v35  ;;  %v4151_v35 = vld [vmem:[%s7391_s5 + $0x6c0] sm:$0xff] }
 0x522   :  { %2347 = vmatprep.subr.mxu1 %v4078_v36  ;;  %v4150_v36 = vld [vmem:[%s7391_s5 + $0x6b8] sm:$0xff] }
 0x523   :  { %2348 = vmatpush1.msra.mxu1 %v4077_v38  ;;  %v4149_v38 = vld [vmem:[%s7391_s5 + $0x6b0] sm:$0xff] }
 0x524   :  { %2349 = vmatprep.subr.mxu1 %v4076_v39  ;;  %v4148_v39 = vld [vmem:[%s7391_s5 + $0x6a8] sm:$0xff] }
 0x525   :  { %2350 = vmatpush1.msra.mxu1 %v4075_v27  ;;  %v4147_v27 = vld [vmem:[%s7391_s5 + $0x6a0] sm:$0xff] }
 0x526   :  { %2351 = vmatprep.subr.mxu1 %v4074_v32  ;;  %v4146_v32 = vld [vmem:[%s7391_s5 + $0x698] sm:$0xff] }
 0x527   :  { %2352 = vmatpush1.msra.mxu1 %v4073_v40  ;;  %v4145_v40 = vld [vmem:[%s7391_s5 + $0x690] sm:$0xff] }
 0x528   :  { %2353 = vmatprep.subr.mxu1 %v4072_v41  ;;  %v4144_v41 = vld [vmem:[%s7391_s5 + $0x688] sm:$0xff] }
 0x529   :  { %2354 = vmatpush1.msra.mxu1 %v4071_v42  ;;  %v4143_v42 = vld [vmem:[%s7391_s5 + $0x680] sm:$0xff] }
 0x52a   :  { %2355 = vmatprep.subr.mxu1 %v4070_v43  ;;  %v4142_v43 = vld [vmem:[%s7391_s5 + $0x678] sm:$0xff] }
 0x52b   :  { %2356 = vmatpush1.msra.mxu1 %v4069_v24  ;;  %v4141_v24 = vld [vmem:[%s7391_s5 + $0x670] sm:$0xff] }
 0x52c   :  { %2357 = vmatprep.subr.mxu1 %v4068_v44  ;;  %v4140_v44 = vld [vmem:[%s7391_s5 + $0x668] sm:$0xff] }
 0x52d   :  { %2358 = vmatpush1.msra.mxu1 %v4067_v45  ;;  %v4139_v45 = vld [vmem:[%s7391_s5 + $0x660] sm:$0xff] }
 0x52e   :  { %2359 = vmatprep.subr.mxu1 %v4066_v47  ;;  %v4138_v47 = vld [vmem:[%s7391_s5 + $0x658] sm:$0xff] }
 0x52f   :  { %2360 = vmatpush1.msra.mxu1 %v4065_v37  ;;  %v4137_v37 = vld [vmem:[%s7391_s5 + $0x650] sm:$0xff] }
 0x530   :  { %2361 = vmatprep.subr.mxu1 %v4064_v48  ;;  %v4136_v48 = vld [vmem:[%s7391_s5 + $0x648] sm:$0xff] }
 0x531   :  { %2362 = vmatpush1.msra.mxu1 %v4063_v50  ;;  %v4135_v50 = vld [vmem:[%s7391_s5 + $0x640] sm:$0xff] }
 0x532   :  { %2363 = vmatprep.subr.mxu1 %v4062_v51  ;;  %v4134_v51 = vld [vmem:[%s7391_s5 + $0x638] sm:$0xff] }
 0x533   :  { %2364 = vmatpush1.msra.mxu1 %v4061_v54  ;;  %v4133_v54 = vld [vmem:[%s7391_s5 + $0x630] sm:$0xff] }
 0x534   :  { %2365 = vmatprep.subr.mxu1 %v4124_v55  ;;  %v4132_v55 = vld [vmem:[%s7391_s5 + $0x628] sm:$0xff] }
 0x535   :  { %2366 = vmatpush2.msra.mxu1 %v4123_v56  ;;  %v4131_v56 = vld [vmem:[%s7391_s5 + $0x620] sm:$0xff] }
 0x536   :  { %2367 = vmatprep.subr.mxu1 %v4122_v0  ;;  %v4130_v0 = vld [vmem:[%s7391_s5 + $0x618] sm:$0xff] }
 0x537   :  { %2368 = vmatpush2.msra.mxu1 %v4121_v58  ;;  %v4129_v58 = vld [vmem:[%s7391_s5 + $0x610] sm:$0xff] }
 0x538   :  { %2369 = vmatprep.subr.mxu1 %v4120_v60  ;;  %v4128_v60 = vld [vmem:[%s7391_s5 + $0x608] sm:$0xff] }
 0x539   :  { %2370 = vmatpush2.msra.mxu1 %v4119_v62  ;;  %v4127_v62 = vld [vmem:[%s7391_s5 + $0x600] sm:$0xff] }
 0x53a   :  { %2371 = vmatprep.subr.mxu1 %v4118_v18  ;;  %v4190_v18 = vld [vmem:[%s7391_s5 + $0x7f8] sm:$0xff] }
 0x53b   :  { %2372 = vmatpush2.msra.mxu1 %v4117_v1  ;;  %v4189_v1 = vld [vmem:[%s7391_s5 + $0x7f0] sm:$0xff] }
 0x53c   :  { %2373 = vmatprep.subr.mxu1 %v4116_v2  ;;  %v4188_v2 = vld [vmem:[%s7391_s5 + $0x7e8] sm:$0xff] }
 0x53d   :  { %2374 = vmatpush2.msra.mxu1 %v4115_v3  ;;  %v4187_v3 = vld [vmem:[%s7391_s5 + $0x7e0] sm:$0xff] }
 0x53e   :  { %2375 = vmatprep.subr.mxu1 %v4114_v4  ;;  %v4186_v4 = vld [vmem:[%s7391_s5 + $0x7d8] sm:$0xff] }
 0x53f   :  { %2376 = vmatpush2.msra.mxu1 %v4113_v5  ;;  %v4185_v5 = vld [vmem:[%s7391_s5 + $0x7d0] sm:$0xff] }
 0x540   :  { %2377 = vmatprep.subr.mxu1 %v4112_v19  ;;  %v4184_v19 = vld [vmem:[%s7391_s5 + $0x7c8] sm:$0xff] }
 0x541   :  { %2378 = vmatpush2.msra.mxu1 %v4111_v6  ;;  %v4183_v6 = vld [vmem:[%s7391_s5 + $0x7c0] sm:$0xff] }
 0x542   :  { %2379 = vmatprep.subr.mxu1 %v4110_v7  ;;  %v4182_v7 = vld [vmem:[%s7391_s5 + $0x7b8] sm:$0xff] }
 0x543   :  { %2380 = vmatpush2.msra.mxu1 %v4109_v8  ;;  %v4181_v8 = vld [vmem:[%s7391_s5 + $0x7b0] sm:$0xff] }
 0x544   :  { %2381 = vmatprep.subr.mxu1 %v4108_v9  ;;  %v4180_v9 = vld [vmem:[%s7391_s5 + $0x7a8] sm:$0xff] }
 0x545   :  { %2382 = vmatpush2.msra.mxu1 %v4107_v10  ;;  %v4179_v10 = vld [vmem:[%s7391_s5 + $0x7a0] sm:$0xff] }
 0x546   :  { %2383 = vmatprep.subr.mxu1 %v4106_v11  ;;  %v4178_v11 = vld [vmem:[%s7391_s5 + $0x798] sm:$0xff] }
 0x547   :  { %2384 = vmatpush2.msra.mxu1 %v4105_v12  ;;  %v4177_v12 = vld [vmem:[%s7391_s5 + $0x790] sm:$0xff] }
 0x548   :  { %2385 = vmatprep.subr.mxu1 %v4104_v13  ;;  %v4176_v13 = vld [vmem:[%s7391_s5 + $0x788] sm:$0xff] }
 0x549   :  { %2386 = vmatpush2.msra.mxu1 %v4103_v14  ;;  %v4175_v14 = vld [vmem:[%s7391_s5 + $0x780] sm:$0xff] }
 0x54a   :  { %2387 = vmatprep.subr.mxu1 %v4102_v15  ;;  %v4174_v15 = vld [vmem:[%s7391_s5 + $0x778] sm:$0xff] }
 0x54b   :  { %2388 = vmatpush2.msra.mxu1 %v4101_v16  ;;  %v4173_v16 = vld [vmem:[%s7391_s5 + $0x770] sm:$0xff] }
 0x54c   :  { %2389 = vmatprep.subr.mxu1 %v4100_v17  ;;  %v4172_v17 = vld [vmem:[%s7391_s5 + $0x768] sm:$0xff] }
 0x54d   :  { %2390 = vmatpush2.msra.mxu1 %v4099_v21  ;;  %v4171_v21 = vld [vmem:[%s7391_s5 + $0x760] sm:$0xff] }
 0x54e   :  { %2391 = vmatprep.subr.mxu1 %v4098_v22  ;;  %v4170_v22 = vld [vmem:[%s7391_s5 + $0x758] sm:$0xff] }
 0x54f   :  { %2392 = vmatpush2.msra.mxu1 %v4097_v23  ;;  %v4169_v23 = vld [vmem:[%s7391_s5 + $0x750] sm:$0xff] }
 0x550   :  { %2393 = vmatprep.subr.mxu1 %v4096_v25  ;;  %v4168_v25 = vld [vmem:[%s7391_s5 + $0x748] sm:$0xff] }
 0x551   :  { %2394 = vmatpush2.msra.mxu1 %v4095_v26  ;;  %v4167_v26 = vld [vmem:[%s7391_s5 + $0x740] sm:$0xff] }
 0x552   :  { %2395 = vmatprep.subr.mxu1 %v4094_v29 }
 0x553   :  { %2396 = vmatpush2.msra.mxu1 %v4093_v30 }
 0x554   :  { %2439 = vmatprep.subr.mxu1 %v5862_v57  ;;  %v4154_v57 = vld [vmem:[%s7391_s5 + $0x6d8] sm:$0xff] }
 0x555   :  { %2551 = vmatprep.subr.mxu0 %v4154_v57  ;;  %v4162_v57 = vld [vmem:[%s7391_s5 + $0x718] sm:$0xff] }
 0x556   :  { %2552 = vmatpush1.msra.mxu0 %v4153_v33  ;;  %v4161_v33 = vld [vmem:[%s7391_s5 + $0x710] sm:$0xff] }
 0x557   :  { %2553 = vmatprep.subr.mxu0 %v4152_v34  ;;  %v4160_v34 = vld [vmem:[%s7391_s5 + $0x708] sm:$0xff] }
 0x558   :  { %2554 = vmatpush1.msra.mxu0 %v4151_v35  ;;  %v4159_v35 = vld [vmem:[%s7391_s5 + $0x700] sm:$0xff] }
 0x559   :  { %2555 = vmatprep.subr.mxu0 %v4150_v36 }
 0x55a   :  { %2556 = vmatpush1.msra.mxu0 %v4149_v38 }
 0x55b   :  { %2557 = vmatprep.subr.mxu0 %v4148_v39 }
 0x55c   :  { %2558 = vmatpush1.msra.mxu0 %v4147_v27 }
 0x55d   :  { %2559 = vmatprep.subr.mxu0 %v4146_v32 }
 0x55e   :  { %2560 = vmatpush1.msra.mxu0 %v4145_v40 }
 0x55f   :  { %2561 = vmatprep.subr.mxu0 %v4144_v41 }
 0x560   :  { %2562 = vmatpush1.msra.mxu0 %v4143_v42 }
 0x561   :  { %2563 = vmatprep.subr.mxu0 %v4142_v43 }
 0x562   :  { %2564 = vmatpush1.msra.mxu0 %v4141_v24 }
 0x563   :  { %2565 = vmatprep.subr.mxu0 %v4140_v44  ;;  %v2727_v44 = vld [vmem:[%s7394_s8 + $0x78] sm:$0xff] }
 0x564   :  { %2566 = vmatpush1.msra.mxu0 %v4139_v45  ;;  %v2726_v45 = vld [vmem:[%s7394_s8 + $0x70] sm:$0xff] }
 0x565   :  { %2567 = vmatprep.subr.mxu0 %v4138_v47  ;;  %v2725_v47 = vld [vmem:[%s7394_s8 + $0x68] sm:$0xff] }
 0x566   :  { %2568 = vmatpush1.msra.mxu0 %v4137_v37  ;;  %v2724_v37 = vld [vmem:[%s7394_s8 + $0x60] sm:$0xff] }
 0x567   :  { %2569 = vmatprep.subr.mxu0 %v4136_v48  ;;  %v2723_v48 = vld [vmem:[%s7394_s8 + $0x58] sm:$0xff] }
 0x568   :  { %2570 = vmatpush1.msra.mxu0 %v4135_v50  ;;  %v2722_v50 = vld [vmem:[%s7394_s8 + $0x50] sm:$0xff] }
 0x569   :  { %2571 = vmatprep.subr.mxu0 %v4134_v51  ;;  %v2721_v51 = vld [vmem:[%s7394_s8 + $0x48] sm:$0xff] }
 0x56a   :  { %2572 = vmatpush1.msra.mxu0 %v4133_v54  ;;  %v2720_v54 = vld [vmem:[%s7394_s8 + $0x40] sm:$0xff] }
 0x56b   :  { %2573 = vmatprep.subr.mxu0 %v4132_v55  ;;  %v2719_v55 = vld [vmem:[%s7394_s8 + $0x38] sm:$0xff] }
 0x56c   :  { %2574 = vmatpush1.msra.mxu0 %v4131_v56  ;;  %v2718_v56 = vld [vmem:[%s7394_s8 + $0x30] sm:$0xff] }
 0x56d   :  { %2575 = vmatprep.subr.mxu0 %v4130_v0  ;;  %v2717_v0 = vld [vmem:[%s7394_s8 + $0x28] sm:$0xff] }
 0x56e   :  { %2576 = vmatpush1.msra.mxu0 %v4129_v58  ;;  %v2716_v58 = vld [vmem:[%s7394_s8 + $0x20] sm:$0xff] }
 0x56f   :  { %2577 = vmatprep.subr.mxu0 %v4128_v60  ;;  %v2715_v60 = vld [vmem:[%s7394_s8 + $0x18] sm:$0xff] }
 0x570   :  { %2578 = vmatpush1.msra.mxu0 %v4127_v62  ;;  %v2714_v62 = vld [vmem:[%s7394_s8 + $0x10] sm:$0xff] }
 0x571   :  { %2579 = vmatprep.subr.mxu0 %v4190_v18  ;;  %v2713_v18 = vld [vmem:[%s7394_s8 + $0x8] sm:$0xff] }
 0x572   :  { %2580 = vmatpush2.msra.mxu0 %v4189_v1  ;;  %v2712_v1 = vld [vmem:[%s7394_s8] sm:$0xff] }
 0x573   :  { %2581 = vmatprep.subr.mxu0 %v4188_v2  ;;  %v2735_v2 = vld [vmem:[%s7394_s8 + $0xb8] sm:$0xff] }
 0x574   :  { %2582 = vmatpush2.msra.mxu0 %v4187_v3  ;;  %v2734_v3 = vld [vmem:[%s7394_s8 + $0xb0] sm:$0xff] }
 0x575   :  { %2583 = vmatprep.subr.mxu0 %v4186_v4  ;;  %v2733_v4 = vld [vmem:[%s7394_s8 + $0xa8] sm:$0xff] }
 0x576   :  { %2584 = vmatpush2.msra.mxu0 %v4185_v5  ;;  %v2732_v5 = vld [vmem:[%s7394_s8 + $0xa0] sm:$0xff] }
 0x577   :  { %2585 = vmatprep.subr.mxu0 %v4184_v19  ;;  %v2731_v19 = vld [vmem:[%s7394_s8 + $0x98] sm:$0xff] }
 0x578   :  { %2586 = vmatpush2.msra.mxu0 %v4183_v6  ;;  %v2730_v6 = vld [vmem:[%s7394_s8 + $0x90] sm:$0xff] }
 0x579   :  { %2587 = vmatprep.subr.mxu0 %v4182_v7  ;;  %v2620_v7 = vld [vmem:[%s7392_s6] sm:$0x3] }
 0x57a   :  { %2588 = vmatpush2.msra.mxu0 %v4181_v8 }
 0x57b   :  { %2589 = vmatprep.subr.mxu0 %v4180_v9  ;;  %v2625_v9 = vrot.slane %v2620_v7, %v5824_v31 }
 0x57c   :  { %2590 = vmatpush2.msra.mxu0 %v4179_v10 }
 0x57d   :  { %2591 = vmatprep.subr.mxu0 %v4178_v11  ;;  %v2629_v11 = vrot.slane %v2620_v7, %v5819_v28  ;;  %v4244_v7 = vld [vmem:[%s7394_s8 + $0x230] sm:$0xff] }
 0x57e   :  { %2592 = vmatpush2.msra.mxu0 %v4177_v12 }
 0x57f   :  { %2593 = vmatprep.subr.mxu0 %v4176_v13 }
 0x580   :  { %2594 = vmatpush2.msra.mxu0 %v4175_v14 }
 0x581   :  { %2595 = vmatprep.subr.mxu0 %v4174_v15 }
 0x582   :  { %2596 = vmatpush2.msra.mxu0 %v4173_v16 }
 0x583   :  { %2597 = vmatprep.subr.mxu0 %v4172_v17 }
 0x584   :  { %2598 = vmatpush2.msra.mxu0 %v4171_v21  ;;  %v2636_v21 = vld [vmem:[%s7393_s7] sm:$0x3] }
 0x585   :  { %2599 = vmatprep.subr.mxu0 %v4170_v22  ;;  %v4192_v22 = vld [vmem:[%s7393_s7 + $0x2] sm:$0x3] }
 0x586   :  { %2600 = vmatpush2.msra.mxu0 %v4169_v23  ;;  %v4209_v23 = vld [vmem:[%s7394_s8 + $0x138] sm:$0xff] }
 0x587   :  { %2601 = vmatprep.subr.mxu0 %v4168_v25  ;;  %v4208_v25 = vld [vmem:[%s7394_s8 + $0x130] sm:$0xff] }
 0x588   :  { %2602 = vmatpush2.msra.mxu0 %v4167_v26  ;;  %v4207_v26 = vld [vmem:[%s7394_s8 + $0x128] sm:$0xff] }
 0x589   :  { %2603 = vmatprep.subr.mxu0 %v4166_v52  ;;  %v4201_v52 = vld [vmem:[%s7394_s8 + $0xf8] sm:$0xff] }
 0x5cc   :  { %v2187_v36 = vpop.f32.mrf.mxu0 }
 0x5ce   :  { %v2189_v39 = vpop.f32.mrf.mxu0 }
 0x5d0   :  { %v2116_v29 = vpop.f32.mrf.mxu1 }
 0x5d1   :  { %v2188_v38 = vadd.f32 %v2187_v36, %v2116_v29  ;;  %v4206_v29 = vld [vmem:[%s7394_s8 + $0x120] sm:$0xff]  ;;  %v4217_v36 = vld [vmem:[%s7394_s8 + $0x178] sm:$0xff] }
 0x5d2   :  { %v2118_v30 = vpop.f32.mrf.mxu1 }
 0x5d3   :  { %v2190_v32 = vadd.f32 %v2189_v39, %v2118_v30  ;;  %v4205_v30 = vld [vmem:[%s7394_s8 + $0x118] sm:$0xff]  ;;  %v4215_v39 = vld [vmem:[%s7394_s8 + $0x168] sm:$0xff] }
 0x5d4   :  { %v2263_v53 = vpop.f32.mrf.mxu1 }
 0x5d6   :  { %v2265_v46 = vpop.f32.mrf.mxu1 }
 0x5d7   :  { %2397 = vmatprep.mubr.f32.mxu1 %v2265_v46  ;;  %v4203_v46 = vld [vmem:[%s7394_s8 + $0x108] sm:$0xff] }
 0x5d8   :  { %2398 = vmatmul.mubr.f32.vlgmr.msra.gmra.mxu1 %v2263_v53  ;;  %v4204_v53 = vld [vmem:[%s7394_s8 + $0x110] sm:$0xff] }
 0x5d9   :  { %2440 = vmatpush1.msra.mxu1 %v5867_v59  ;;  %2475 = vmatprep.mubr.f32.mxu1 %v4339_v20  ;;  %v4165_v59 = vld [vmem:[%s7391_s5 + $0x730] sm:$0xff] }
 0x5da   :  { %2441 = vmatprep.subr.mxu1 %v5872_v61  ;;  %2604 = vmatpush2.msra.mxu0 %v4165_v59  ;;  %v4164_v61 = vld [vmem:[%s7391_s5 + $0x728] sm:$0xff]  ;;  %v4200_v59 = vld [vmem:[%s7394_s8 + $0xf0] sm:$0xff] }
 0x5db   :  { %2442 = vmatpush1.msra.mxu1 %v5878_v63  ;;  %2605 = vmatprep.subr.mxu0 %v4164_v61  ;;  %v4163_v63 = vld [vmem:[%s7391_s5 + $0x720] sm:$0xff]  ;;  %v4199_v61 = vld [vmem:[%s7394_s8 + $0xe8] sm:$0xff] }
 0x5dc   :  { %4126 = vmatmul.mubr.msk.f32.vlgmr.msra.gmra.mxu1 %vm323_vm1, %v4125_v49  ;;  %2606 = vmatpush2.msra.mxu0 %v4163_v63  ;;  %v4202_v49 = vld [vmem:[%s7394_s8 + $0x100] sm:$0xff] }
 0x5dd   :  { %2705 = vmatprep.mubr.f32.mxu1 %v4339_v20  ;;  %2607 = vmatprep.subr.mxu0 %v4162_v57  ;;  %v4198_v63 = vld [vmem:[%s7394_s8 + $0xe0] sm:$0xff]  ;;  %v4197_v57 = vld [vmem:[%s7394_s8 + $0xd8] sm:$0xff] }
 0x5de   :  { %2608 = vmatpush2.msra.mxu0 %v4161_v33  ;;  %v4196_v33 = vld [vmem:[%s7394_s8 + $0xd0] sm:$0xff] }
 0x5df   :  { %2609 = vmatprep.subr.mxu0 %v4160_v34  ;;  %v4195_v34 = vld [vmem:[%s7394_s8 + $0xc8] sm:$0xff] }
 0x5e0   :  { %2610 = vmatpush2.msra.mxu0 %v4159_v35  ;;  %v4194_v35 = vld [vmem:[%s7394_s8 + $0xc0] sm:$0xff] }
 0x5e1   :  { %2914 = vmatprep.subr.mxu0 %v4339_v20 }
 0x698   :  { %v2399_v27 = vpop.f32.mrf.mxu1 }
 0x699   :  { %v6507_v40 = vadd.f32 %v2399_v27, %v2188_v38  ;;  %v4216_v38 = vld [vmem:[%s7394_s8 + $0x170] sm:$0xff]  ;;  %v4214_v27 = vld [vmem:[%s7394_s8 + $0x160] sm:$0xff] }
 0x69a   :  { %v2401_v41 = vpop.f32.mrf.mxu1 }
 0x69b   :  { %v6509_v42 = vadd.f32 %v2401_v41, %v2190_v32  ;;  %v4213_v32 = vld [vmem:[%s7394_s8 + $0x158] sm:$0xff]  ;;  %v4211_v41 = vld [vmem:[%s7394_s8 + $0x148] sm:$0xff] }
 0x69c   :  { %v2477_v43 = vpop.f32.mrf.mxu1 }
 0x69e   :  { %v2479_v24 = vpop.f32.mrf.mxu1 }
 0x69f   :  { %2611 = vmatprep.mubr.f32.mxu0 %v2479_v24  ;;  %v2728_v24 = vld [vmem:[%s7394_s8 + $0x80] sm:$0xff] }
 0x6a0   :  { %2612 = vmatmul.mubr.f32.vlgmr.msra.gmra.mxu0 %v2477_v43  ;;  %v2729_v43 = vld [vmem:[%s7394_s8 + $0x88] sm:$0xff] }
 0x6a1   :  { %2915 = vmatpush1.msra.mxu0 %v2727_v44 }
 0x6a2   :  { %2916 = vmatprep.subr.mxu0 %v4339_v20 }
 0x6a3   :  { %2917 = vmatpush1.msra.mxu0 %v2726_v45 }
 0x6a4   :  { %2918 = vmatprep.subr.mxu0 %v4339_v20 }
 0x6a5   :  { %2919 = vmatpush1.msra.mxu0 %v2725_v47 }
 0x6a6   :  { %2920 = vmatprep.subr.mxu0 %v4339_v20 }
 0x6a7   :  { %2921 = vmatpush1.msra.mxu0 %v2724_v37 }
 0x6a8   :  { %2922 = vmatprep.subr.mxu0 %v4339_v20 }
 0x6a9   :  { %2923 = vmatpush1.msra.mxu0 %v2723_v48  ;;  %v4220_v48 = vld [vmem:[%s7393_s7 + $0x4] sm:$0x3] }
 0x6aa   :  { %2924 = vmatprep.subr.mxu0 %v4339_v20 }
 0x6ab   :  { %2925 = vmatpush1.msra.mxu0 %v2722_v50  ;;  %v4237_v50 = vld [vmem:[%s7394_s8 + $0x1f8] sm:$0xff] }
 0x6ac   :  { %2926 = vmatprep.subr.mxu0 %v4339_v20 }
 0x6ad   :  { %2927 = vmatpush1.msra.mxu0 %v2721_v51  ;;  %v4236_v51 = vld [vmem:[%s7394_s8 + $0x1f0] sm:$0xff] }
 0x6ae   :  { %2928 = vmatprep.subr.mxu0 %v4339_v20 }
 0x6af   :  { %2929 = vmatpush1.msra.mxu0 %v2720_v54  ;;  %v4235_v54 = vld [vmem:[%s7394_s8 + $0x1e8] sm:$0xff] }
 0x6b0   :  { %2930 = vmatprep.subr.mxu0 %v4339_v20 }
 0x6b1   :  { %2931 = vmatpush1.msra.mxu0 %v2719_v55  ;;  %v4234_v55 = vld [vmem:[%s7394_s8 + $0x1e0] sm:$0xff] }
 0x6b2   :  { %2932 = vmatprep.subr.mxu0 %v4339_v20 }
 0x6b3   :  { %2933 = vmatpush1.msra.mxu0 %v2718_v56  ;;  %v4233_v56 = vld [vmem:[%s7394_s8 + $0x1d8] sm:$0xff] }
 0x6b4   :  { %2934 = vmatprep.subr.mxu0 %v4339_v20 }
 0x6b5   :  { %2935 = vmatpush1.msra.mxu0 %v2717_v0  ;;  %v4232_v0 = vld [vmem:[%s7394_s8 + $0x1d0] sm:$0xff] }
 0x6b6   :  { %2936 = vmatprep.subr.mxu0 %v4339_v20 }
 0x6b7   :  { %2937 = vmatpush1.msra.mxu0 %v2716_v58  ;;  %v4231_v58 = vld [vmem:[%s7394_s8 + $0x1c8] sm:$0xff] }
 0x6b8   :  { %2938 = vmatprep.subr.mxu0 %v4339_v20 }
 0x6b9   :  { %2939 = vmatpush1.msra.mxu0 %v2715_v60  ;;  %v4230_v60 = vld [vmem:[%s7394_s8 + $0x1c0] sm:$0xff] }
 0x6ba   :  { %2940 = vmatprep.subr.mxu0 %v4339_v20 }
 0x6bb   :  { %2941 = vmatpush1.msra.mxu0 %v2714_v62  ;;  %v4229_v62 = vld [vmem:[%s7394_s8 + $0x1b8] sm:$0xff] }
 0x6bc   :  { %2942 = vmatprep.subr.mxu0 %v4339_v20 }
 0x6bd   :  { %2943 = vmatpush1.msra.mxu0 %v2713_v18  ;;  %v4228_v18 = vld [vmem:[%s7394_s8 + $0x1b0] sm:$0xff] }
 0x6be   :  { %2944 = vmatprep.subr.mxu0 %v4339_v20 }
 0x6bf   :  { %2945 = vmatpush1.msra.mxu0 %v2712_v1  ;;  %v4227_v1 = vld [vmem:[%s7394_s8 + $0x1a8] sm:$0xff] }
 0x6c0   :  { %2962 = vmatprep.subr.mxu0 %v4339_v20 }
 0x6c1   :  { %2963 = vmatpush2.msra.mxu0 %v2735_v2  ;;  %v4226_v2 = vld [vmem:[%s7394_s8 + $0x1a0] sm:$0xff] }
 0x6c2   :  { %2964 = vmatprep.subr.mxu0 %v4339_v20 }
 0x6c3   :  { %2965 = vmatpush2.msra.mxu0 %v2734_v3  ;;  %v4225_v3 = vld [vmem:[%s7394_s8 + $0x198] sm:$0xff] }
 0x6c4   :  { %2966 = vmatprep.subr.mxu0 %v4339_v20 }
 0x6c5   :  { %2967 = vmatpush2.msra.mxu0 %v2733_v4  ;;  %v4224_v4 = vld [vmem:[%s7394_s8 + $0x190] sm:$0xff] }
 0x6c6   :  { %2968 = vmatprep.subr.mxu0 %v4339_v20 }
 0x6c7   :  { %2969 = vmatpush2.msra.mxu0 %v2732_v5  ;;  %v4223_v5 = vld [vmem:[%s7394_s8 + $0x188] sm:$0xff] }
 0x6c8   :  { %2970 = vmatprep.subr.mxu0 %v4339_v20 }
 0x6c9   :  { %2971 = vmatpush2.msra.mxu0 %v2731_v19  ;;  %v4222_v19 = vld [vmem:[%s7394_s8 + $0x180] sm:$0xff] }
 0x6ca   :  { %2972 = vmatprep.subr.mxu0 %v4339_v20 }
 0x6cb   :  { %2973 = vmatpush2.msra.mxu0 %v2730_v6  ;;  %v4245_v6 = vld [vmem:[%s7394_s8 + $0x238] sm:$0xff] }
 0x6cc   :  { %2974 = vmatprep.subr.mxu0 %v4339_v20 }
 0x6cd   :  { %2975 = vmatpush2.msra.mxu0 %v2729_v43  ;;  %v3299_v43 = vld [vmem:[%s7398_s12 + $0xe0] sm:$0xff] }
 0x6ce   :  { %2976 = vmatprep.subr.mxu0 %v4339_v20 }
 0x6cf   :  { %2977 = vmatpush2.msra.mxu0 %v2728_v24  ;;  %v3298_v24 = vld [vmem:[%s7398_s12 + $0xd8] sm:$0xff] }
 0x760   :  { %v2613_v8 = vpop.f32.mrf.mxu0 }
 0x761   :  { %v2618_v10 = vadd.f32 %v2613_v8, %v6507_v40  ;;  %v4212_v40 = vld [vmem:[%s7394_s8 + $0x150] sm:$0xff]  ;;  %v4243_v8 = vld [vmem:[%s7394_s8 + $0x228] sm:$0xff] }
 0x762   :  { %v2615_v12 = vpop.f32.mrf.mxu0 }
 0x763   :  { %v2619_v13 = vadd.f32 %v2615_v12, %v6509_v42  ;;  %v2632_v14 = vadd.f32 %v2625_v9, %v2618_v10  ;;  %v4210_v42 = vld [vmem:[%s7394_s8 + $0x140] sm:$0xff]  ;;  %v4241_v10 = vld [vmem:[%s7394_s8 + $0x218] sm:$0xff]  ;;  %v4239_v12 = vld [vmem:[%s7394_s8 + $0x208] sm:$0xff] }
 0x764   :  { %v4242_v9 = vld [vmem:[%s7394_s8 + $0x220] sm:$0xff] }
 0x765   :  { %v2633_v15 = vadd.f32 %v2629_v11, %v2619_v13  ;;  %v6608_v17 = vmax.f32 %v2632_v14, 0.0  ;;  %v4240_v11 = vld [vmem:[%s7394_s8 + $0x210] sm:$0xff]  ;;  %v4238_v13 = vld [vmem:[%s7394_s8 + $0x200] sm:$0xff]  ;;  %v3182_v14 = vld [vmem:[%s7396_s10 + $0x78] sm:$0xff] }
 0x766   :  { %3214 = vmatprep.subr.mxu0 %v3182_v14  ;;  %v3332_v14 = vld [vmem:[%s7398_s12 + $0x1e8] sm:$0xff] }
 0x767   :  { %v6606_v16 = vmax.f32 %v2633_v15, 0.0  ;;  %v3181_v15 = vld [vmem:[%s7396_s10 + $0x70] sm:$0xff] }
 0x769   :  { %2671 = vmatprep.subr.mxu1 %v6606_v16 }
 0x76a   :  { %2672 = vmatpush1.msra.mxu1 %v6608_v17 }
 0x76b   :  { %4191 = vmatmul.mubr.msk.f32.vlgmr.msra.gmra.mxu1 %vm2637_vm2, %v2636_v21  ;;  %2771 = vmatprep.subr.mxu1 %v6606_v16  ;;  %v3177_v21 = vld [vmem:[%s7396_s10 + $0x50] sm:$0xff] }
 0x76c   :  { %2772 = vmatpush1.msra.mxu1 %v6608_v17  ;;  %2805 = vmatprep.mubr.f32.mxu1 %v4339_v20 }
 0x76d   :  { %2841 = vmatprep.subr.mxu1 %v4339_v20 }
 0x76f   :  { %4193 = vmatmul.mubr.msk.f32.vlgmr.msra.gmra.mxu1 %vm2637_vm2, %v4192_v22  ;;  %v3176_v22 = vld [vmem:[%s7396_s10 + $0x48] sm:$0xff] }
 0x770   :  { %2842 = vmatpush1.msra.mxu1 %v4209_v23  ;;  %v3175_v23 = vld [vmem:[%s7396_s10 + $0x40] sm:$0xff] }
 0x771   :  { %2843 = vmatprep.subr.mxu1 %v4339_v20 }
 0x772   :  { %2844 = vmatpush1.msra.mxu1 %v4208_v25  ;;  %v3174_v25 = vld [vmem:[%s7396_s10 + $0x38] sm:$0xff] }
 0x773   :  { %2845 = vmatprep.subr.mxu1 %v4339_v20 }
 0x774   :  { %2846 = vmatpush1.msra.mxu1 %v4207_v26  ;;  %v3173_v26 = vld [vmem:[%s7396_s10 + $0x30] sm:$0xff] }
 0x775   :  { %2847 = vmatprep.subr.mxu1 %v4339_v20 }
 0x776   :  { %2848 = vmatpush1.msra.mxu1 %v4206_v29  ;;  %v3172_v29 = vld [vmem:[%s7396_s10 + $0x28] sm:$0xff] }
 0x777   :  { %2849 = vmatprep.subr.mxu1 %v4339_v20 }
 0x778   :  { %2850 = vmatpush1.msra.mxu1 %v4205_v30 }
 0x779   :  { %2851 = vmatprep.subr.mxu1 %v4339_v20 }
 0x77a   :  { %2852 = vmatpush1.msra.mxu1 %v4204_v53 }
 0x77b   :  { %2853 = vmatprep.subr.mxu1 %v4339_v20 }
 0x77c   :  { %2854 = vmatpush1.msra.mxu1 %v4203_v46 }
 0x77d   :  { %2855 = vmatprep.subr.mxu1 %v4339_v20 }
 0x77e   :  { %2856 = vmatpush1.msra.mxu1 %v4202_v49 }
 0x77f   :  { %2857 = vmatprep.subr.mxu1 %v4339_v20 }
 0x780   :  { %2858 = vmatpush1.msra.mxu1 %v4201_v52 }
 0x781   :  { %2859 = vmatprep.subr.mxu1 %v4339_v20 }
 0x782   :  { %2860 = vmatpush1.msra.mxu1 %v4200_v59 }
 0x783   :  { %2861 = vmatprep.subr.mxu1 %v4339_v20 }
 0x784   :  { %2862 = vmatpush1.msra.mxu1 %v4199_v61 }
 0x785   :  { %2863 = vmatprep.subr.mxu1 %v4339_v20 }
 0x786   :  { %2864 = vmatpush1.msra.mxu1 %v4198_v63  ;;  %v3171_v63 = vld [vmem:[%s7396_s10 + $0x20] sm:$0xff] }
 0x787   :  { %2865 = vmatprep.subr.mxu1 %v4339_v20 }
 0x788   :  { %2866 = vmatpush1.msra.mxu1 %v4197_v57  ;;  %v3170_v57 = vld [vmem:[%s7396_s10 + $0x18] sm:$0xff] }
 0x789   :  { %2867 = vmatprep.subr.mxu1 %v4339_v20 }
 0x78a   :  { %2868 = vmatpush1.msra.mxu1 %v4196_v33  ;;  %v3169_v33 = vld [vmem:[%s7396_s10 + $0x10] sm:$0xff] }
 0x78b   :  { %2869 = vmatprep.subr.mxu1 %v4339_v20 }
 0x78c   :  { %2870 = vmatpush1.msra.mxu1 %v4195_v34  ;;  %v3168_v34 = vld [vmem:[%s7396_s10 + $0x8] sm:$0xff] }
 0x78d   :  { %2871 = vmatprep.subr.mxu1 %v4339_v20 }
 0x78e   :  { %2872 = vmatpush1.msra.mxu1 %v4194_v35  ;;  %v3167_v35 = vld [vmem:[%s7396_s10] sm:$0xff] }
 0x78f   :  { %2889 = vmatprep.subr.mxu1 %v4339_v20 }
 0x790   :  { %2890 = vmatpush2.msra.mxu1 %v4217_v36  ;;  %v3302_v36 = vld [vmem:[%s7398_s12 + $0xf8] sm:$0xff] }
 0x791   :  { %2891 = vmatprep.subr.mxu1 %v4339_v20 }
 0x792   :  { %2892 = vmatpush2.msra.mxu1 %v4216_v38 }
 0x793   :  { %2893 = vmatprep.subr.mxu1 %v4339_v20 }
 0x794   :  { %2894 = vmatpush2.msra.mxu1 %v4215_v39  ;;  %v4247_v39 = vld [vmem:[%s7395_s9] ss:$0 sm:$0xff] }
 0x795   :  { %2895 = vmatprep.subr.mxu1 %v4339_v20 }
 0x796   :  { %2896 = vmatpush2.msra.mxu1 %v4214_v27 }
 0x797   :  { %2897 = vmatprep.subr.mxu1 %v4339_v20 }
 0x798   :  { %2898 = vmatpush2.msra.mxu1 %v4213_v32 }
 0x799   :  { %2899 = vmatprep.subr.mxu1 %v4339_v20 }
 0x79a   :  { %2900 = vmatpush2.msra.mxu1 %v4212_v40 }
 0x79b   :  { %2901 = vmatprep.subr.mxu1 %v4339_v20 }
 0x79c   :  { %2902 = vmatpush2.msra.mxu1 %v4211_v41  ;;  %v3301_v41 = vld [vmem:[%s7398_s12 + $0xf0] sm:$0xff] }
 0x79d   :  { %2903 = vmatprep.subr.mxu1 %v4339_v20 }
 0x79e   :  { %2904 = vmatpush2.msra.mxu1 %v4210_v42  ;;  %v3300_v42 = vld [vmem:[%s7398_s12 + $0xe8] sm:$0xff] }
 0x79f   :  { %3019 = vmatprep.subr.mxu1 %v6606_v16  ;;  %v3180_v16 = vld [vmem:[%s7396_s10 + $0x68] sm:$0xff] }
 0x82b   :  { %v2707_v44 = vpop.f32.mrf.mxu1 }
 0x82d   :  { %v2709_v45 = vpop.f32.mrf.mxu1 }
 0x82e   :  { %4219 = vmatprep.mubr.msk.f32.mxu0 %vm2837_vm3, %v2709_v45  ;;  %v3296_v45 = vld [vmem:[%s7398_s12 + $0xc8] sm:$0xff] }
 0x82f   :  { %v2807_v47 = vpop.f32.mrf.mxu1  ;;  %2979 = vmatmul.mubr.f32.vlgmr.msra.gmra.mxu0 %v2707_v44  ;;  %v3297_v44 = vld [vmem:[%s7398_s12 + $0xd0] sm:$0xff] }
 0x830   :  { %3262 = vmatprep.mubr.f32.mxu0 %v4339_v20  ;;  %3215 = vmatpush1.msra.mxu0 %v3181_v15  ;;  %v3331_v15 = vld [vmem:[%s7398_s12 + $0x1e0] sm:$0xff] }
 0x831   :  { %v2809_v37 = vpop.f32.mrf.mxu1  ;;  %3216 = vmatprep.subr.mxu0 %v3180_v16  ;;  %v3330_v16 = vld [vmem:[%s7398_s12 + $0x1d8] sm:$0xff] }
 0x832   :  { %4218 = vmatprep.mubr.msk.f32.mxu1 %vm2837_vm3, %v2809_v37  ;;  %v3294_v37 = vld [vmem:[%s7398_s12 + $0xb8] sm:$0xff] }
 0x833   :  { %2906 = vmatmul.mubr.f32.vlgmr.msra.gmra.mxu1 %v2807_v47  ;;  %v3295_v47 = vld [vmem:[%s7398_s12 + $0xc0] sm:$0xff] }
 0x834   :  { %3020 = vmatpush1.msra.mxu1 %v6608_v17  ;;  %3053 = vmatprep.mubr.f32.mxu1 %v4339_v20  ;;  %v3179_v17 = vld [vmem:[%s7396_s10 + $0x60] sm:$0xff] }
 0x835   :  { %3088 = vmatprep.subr.mxu1 %v4339_v20  ;;  %3217 = vmatpush1.msra.mxu0 %v3179_v17  ;;  %v3329_v17 = vld [vmem:[%s7398_s12 + $0x1d0] sm:$0xff] }
 0x837   :  { %4221 = vmatmul.mubr.msk.f32.vlgmr.msra.gmra.mxu1 %vm2637_vm2, %v4220_v48  ;;  %v3293_v48 = vld [vmem:[%s7398_s12 + $0xb0] sm:$0xff] }
 0x838   :  { %3089 = vmatpush1.msra.mxu1 %v4237_v50  ;;  %v3292_v50 = vld [vmem:[%s7398_s12 + $0xa8] sm:$0xff] }
 0x839   :  { %3090 = vmatprep.subr.mxu1 %v4339_v20 }
 0x83a   :  { %3091 = vmatpush1.msra.mxu1 %v4236_v51  ;;  %v3291_v51 = vld [vmem:[%s7398_s12 + $0xa0] sm:$0xff] }
 0x83b   :  { %3092 = vmatprep.subr.mxu1 %v4339_v20 }
 0x83c   :  { %3093 = vmatpush1.msra.mxu1 %v4235_v54  ;;  %v3290_v54 = vld [vmem:[%s7398_s12 + $0x98] sm:$0xff] }
 0x83d   :  { %3094 = vmatprep.subr.mxu1 %v4339_v20 }
 0x83e   :  { %3095 = vmatpush1.msra.mxu1 %v4234_v55  ;;  %v3289_v55 = vld [vmem:[%s7398_s12 + $0x90] sm:$0xff] }
 0x83f   :  { %3096 = vmatprep.subr.mxu1 %v4339_v20 }
 0x840   :  { %3097 = vmatpush1.msra.mxu1 %v4233_v56  ;;  %v3288_v56 = vld [vmem:[%s7398_s12 + $0x88] sm:$0xff] }
 0x841   :  { %3098 = vmatprep.subr.mxu1 %v4339_v20 }
 0x842   :  { %3099 = vmatpush1.msra.mxu1 %v4232_v0  ;;  %v3287_v0 = vld [vmem:[%s7398_s12 + $0x80] sm:$0xff] }
 0x843   :  { %3100 = vmatprep.subr.mxu1 %v4339_v20 }
 0x844   :  { %3101 = vmatpush1.msra.mxu1 %v4231_v58  ;;  %v3286_v58 = vld [vmem:[%s7398_s12 + $0x78] sm:$0xff] }
 0x845   :  { %3102 = vmatprep.subr.mxu1 %v4339_v20 }
 0x846   :  { %3103 = vmatpush1.msra.mxu1 %v4230_v60  ;;  %v3285_v60 = vld [vmem:[%s7398_s12 + $0x70] sm:$0xff] }
 0x847   :  { %3104 = vmatprep.subr.mxu1 %v4339_v20 }
 0x848   :  { %3105 = vmatpush1.msra.mxu1 %v4229_v62  ;;  %v3284_v62 = vld [vmem:[%s7398_s12 + $0x68] sm:$0xff] }
 0x849   :  { %3106 = vmatprep.subr.mxu1 %v4339_v20 }
 0x84a   :  { %3107 = vmatpush1.msra.mxu1 %v4228_v18  ;;  %v3283_v18 = vld [vmem:[%s7398_s12 + $0x60] sm:$0xff] }
 0x84b   :  { %3108 = vmatprep.subr.mxu1 %v4339_v20 }
 0x84c   :  { %3109 = vmatpush1.msra.mxu1 %v4227_v1  ;;  %v3282_v1 = vld [vmem:[%s7398_s12 + $0x58] sm:$0xff] }
 0x84d   :  { %3110 = vmatprep.subr.mxu1 %v4339_v20 }
 0x84e   :  { %3111 = vmatpush1.msra.mxu1 %v4226_v2  ;;  %v3281_v2 = vld [vmem:[%s7398_s12 + $0x50] sm:$0xff] }
 0x84f   :  { %3112 = vmatprep.subr.mxu1 %v4339_v20 }
 0x850   :  { %3113 = vmatpush1.msra.mxu1 %v4225_v3  ;;  %v3280_v3 = vld [vmem:[%s7398_s12 + $0x48] sm:$0xff] }
 0x851   :  { %3114 = vmatprep.subr.mxu1 %v4339_v20 }
 0x852   :  { %3115 = vmatpush1.msra.mxu1 %v4224_v4  ;;  %v3279_v4 = vld [vmem:[%s7398_s12 + $0x40] sm:$0xff] }
 0x853   :  { %3116 = vmatprep.subr.mxu1 %v4339_v20 }
 0x854   :  { %3117 = vmatpush1.msra.mxu1 %v4223_v5  ;;  %v3278_v5 = vld [vmem:[%s7398_s12 + $0x38] sm:$0xff] }
 0x855   :  { %3118 = vmatprep.subr.mxu1 %v4339_v20 }
 0x856   :  { %3119 = vmatpush1.msra.mxu1 %v4222_v19  ;;  %v3277_v19 = vld [vmem:[%s7398_s12 + $0x30] sm:$0xff] }
 0x857   :  { %3136 = vmatprep.subr.mxu1 %v4339_v20 }
 0x858   :  { %3137 = vmatpush2.msra.mxu1 %v4245_v6  ;;  %v3276_v6 = vld [vmem:[%s7398_s12 + $0x28] sm:$0xff] }
 0x859   :  { %3138 = vmatprep.subr.mxu1 %v4339_v20 }
 0x85a   :  { %3139 = vmatpush2.msra.mxu1 %v4244_v7  ;;  %v3275_v7 = vld [vmem:[%s7398_s12 + $0x20] sm:$0xff] }
 0x85b   :  { %3140 = vmatprep.subr.mxu1 %v4339_v20 }
 0x85c   :  { %3141 = vmatpush2.msra.mxu1 %v4243_v8  ;;  %v3274_v8 = vld [vmem:[%s7398_s12 + $0x18] sm:$0xff] }
 0x85d   :  { %3142 = vmatprep.subr.mxu1 %v4339_v20 }
 0x85e   :  { %3143 = vmatpush2.msra.mxu1 %v4242_v9  ;;  %v3273_v9 = vld [vmem:[%s7398_s12 + $0x10] sm:$0xff] }
 0x85f   :  { %3144 = vmatprep.subr.mxu1 %v4339_v20 }
 0x860   :  { %3145 = vmatpush2.msra.mxu1 %v4241_v10  ;;  %v3272_v10 = vld [vmem:[%s7398_s12 + $0x8] sm:$0xff] }
 0x861   :  { %3146 = vmatprep.subr.mxu1 %v4339_v20 }
 0x862   :  { %3147 = vmatpush2.msra.mxu1 %v4240_v11  ;;  %v3271_v11 = vld [vmem:[%s7398_s12] sm:$0xff] }
 0x863   :  { %3148 = vmatprep.subr.mxu1 %v4339_v20 }
 0x864   :  { %3149 = vmatpush2.msra.mxu1 %v4239_v12  ;;  %v3334_v12 = vld [vmem:[%s7398_s12 + $0x1f8] sm:$0xff] }
 0x865   :  { %3150 = vmatprep.subr.mxu1 %v4339_v20  ;;  %v3178_v20 = vld [vmem:[%s7396_s10 + $0x58] sm:$0xff] }
 0x866   :  { %3151 = vmatpush2.msra.mxu1 %v4238_v13  ;;  %3218 = vmatprep.subr.mxu0 %v3178_v20  ;;  %v3333_v13 = vld [vmem:[%s7398_s12 + $0x1f0] sm:$0xff]  ;;  %v3328_v20 = vld [vmem:[%s7398_s12 + $0x1c8] sm:$0xff] }
 0x867   :  { %3219 = vmatpush1.msra.mxu0 %v3177_v21  ;;  %v3327_v21 = vld [vmem:[%s7398_s12 + $0x1c0] sm:$0xff] }
 0x868   :  { %3220 = vmatprep.subr.mxu0 %v3176_v22  ;;  %v3326_v22 = vld [vmem:[%s7398_s12 + $0x1b8] sm:$0xff] }
 0x869   :  { %3221 = vmatpush1.msra.mxu0 %v3175_v23  ;;  %v3325_v23 = vld [vmem:[%s7398_s12 + $0x1b0] sm:$0xff] }
 0x86a   :  { %3222 = vmatprep.subr.mxu0 %v3174_v25  ;;  %v3324_v25 = vld [vmem:[%s7398_s12 + $0x1a8] sm:$0xff] }
 0x86b   :  { %3223 = vmatpush1.msra.mxu0 %v3173_v26  ;;  %v3323_v26 = vld [vmem:[%s7398_s12 + $0x1a0] sm:$0xff] }
 0x86c   :  { %3224 = vmatprep.subr.mxu0 %v3172_v29  ;;  %v3322_v29 = vld [vmem:[%s7398_s12 + $0x198] sm:$0xff] }
 0x86d   :  { %3225 = vmatpush1.msra.mxu0 %v3171_v63  ;;  %v3314_v63 = vld [vmem:[%s7398_s12 + $0x158] sm:$0xff] }
 0x86e   :  { %3226 = vmatprep.subr.mxu0 %v3170_v57  ;;  %v3313_v57 = vld [vmem:[%s7398_s12 + $0x150] sm:$0xff] }
 0x86f   :  { %3227 = vmatpush1.msra.mxu0 %v3169_v33  ;;  %v3312_v33 = vld [vmem:[%s7398_s12 + $0x148] sm:$0xff] }
 0x870   :  { %3228 = vmatprep.subr.mxu0 %v3168_v34  ;;  %v3311_v34 = vld [vmem:[%s7398_s12 + $0x140] sm:$0xff] }
 0x871   :  { %3229 = vmatpush1.msra.mxu0 %v3167_v35  ;;  %v3310_v35 = vld [vmem:[%s7398_s12 + $0x138] sm:$0xff] }
 0x872   :  { %3347 = vmatprep.subr.mxu0 %v3302_v36  ;;  %v3309_v36 = vld [vmem:[%s7398_s12 + $0x130] sm:$0xff] }
 0x8ef   :  { %v2980_v30 = vpop.f32.mrf.mxu0 }
 0x8f1   :  { %v2982_v53 = vpop.f32.mrf.mxu0 }
 0x8f2   :  { %v3320_v53 = vld [vmem:[%s7398_s12 + $0x188] sm:$0xff] }
 0x8f3   :  { %v2907_v46 = vpop.f32.mrf.mxu1 }
 0x8f4   :  { %v2981_v49 = vadd.f32 %v2980_v30, %v2907_v46  ;;  %v3321_v30 = vld [vmem:[%s7398_s12 + $0x190] sm:$0xff]  ;;  %v3319_v46 = vld [vmem:[%s7398_s12 + $0x180] sm:$0xff] }
 0x8f5   :  { %v2909_v52 = vpop.f32.mrf.mxu1 }
 0x8f6   :  { %v3317_v52 = vld [vmem:[%s7398_s12 + $0x170] sm:$0xff] }
 0x8f7   :  { %v3055_v59 = vpop.f32.mrf.mxu1 }
 0x8f9   :  { %v3057_v61 = vpop.f32.mrf.mxu1 }
 0x8fa   :  { %4246 = vmatprep.mubr.msk.f32.mxu1 %vm2837_vm3, %v3057_v61  ;;  %v3315_v61 = vld [vmem:[%s7398_s12 + $0x160] sm:$0xff] }
 0x8fb   :  { %3153 = vmatmul.mubr.f32.vlgmr.msra.gmra.mxu1 %v3055_v59  ;;  %v3316_v59 = vld [vmem:[%s7398_s12 + $0x168] sm:$0xff] }
 0x9bb   :  { %v3154_v38 = vpop.f32.mrf.mxu1 }
 0x9bc   :  { %v3158_v27 = vadd.f32 %v3154_v38, %v2981_v49  ;;  %v3318_v49 = vld [vmem:[%s7398_s12 + $0x178] sm:$0xff]  ;;  %v3308_v38 = vld [vmem:[%s7398_s12 + $0x128] sm:$0xff] }
 0x9bd   :  { %v3156_v32 = vpop.f32.mrf.mxu1 }
 0x9be   :  { %v3166_v40 = vadd.f32 %v4247_v39, %v3158_v27  ;;  %v3307_v39 = vld [vmem:[%s7398_s12 + $0x120] sm:$0xff]  ;;  %v3306_v27 = vld [vmem:[%s7398_s12 + $0x118] sm:$0xff]  ;;  %v3305_v32 = vld [vmem:[%s7398_s12 + $0x110] sm:$0xff] }
 0x9c0   :  { %4248 = vmatmul.mubr.msk.f32.vlgmr.msra.gmra.mxu0 %vm2837_vm3, %v3166_v40  ;;  %v3304_v40 = vld [vmem:[%s7398_s12 + $0x108] sm:$0xff] }
 0x9c1   :  { %3348 = vmatpush1.msra.mxu0 %v3301_v41  ;;  %v3303_v41 = vld [vmem:[%s7398_s12 + $0x100] sm:$0xff] }
 0x9c2   :  { %3349 = vmatprep.subr.mxu0 %v3300_v42  ;;  %v3451_v42 = vld [vmem:[%s7400_s14 + $0xf8] sm:$0xff] }
 0x9c3   :  { %3350 = vmatpush1.msra.mxu0 %v3299_v43  ;;  %v3450_v43 = vld [vmem:[%s7400_s14 + $0xf0] sm:$0xff]  ;;  %3496 = vmatprep.subr.mxu1 %v3451_v42 }
 0x9c4   :  { %3351 = vmatprep.subr.mxu0 %v3298_v24  ;;  %v3449_v24 = vld [vmem:[%s7400_s14 + $0xe8] sm:$0xff]  ;;  %3497 = vmatpush1.msra.mxu1 %v3450_v43  ;;  %v3462_v42 = vld [vmem:[%s7400_s14 + $0x150] sm:$0xff] }
 0x9c5   :  { %3352 = vmatpush1.msra.mxu0 %v3297_v44  ;;  %v3448_v44 = vld [vmem:[%s7400_s14 + $0xe0] sm:$0xff]  ;;  %3498 = vmatprep.subr.mxu1 %v3449_v24  ;;  %v3461_v43 = vld [vmem:[%s7400_s14 + $0x148] sm:$0xff] }
 0x9c6   :  { %3353 = vmatprep.subr.mxu0 %v3296_v45  ;;  %v3447_v45 = vld [vmem:[%s7400_s14 + $0xd8] sm:$0xff]  ;;  %3499 = vmatpush1.msra.mxu1 %v3448_v44  ;;  %v3460_v24 = vld [vmem:[%s7400_s14 + $0x140] sm:$0xff] }
 0x9c7   :  { %3354 = vmatpush1.msra.mxu0 %v3295_v47  ;;  %v3446_v47 = vld [vmem:[%s7400_s14 + $0xd0] sm:$0xff]  ;;  %3500 = vmatprep.subr.mxu1 %v3447_v45  ;;  %v3459_v44 = vld [vmem:[%s7400_s14 + $0x138] sm:$0xff] }
 0x9c8   :  { %3355 = vmatprep.subr.mxu0 %v3294_v37  ;;  %v3445_v37 = vld [vmem:[%s7400_s14 + $0xc8] sm:$0xff]  ;;  %3501 = vmatpush1.msra.mxu1 %v3446_v47  ;;  %v3458_v45 = vld [vmem:[%s7400_s14 + $0x130] sm:$0xff] }
 0x9c9   :  { %3356 = vmatpush1.msra.mxu0 %v3293_v48  ;;  %v3444_v48 = vld [vmem:[%s7400_s14 + $0xc0] sm:$0xff]  ;;  %3502 = vmatprep.subr.mxu1 %v3445_v37  ;;  %v3457_v47 = vld [vmem:[%s7400_s14 + $0x128] sm:$0xff] }
 0x9ca   :  { %3357 = vmatprep.subr.mxu0 %v3292_v50  ;;  %v3443_v50 = vld [vmem:[%s7400_s14 + $0xb8] sm:$0xff]  ;;  %3503 = vmatpush1.msra.mxu1 %v3444_v48  ;;  %v3456_v37 = vld [vmem:[%s7400_s14 + $0x120] sm:$0xff] }
 0x9cb   :  { %3358 = vmatpush1.msra.mxu0 %v3291_v51  ;;  %v3442_v51 = vld [vmem:[%s7400_s14 + $0xb0] sm:$0xff]  ;;  %3504 = vmatprep.subr.mxu1 %v3443_v50  ;;  %v3455_v48 = vld [vmem:[%s7400_s14 + $0x118] sm:$0xff] }
 0x9cc   :  { %3359 = vmatprep.subr.mxu0 %v3290_v54  ;;  %v3441_v54 = vld [vmem:[%s7400_s14 + $0xa8] sm:$0xff]  ;;  %3505 = vmatpush1.msra.mxu1 %v3442_v51  ;;  %v3454_v50 = vld [vmem:[%s7400_s14 + $0x110] sm:$0xff] }
 0x9cd   :  { %3360 = vmatpush1.msra.mxu0 %v3289_v55  ;;  %v3440_v55 = vld [vmem:[%s7400_s14 + $0xa0] sm:$0xff]  ;;  %3506 = vmatprep.subr.mxu1 %v3441_v54  ;;  %v3453_v51 = vld [vmem:[%s7400_s14 + $0x108] sm:$0xff] }
 0x9ce   :  { %3361 = vmatprep.subr.mxu0 %v3288_v56  ;;  %v3439_v56 = vld [vmem:[%s7400_s14 + $0x98] sm:$0xff]  ;;  %3507 = vmatpush1.msra.mxu1 %v3440_v55  ;;  %v3452_v54 = vld [vmem:[%s7400_s14 + $0x100] sm:$0xff] }
 0x9cf   :  { %3362 = vmatpush1.msra.mxu0 %v3287_v0  ;;  %v3438_v0 = vld [vmem:[%s7400_s14 + $0x90] sm:$0xff]  ;;  %3508 = vmatprep.subr.mxu1 %v3439_v56  ;;  %v3600_v55 = vld [vmem:[%s7402_s16 + $0xf8] sm:$0xff] }
 0x9d0   :  { %3363 = vmatprep.subr.mxu0 %v3286_v58  ;;  %v3437_v58 = vld [vmem:[%s7400_s14 + $0x88] sm:$0xff]  ;;  %3509 = vmatpush1.msra.mxu1 %v3438_v0  ;;  %v3584_v56 = vld [vmem:[%s7402_s16 + $0x78] sm:$0xff]  ;;  %v3599_v0 = vld [vmem:[%s7402_s16 + $0xf0] sm:$0xff] }
 0x9d1   :  { %3364 = vmatpush1.msra.mxu0 %v3285_v60  ;;  %v3436_v60 = vld [vmem:[%s7400_s14 + $0x80] sm:$0xff]  ;;  %3510 = vmatprep.subr.mxu1 %v3437_v58  ;;  %v3583_v58 = vld [vmem:[%s7402_s16 + $0x70] sm:$0xff] }
 0x9d2   :  { %3365 = vmatprep.subr.mxu0 %v3284_v62  ;;  %v3435_v62 = vld [vmem:[%s7400_s14 + $0x78] sm:$0xff]  ;;  %3511 = vmatpush1.msra.mxu1 %v3436_v60  ;;  %v3598_v60 = vld [vmem:[%s7402_s16 + $0xe8] sm:$0xff] }
 0x9d3   :  { %3366 = vmatpush1.msra.mxu0 %v3283_v18  ;;  %v3434_v18 = vld [vmem:[%s7400_s14 + $0x70] sm:$0xff]  ;;  %3512 = vmatprep.subr.mxu1 %v3435_v62  ;;  %v3582_v62 = vld [vmem:[%s7402_s16 + $0x68] sm:$0xff] }
 0x9d4   :  { %3367 = vmatprep.subr.mxu0 %v3282_v1  ;;  %v3433_v1 = vld [vmem:[%s7400_s14 + $0x68] sm:$0xff]  ;;  %3513 = vmatpush1.msra.mxu1 %v3434_v18  ;;  %v3597_v18 = vld [vmem:[%s7402_s16 + $0xe0] sm:$0xff] }
 0x9d5   :  { %3368 = vmatpush1.msra.mxu0 %v3281_v2  ;;  %v3432_v2 = vld [vmem:[%s7400_s14 + $0x60] sm:$0xff]  ;;  %3514 = vmatprep.subr.mxu1 %v3433_v1 }
 0x9d6   :  { %3369 = vmatprep.subr.mxu0 %v3280_v3  ;;  %v3431_v3 = vld [vmem:[%s7400_s14 + $0x58] sm:$0xff]  ;;  %3515 = vmatpush1.msra.mxu1 %v3432_v2  ;;  %v3581_v1 = vld [vmem:[%s7402_s16 + $0x60] sm:$0xff] }
 0x9d7   :  { %3370 = vmatpush1.msra.mxu0 %v3279_v4  ;;  %v3430_v4 = vld [vmem:[%s7400_s14 + $0x50] sm:$0xff]  ;;  %3516 = vmatprep.subr.mxu1 %v3431_v3  ;;  %v3596_v2 = vld [vmem:[%s7402_s16 + $0xd8] sm:$0xff] }
 0x9d8   :  { %3371 = vmatprep.subr.mxu0 %v3278_v5  ;;  %v3429_v5 = vld [vmem:[%s7400_s14 + $0x48] sm:$0xff]  ;;  %3517 = vmatpush1.msra.mxu1 %v3430_v4  ;;  %v3580_v3 = vld [vmem:[%s7402_s16 + $0x58] sm:$0xff]  ;;  %v3595_v4 = vld [vmem:[%s7402_s16 + $0xd0] sm:$0xff] }
 0x9d9   :  { %3372 = vmatpush1.msra.mxu0 %v3277_v19  ;;  %v3428_v19 = vld [vmem:[%s7400_s14 + $0x40] sm:$0xff]  ;;  %3518 = vmatprep.subr.mxu1 %v3429_v5  ;;  %v3579_v5 = vld [vmem:[%s7402_s16 + $0x50] sm:$0xff] }
 0x9da   :  { %3373 = vmatprep.subr.mxu0 %v3276_v6  ;;  %v3427_v6 = vld [vmem:[%s7400_s14 + $0x38] sm:$0xff]  ;;  %3519 = vmatpush1.msra.mxu1 %v3428_v19  ;;  %v3335_v19 = vld [vmem:[%s7399_s13] sm:$0x3] }
 0x9db   :  { %3374 = vmatpush1.msra.mxu0 %v3275_v7  ;;  %v3426_v7 = vld [vmem:[%s7400_s14 + $0x30] sm:$0xff]  ;;  %3520 = vmatprep.subr.mxu1 %v3427_v6  ;;  %v3340_v6 = vrot.slane %v3335_v19, %v5824_v31 }
 0x9dc   :  { %3375 = vmatprep.subr.mxu0 %v3274_v8  ;;  %v3425_v8 = vld [vmem:[%s7400_s14 + $0x28] sm:$0xff]  ;;  %3521 = vmatpush1.msra.mxu1 %v3426_v7  ;;  %v3344_v7 = vrot.slane %v3335_v19, %v5819_v28 }
 0x9dd   :  { %3376 = vmatpush1.msra.mxu0 %v3273_v9  ;;  %v3424_v9 = vld [vmem:[%s7400_s14 + $0x20] sm:$0xff]  ;;  %3522 = vmatprep.subr.mxu1 %v3425_v8 }
 0x9de   :  { %3377 = vmatprep.subr.mxu0 %v3272_v10  ;;  %v3423_v10 = vld [vmem:[%s7400_s14 + $0x18] sm:$0xff]  ;;  %3523 = vmatpush1.msra.mxu1 %v3424_v9 }
 0x9df   :  { %3378 = vmatpush1.msra.mxu0 %v3271_v11  ;;  %v3422_v11 = vld [vmem:[%s7400_s14 + $0x10] sm:$0xff]  ;;  %3524 = vmatprep.subr.mxu1 %v3423_v10 }
 0x9e0   :  { %3379 = vmatprep.subr.mxu0 %v3334_v12  ;;  %v3421_v12 = vld [vmem:[%s7400_s14 + $0x8] sm:$0xff]  ;;  %3525 = vmatpush1.msra.mxu1 %v3422_v11 }
 0x9e1   :  { %3380 = vmatpush2.msra.mxu0 %v3333_v13  ;;  %v3420_v13 = vld [vmem:[%s7400_s14] sm:$0xff]  ;;  %3526 = vmatprep.subr.mxu1 %v3421_v12 }
 0x9e2   :  { %3381 = vmatprep.subr.mxu0 %v3332_v14  ;;  %v3483_v14 = vld [vmem:[%s7400_s14 + $0x1f8] sm:$0xff]  ;;  %3527 = vmatpush1.msra.mxu1 %v3420_v13 }
 0x9e3   :  { %3382 = vmatpush2.msra.mxu0 %v3331_v15  ;;  %v3482_v15 = vld [vmem:[%s7400_s14 + $0x1f0] sm:$0xff]  ;;  %3528 = vmatprep.subr.mxu1 %v3483_v14  ;;  %v3594_v14 = vld [vmem:[%s7402_s16 + $0xc8] sm:$0xff] }
 0x9e4   :  { %3383 = vmatprep.subr.mxu0 %v3330_v16  ;;  %v3481_v16 = vld [vmem:[%s7400_s14 + $0x1e8] sm:$0xff]  ;;  %3529 = vmatpush2.msra.mxu1 %v3482_v15 }
 0x9e5   :  { %3384 = vmatpush2.msra.mxu0 %v3329_v17  ;;  %v3480_v17 = vld [vmem:[%s7400_s14 + $0x1e0] sm:$0xff]  ;;  %3530 = vmatprep.subr.mxu1 %v3481_v16  ;;  %v3578_v15 = vld [vmem:[%s7402_s16 + $0x48] sm:$0xff] }
 0x9e6   :  { %3385 = vmatprep.subr.mxu0 %v3328_v20  ;;  %v3479_v20 = vld [vmem:[%s7400_s14 + $0x1d8] sm:$0xff]  ;;  %3531 = vmatpush2.msra.mxu1 %v3480_v17  ;;  %v3593_v16 = vld [vmem:[%s7402_s16 + $0xc0] sm:$0xff] }
 0x9e7   :  { %3386 = vmatpush2.msra.mxu0 %v3327_v21  ;;  %v3478_v21 = vld [vmem:[%s7400_s14 + $0x1d0] sm:$0xff]  ;;  %3532 = vmatprep.subr.mxu1 %v3479_v20  ;;  %v3577_v17 = vld [vmem:[%s7402_s16 + $0x40] sm:$0xff]  ;;  %v3592_v20 = vld [vmem:[%s7402_s16 + $0xb8] sm:$0xff] }
 0x9e8   :  { %3387 = vmatprep.subr.mxu0 %v3326_v22  ;;  %v3477_v22 = vld [vmem:[%s7400_s14 + $0x1c8] sm:$0xff]  ;;  %3533 = vmatpush2.msra.mxu1 %v3478_v21  ;;  %v3576_v21 = vld [vmem:[%s7402_s16 + $0x38] sm:$0xff] }
 0x9e9   :  { %3388 = vmatpush2.msra.mxu0 %v3325_v23  ;;  %v3476_v23 = vld [vmem:[%s7400_s14 + $0x1c0] sm:$0xff]  ;;  %3534 = vmatprep.subr.mxu1 %v3477_v22  ;;  %v3591_v22 = vld [vmem:[%s7402_s16 + $0xb0] sm:$0xff] }
 0x9ea   :  { %3389 = vmatprep.subr.mxu0 %v3324_v25  ;;  %v3475_v25 = vld [vmem:[%s7400_s14 + $0x1b8] sm:$0xff]  ;;  %3535 = vmatpush2.msra.mxu1 %v3476_v23  ;;  %v3575_v23 = vld [vmem:[%s7402_s16 + $0x30] sm:$0xff] }
 0x9eb   :  { %3390 = vmatpush2.msra.mxu0 %v3323_v26  ;;  %v3474_v26 = vld [vmem:[%s7400_s14 + $0x1b0] sm:$0xff]  ;;  %3536 = vmatprep.subr.mxu1 %v3475_v25  ;;  %v3590_v25 = vld [vmem:[%s7402_s16 + $0xa8] sm:$0xff] }
 0x9ec   :  { %3391 = vmatprep.subr.mxu0 %v3322_v29  ;;  %v3473_v29 = vld [vmem:[%s7400_s14 + $0x1a8] sm:$0xff]  ;;  %3537 = vmatpush2.msra.mxu1 %v3474_v26 }
 0x9ed   :  { %3392 = vmatpush2.msra.mxu0 %v3321_v30  ;;  %v3472_v30 = vld [vmem:[%s7400_s14 + $0x1a0] sm:$0xff]  ;;  %3538 = vmatprep.subr.mxu1 %v3473_v29  ;;  %v3574_v26 = vld [vmem:[%s7402_s16 + $0x28] sm:$0xff] }
 0x9ee   :  { %3393 = vmatprep.subr.mxu0 %v3320_v53  ;;  %3539 = vmatpush2.msra.mxu1 %v3472_v30  ;;  %v3183_v53 = vld [vmem:[%s7397_s11] sm:$0x3] }
 0x9ef   :  { %3394 = vmatpush2.msra.mxu0 %v3319_v46  ;;  %v3188_v46 = vrot.slane %v3183_v53, %v5824_v31  ;;  %v3589_v29 = vld [vmem:[%s7402_s16 + $0xa0] sm:$0xff] }
 0x9f0   :  { %3395 = vmatprep.subr.mxu0 %v3318_v49  ;;  %v3192_v49 = vrot.slane %v3183_v53, %v5819_v28  ;;  %v3573_v30 = vld [vmem:[%s7402_s16 + $0x20] sm:$0xff]  ;;  %v3588_v53 = vld [vmem:[%s7402_s16 + $0x98] sm:$0xff] }
 0x9f1   :  { %3396 = vmatpush2.msra.mxu0 %v3317_v52 }
 0x9f2   :  { %3397 = vmatprep.subr.mxu0 %v3316_v59 }
 0x9f3   :  { %3398 = vmatpush2.msra.mxu0 %v3315_v61 }
 0x9f4   :  { %3399 = vmatprep.subr.mxu0 %v3314_v63 }
 0x9f5   :  { %3400 = vmatpush2.msra.mxu0 %v3313_v57 }
 0x9f6   :  { %3401 = vmatprep.subr.mxu0 %v3312_v33 }
 0x9f7   :  { %3402 = vmatpush2.msra.mxu0 %v3311_v34  ;;  %v3471_v34 = vld [vmem:[%s7400_s14 + $0x198] sm:$0xff] }
 0x9f8   :  { %3403 = vmatprep.subr.mxu0 %v3310_v35  ;;  %3540 = vmatprep.subr.mxu1 %v3471_v34  ;;  %v3470_v35 = vld [vmem:[%s7400_s14 + $0x190] sm:$0xff] }
 0x9f9   :  { %3404 = vmatpush2.msra.mxu0 %v3309_v36  ;;  %3541 = vmatpush2.msra.mxu1 %v3470_v35  ;;  %v3469_v36 = vld [vmem:[%s7400_s14 + $0x188] sm:$0xff] }
 0x9fa   :  { %3405 = vmatprep.subr.mxu0 %v3308_v38  ;;  %3542 = vmatprep.subr.mxu1 %v3469_v36  ;;  %v3468_v38 = vld [vmem:[%s7400_s14 + $0x180] sm:$0xff] }
 0x9fb   :  { %3406 = vmatpush2.msra.mxu0 %v3307_v39  ;;  %3543 = vmatpush2.msra.mxu1 %v3468_v38  ;;  %v3467_v39 = vld [vmem:[%s7400_s14 + $0x178] sm:$0xff] }
 0x9fc   :  { %3407 = vmatprep.subr.mxu0 %v3306_v27  ;;  %3544 = vmatprep.subr.mxu1 %v3467_v39  ;;  %v3466_v27 = vld [vmem:[%s7400_s14 + $0x170] sm:$0xff] }
 0x9fd   :  { %3408 = vmatpush2.msra.mxu0 %v3305_v32  ;;  %v3465_v32 = vld [vmem:[%s7400_s14 + $0x168] sm:$0xff]  ;;  %3545 = vmatpush2.msra.mxu1 %v3466_v27 }
 0x9fe   :  { %3409 = vmatprep.subr.mxu0 %v3304_v40  ;;  %v3464_v40 = vld [vmem:[%s7400_s14 + $0x160] sm:$0xff]  ;;  %3546 = vmatprep.subr.mxu1 %v3465_v32 }
 0x9ff   :  { %3410 = vmatpush2.msra.mxu0 %v3303_v41  ;;  %v3463_v41 = vld [vmem:[%s7400_s14 + $0x158] sm:$0xff]  ;;  %3547 = vmatpush2.msra.mxu1 %v3464_v40 }
 0xa00   :  { %3548 = vmatprep.subr.mxu1 %v3463_v41  ;;  %4250 = vmatprep.subr.mxu0 %v3600_v55 }
 0xa01   :  { %3549 = vmatpush2.msra.mxu1 %v3462_v42  ;;  %v4249_v42 = vld [vmem:[%s7403_s17] ss:$0 sm:$0xff] }
 0xa02   :  { %3550 = vmatprep.subr.mxu1 %v3461_v43 }
 0xa03   :  { %3551 = vmatpush2.msra.mxu1 %v3460_v24 }
 0xa04   :  { %3552 = vmatprep.subr.mxu1 %v3459_v44 }
 0xa05   :  { %3553 = vmatpush2.msra.mxu1 %v3458_v45 }
 0xa06   :  { %3554 = vmatprep.subr.mxu1 %v3457_v47 }
 0xa07   :  { %3555 = vmatpush2.msra.mxu1 %v3456_v37 }
 0xa08   :  { %3556 = vmatprep.subr.mxu1 %v3455_v48 }
 0xa09   :  { %3557 = vmatpush2.msra.mxu1 %v3454_v50 }
 0xa0a   :  { %3558 = vmatprep.subr.mxu1 %v3453_v51 }
 0xa0b   :  { %3559 = vmatpush2.msra.mxu1 %v3452_v54 }
 0xa80   :  { %v3264_v52 = vpop.f32.mrf.mxu0 }
 0xa81   :  { %v3265_v59 = vadd.f32 %v3264_v52, %v3188_v46  ;;  %v3572_v46 = vld [vmem:[%s7402_s16 + $0x18] sm:$0xff]  ;;  %v3571_v52 = vld [vmem:[%s7402_s16 + $0x10] sm:$0xff] }
 0xa82   :  { %v3266_v61 = vpop.f32.mrf.mxu0 }
 0xa83   :  { %v3267_v63 = vadd.f32 %v3266_v61, %v3192_v49  ;;  %v3587_v49 = vld [vmem:[%s7402_s16 + $0x90] sm:$0xff]  ;;  %v3570_v61 = vld [vmem:[%s7402_s16 + $0x8] sm:$0xff] }
 0xa85   :  { %4287 = vtanh.f32 %v3267_v63  ;;  %v3585_v63 = vld [vmem:[%s7402_s16 + $0x80] sm:$0xff] }
 0xa86   :  { %4289 = vtanh.f32 %v3265_v59  ;;  %v3586_v59 = vld [vmem:[%s7402_s16 + $0x88] sm:$0xff] }
 0xa92   :  { %v4288_v57 = vpop.eup %4287 }
 0xa93   :  { %v4290_v33 = vpop.eup %4289  ;;  %3411 = vmatprep.mubr.f32.mxu0 %v4288_v57  ;;  %v3569_v57 = vld [vmem:[%s7402_s16] sm:$0xff] }
 0xa94   :  { %3412 = vmatmul.mubr.f32.vlgmr.msra.gmra.mxu0 %v4290_v33  ;;  %v3484_v33 = vld [vmem:[%s7401_s15] sm:$0x3]  ;;  %s4340_s15 = smov [#allocation2]  }
 0xa95   :  { %4251 = vmatpush3.msra.mxu0 %v3584_v56  ;;  %v3489_v34 = vrot.slane %v3484_v33, %v5824_v31  ;;  %v3493_v35 = vrot.slane %v3484_v33, %v5819_v28  ;;  %s3686_s21 = sshll.u32 %s4340_s15, 4  ;;  %s3687_s21 = int_to_ptr.vmem [resolvable:$true] %s3686_s21 }
 0xa96   :  { %4252 = vmatprep.subr.mxu0 %v3599_v0  ;;  %s4317_s22 = scalar_lea.vmem %s3687_s21, 32  ;;  %p4322_p1 = scmp.lt.s32.totalorder %s3687_s21, %s3687_s21 }
 0xa97   :  { %4253 = vmatpush3.msra.mxu0 %v3583_v58  ;;  %p4318_p0 = scmp.ne.s32.totalorder %s3687_s21, %s4317_s22  ;;  %p4323_p2 = scmp.lt.s32.totalorder %s4317_s22, %s4317_s22 }
 0xa98   :  { %4254 = vmatprep.subr.mxu0 %v3598_v60 }
 0xa99   :  { %4255 = vmatpush3.msra.mxu0 %v3582_v62  ;;  %p4324_p3 = por %p4323_p2, %p4322_p1 }
 0xa9a   :  { %4256 = vmatprep.subr.mxu0 %v3597_v18 }
 0xa9b   :  { %4257 = vmatpush3.msra.mxu0 %v3581_v1  ;;  %p4325_p4 = pnand %p4324_p3, %p4318_p0 }
 0xa9c   :  { %4258 = vmatprep.subr.mxu0 %v3596_v2 }
 0xa9d   :  { %4259 = vmatpush3.msra.mxu0 %v3580_v3 }
 0xa9e   :  { %4260 = vmatprep.subr.mxu0 %v3595_v4 }
 0xa9f   :  { %4261 = vmatpush3.msra.mxu0 %v3579_v5 }
 0xaa0   :  { %4262 = vmatprep.subr.mxu0 %v3594_v14 }
 0xaa1   :  { %4263 = vmatpush3.msra.mxu0 %v3578_v15 }
 0xaa2   :  { %4264 = vmatprep.subr.mxu0 %v3593_v16 }
 0xaa3   :  { %4265 = vmatpush3.msra.mxu0 %v3577_v17 }
 0xaa4   :  { %4266 = vmatprep.subr.mxu0 %v3592_v20 }
 0xaa5   :  { %4267 = vmatpush3.msra.mxu0 %v3576_v21 }
 0xaa6   :  { %4268 = vmatprep.subr.mxu0 %v3591_v22 }
 0xaa7   :  { %4269 = vmatpush3.msra.mxu0 %v3575_v23 }
 0xaa8   :  { %4270 = vmatprep.subr.mxu0 %v3590_v25 }
 0xaa9   :  { %4271 = vmatpush3.msra.mxu0 %v3574_v26 }
 0xaaa   :  { %4272 = vmatprep.subr.mxu0 %v3589_v29 }
 0xaab   :  { %4273 = vmatpush3.msra.mxu0 %v3573_v30 }
 0xaac   :  { %4274 = vmatprep.subr.mxu0 %v3588_v53 }
 0xaad   :  { %4275 = vmatpush3.msra.mxu0 %v3572_v46 }
 0xaae   :  { %4276 = vmatprep.subr.mxu0 %v3587_v49 }
 0xaaf   :  { %4277 = vmatpush3.msra.mxu0 %v3571_v52 }
 0xab0   :  { %4278 = vmatprep.subr.mxu0 %v3586_v59 }
 0xab1   :  { %4279 = vmatpush3.msra.mxu0 %v3570_v61 }
 0xab2   :  { %4280 = vmatprep.subr.mxu0 %v3585_v63 }
 0xab3   :  { %4281 = vmatpush3.msra.mxu0 %v3569_v57 }
 0xb54   :  { %v3413_v8 = vpop.f32.mrf.mxu0 }
 0xb55   :  { %v3414_v9 = vadd.f32 %v3413_v8, %v3340_v6 }
 0xb56   :  { %v3415_v10 = vpop.f32.mrf.mxu0 }
 0xb57   :  { %v3416_v11 = vadd.f32 %v3415_v10, %v3344_v7 }
 0xb59   :  { %4291 = vtanh.f32 %v3416_v11 }
 0xb5a   :  { %4293 = vtanh.f32 %v3414_v9 }
 0xb66   :  { %v4292_v12 = vpop.eup %4291 }
 0xb67   :  { %v4294_v13 = vpop.eup %4293  ;;  %3560 = vmatprep.mubr.f32.mxu1 %v4292_v12 }
 0xb68   :  { %3561 = vmatmul.mubr.f32.vlgmr.msra.gmra.mxu1 %v4294_v13 }
 0xc28   :  { %v3562_v36 = vpop.f32.mrf.mxu1 }
 0xc29   :  { %v3563_v38 = vadd.f32 %v3562_v36, %v3489_v34 }
 0xc2a   :  { %v3564_v39 = vpop.f32.mrf.mxu1 }
 0xc2b   :  { %v3565_v27 = vadd.f32 %v3564_v39, %v3493_v35 }
 0xc2d   :  { %4295 = vtanh.f32 %v3565_v27 }
 0xc2e   :  { %4297 = vtanh.f32 %v3563_v38 }
 0xc3a   :  { %v4296_v32 = vpop.eup %4295 }
 0xc3b   :  { %v4298_v40 = vpop.eup %4297  ;;  %3672 = vmatprep.mubr.f32.mxu0 %v4296_v32 }
 0xc3c   :  { %3673 = vmatmul.mubr.f32.vlgmr.msra.gmra.mxu0 %v4298_v40 }
 0xcfc   :  { %v4282_v41 = vpop.f32.mrf.mxu0 }
 0xcfe   :  { %v4283_v43 = vpop.f32.mrf.mxu0 }
 0xcff   :  { %v4284_v31 = vadd.f32 %v4283_v43, %v4282_v41 }
 0xd01   :  { %v3675_v28 = vadd.f32 %v4284_v31, %v4249_v42 }
 0xd03   :  { %3679 = vst.msk [vmem:[#allocation2] sm:$0x3] %vm3678_vm4, %v3675_v28 }
 0xd04   :  { %4328 = shalt.err (!%p4325_p4)
}
 0xd05   :  { %3689 = dma.vmem_to_hbm [thread:$0]  %s3687_s21, 32, %s7404_s18, [#allocation3]  }
 0xd06   :  { %4337 = dma.done.wait [#allocation3], 32  }
 0xd07   :  { %4338 = vsyncadd [#allocation3], 4294967264 }
 0xd08   :  { %3693 = vsyncpa [#allocation3], 1 }

</bundles_post_ra>
